<compile_context>
chip_gen: v7x
topology: tpu7x:2x2x1
jax: 0.10.0
libtpu: 0.0.40
codegen_flags: <defaults>
</compile_context>

<pallas_src>
from functools import partial

import jax
import jax.numpy as jnp
from jax.experimental import pallas as pl
from jax.experimental.pallas import tpu as pltpu

KSIZE = 7
PAD = 3
TOP = 8          # zero rows above the data in the conv scratch (sublane-aligned data start)


def _round_up(x, m):
    return -(-x // m) * m


def _conv7x7_same(w_ref, pad_ref, avg, mx, *, H, W, WP):
    """Zero-padded 'same' 7x7 conv of the 2-channel [avg, max] stack -> (H, W) f32.

    w_ref   : (2*49,) f32 SMEM ref, torch weight (1, 2, 7, 7) flattened [in_ch, kh, kw].
    pad_ref : (2, TOP + H + PAD, WP) f32 VMEM scratch (vertical zero pad lives here).
    avg, mx : (H, W) f32 values.
    """
    # Refresh only the six vertical pad rows (megacore-safe: done every call),
    # then overwrite the data rows.  Columns [W, WP) may hold garbage; the
    # horizontal zero padding is recovered with per-dx lane masks below.
    zpad = jnp.zeros((PAD, WP), jnp.float32)
    for p, plane in ((0, avg), (1, mx)):
        pad_ref[p, pl.ds(TOP - PAD, PAD), :] = zpad           # rows just above the data
        pad_ref[p, pl.ds(TOP + H, PAD), :] = zpad             # rows just below the data
        pad_ref[p, pl.ds(TOP, H), pl.ds(0, W)] = plane        # data rows (sublane-aligned start)

    lane = jax.lax.broadcasted_iota(jnp.int32, (1, WP), 1)
    acc = jnp.zeros((H, WP), jnp.float32)
    for dx in range(KSIZE):
        shift = PAD - dx
        # (H + 6, WP) window around the data rows, shifted horizontally once per dx.
        s_avg = pad_ref[0, pl.ds(TOP - PAD, H + 2 * PAD), :]
        s_max = pad_ref[1, pl.ds(TOP - PAD, H + 2 * PAD), :]
        if shift != 0:
            s_avg = pltpu.roll(s_avg, shift=shift % WP, axis=1)
            s_max = pltpu.roll(s_max, shift=shift % WP, axis=1)
        # Columns whose tap falls outside [0, W) read the (virtual) zero padding.
        if dx < PAD:
            keep = lane >= (PAD - dx)
        elif dx > PAD:
            keep = lane < (W - (dx - PAD))
        else:
            keep = None
        if keep is not None:
            s_avg = jnp.where(keep, s_avg, 0.0)
            s_max = jnp.where(keep, s_max, 0.0)
        for dy in range(KSIZE):
            w_a = w_ref[dy * KSIZE + dx]                      # weight[0, 0, dy, dx]
            w_m = w_ref[KSIZE * KSIZE + dy * KSIZE + dx]      # weight[0, 1, dy, dx]
            acc = acc + w_a * s_avg[dy:dy + H, :] + w_m * s_max[dy:dy + H, :]
    return acc[:, :W]


# --------------------------- fused single-pass path ---------------------------

def _fused_kernel(w_ref, x_ref, y_ref, att_ref, pad_ref, *, H, W, WP):
    x_raw = x_ref[0]                                          # (C, H, W), native dtype
    x32 = x_raw.astype(jnp.float32)
    avg = jnp.mean(x32, axis=0)                               # (H, W) f32
    mx = jnp.max(x32, axis=0)                                 # (H, W) f32

    att32 = _conv7x7_same(w_ref, pad_ref, avg, mx, H=H, W=W, WP=WP)
    att_ref[0, 0] = att32.astype(att_ref.dtype)

    gate = jax.nn.sigmoid(att32)                              # (H, W) f32
    if jnp.dtype(y_ref.dtype) == jnp.float32:
        y_ref[0] = gate[None, :, :] * x32
    else:
        # bf16 fast path: gate cast once, big C*H*W multiply stays native.
        y_ref[0] = (gate.astype(y_ref.dtype)[None, :, :] * x_raw).astype(y_ref.dtype)


# ----------------------- channel-chunked two-pass path ------------------------

def _att_chunked_kernel(w_ref, x_ref, att_ref, red_ref, pad_ref, *, C, H, W, WP):
    c = pl.program_id(1)
    x32 = x_ref[0].astype(jnp.float32)                        # (Cb, H, W)

    @pl.when(c == 0)
    def _():
        red_ref[0] = jnp.zeros((H, W), jnp.float32)
        red_ref[1] = jnp.full((H, W), -jnp.inf, jnp.float32)

    red_ref[0] = red_ref[0] + jnp.sum(x32, axis=0)
    red_ref[1] = jnp.maximum(red_ref[1], jnp.max(x32, axis=0))

    @pl.when(c == pl.num_programs(1) - 1)
    def _():
        avg = red_ref[0] * jnp.float32(1.0 / C)
        att32 = _conv7x7_same(w_ref, pad_ref, avg, red_ref[1], H=H, W=W, WP=WP)
        att_ref[0, 0] = att32.astype(att_ref.dtype)


def _gate_chunked_kernel(x_ref, att_ref, y_ref):
    gate = jax.nn.sigmoid(att_ref[0, 0].astype(jnp.float32))  # (H, W) f32
    x_raw = x_ref[0]                                          # (Cb, H, W)
    if jnp.dtype(y_ref.dtype) == jnp.float32:
        y_ref[0] = gate[None, :, :] * x_raw.astype(jnp.float32)
    else:
        y_ref[0] = (gate.astype(y_ref.dtype)[None, :, :] * x_raw).astype(y_ref.dtype)


# ----------------------------------- wrapper ----------------------------------

def spatial_attention(x, w, *, max_block_bytes=None):
    """x: (B, C, H, W); w: (1, 2, 7, 7) torch Conv2d(2, 1, 7, padding=3, bias=False) weight.

    Returns (sigmoid(conv([mean_c(x), max_c(x)])) * x, conv(...)), like the PyTorch module.
    """
    B, C, H, W = x.shape
    WP = _round_up(W, 128)                       # lane-padded conv-plane width
    HS = TOP + H + PAD                           # conv scratch rows
    itemsize = jnp.dtype(x.dtype).itemsize
    w_flat = w.reshape(-1).astype(jnp.float32)   # [in_ch, kh, kw] order

    # Per-chip VMEM budget: <=48 MiB on v7x (64 MiB phys), <=96 MiB on v5e/v6e (128 MiB phys).
    try:
        phys_vmem = pltpu.get_tpu_info().vmem_capacity_bytes
    except Exception:
        phys_vmem = 128 * 1024 * 1024
    vmem_limit = int(min(phys_vmem * 3 // 4, 96 * 1024 * 1024))
    if max_block_bytes is None:
        max_block_bytes = vmem_limit // 2        # x and y blocks are each double-buffered

    # Estimated steady-state VMEM residency of the fused path.
    fused_bytes = 4 * C * H * W * itemsize + 8 * HS * WP + 4 * H * W * itemsize

    if fused_bytes <= max_block_bytes:
        y, att = pl.pallas_call(
            partial(_fused_kernel, H=H, W=W, WP=WP),
            out_shape=(jax.ShapeDtypeStruct((B, C, H, W), x.dtype),
                       jax.ShapeDtypeStruct((B, 1, H, W), x.dtype)),
            grid=(B,),
            in_specs=[
                pl.BlockSpec((2 * KSIZE * KSIZE,), lambda b: (0,),
                             memory_space=pltpu.MemorySpace.SMEM),
                pl.BlockSpec((1, C, H, W), lambda b: (b, 0, 0, 0)),
            ],
            out_specs=[
                pl.BlockSpec((1, C, H, W), lambda b: (b, 0, 0, 0)),
                pl.BlockSpec((1, 1, H, W), lambda b: (b, 0, 0, 0)),
            ],
            scratch_shapes=[pltpu.VMEM((2, HS, WP), jnp.float32)],
            compiler_params=pltpu.CompilerParams(
                dimension_semantics=("parallel",),
                vmem_limit_bytes=vmem_limit),
        )(w_flat, x)
        return y, att

    # Large C*H*W (e.g. early UNet layers on v7x): bound per-step VMEM with a
    # channel-chunked two-pass scheme (x is read twice: reduce+conv, then gate).
    cb_cap = max(1, max_block_bytes // max(1, 4 * H * W * itemsize))
    c_blk = 1
    for d in range(1, C + 1):
        if C % d == 0 and d <= cb_cap:
            c_blk = d
    n_chunks = C // c_blk

    att = pl.pallas_call(
        partial(_att_chunked_kernel, C=C, H=H, W=W, WP=WP),
        out_shape=jax.ShapeDtypeStruct((B, 1, H, W), x.dtype),
        grid=(B, n_chunks),
        in_specs=[
            pl.BlockSpec((2 * KSIZE * KSIZE,), lambda b, c: (0,),
                         memory_space=pltpu.MemorySpace.SMEM),
            pl.BlockSpec((1, c_blk, H, W), lambda b, c: (b, c, 0, 0)),
        ],
        out_specs=pl.BlockSpec((1, 1, H, W), lambda b, c: (b, 0, 0, 0)),
        scratch_shapes=[pltpu.VMEM((2, H, W), jnp.float32),
                        pltpu.VMEM((2, HS, WP), jnp.float32)],
        compiler_params=pltpu.CompilerParams(
            dimension_semantics=("parallel", "arbitrary"),
            vmem_limit_bytes=vmem_limit),
    )(w_flat, x)

    y = pl.pallas_call(
        _gate_chunked_kernel,
        out_shape=jax.ShapeDtypeStruct((B, C, H, W), x.dtype),
        grid=(B, n_chunks),
        in_specs=[
            pl.BlockSpec((1, c_blk, H, W), lambda b, c: (b, c, 0, 0)),
            pl.BlockSpec((1, 1, H, W), lambda b, c: (b, 0, 0, 0)),
        ],
        out_specs=pl.BlockSpec((1, c_blk, H, W), lambda b, c: (b, c, 0, 0)),
        compiler_params=pltpu.CompilerParams(
            dimension_semantics=("parallel", "parallel"),
            vmem_limit_bytes=vmem_limit),
    )(x, att)
    return y, att


def reference(x, w):
    """Pure-JAX reference mirroring the PyTorch module."""
    avg = jnp.mean(x, axis=1, keepdims=True)
    mx = jnp.max(x, axis=1, keepdims=True)
    cat = jnp.concatenate([avg, mx], axis=1)
    out = jax.lax.conv_general_dilated(
        cat, w, window_strides=(1, 1), padding=[(PAD, PAD), (PAD, PAD)],
        dimension_numbers=("NCHW", "OIHW", "NCHW"))
    return jax.nn.sigmoid(out) * x, out


if __name__ == "__main__":
    key = jax.random.PRNGKey(0)
    kx, kw = jax.random.split(key)

    B, C, H, W = 2, 4, 16, 16
    x = jax.random.normal(kx, (B, C, H, W), dtype=jnp.float32)

    # Deterministic synthetic conv weight (shape of nn.Conv2d(2, 1, 7, bias=False)).
    fan_in = 2 * KSIZE * KSIZE
    bound = 1.0 / (fan_in ** 0.5)
    w = jax.random.uniform(kw, (1, 2, KSIZE, KSIZE), jnp.float32, -bound, bound)

    y_want, att_want = reference(x, w)

    # Fused single-pass path.
    y, att = spatial_attention(x, w)
    jax.block_until_ready((y, att))
    assert jnp.allclose(att, att_want, atol=1e-5, rtol=1e-5), "attention map mismatch (fused)"
    assert jnp.allclose(y, y_want, atol=1e-5, rtol=1e-5), "gated output mismatch (fused)"

    # Channel-chunked two-pass path (forced small budget so the large-layer code path runs).
    y2, att2 = spatial_attention(x, w, max_block_bytes=1)
    jax.block_until_ready((y2, att2))
    assert jnp.allclose(att2, att_want, atol=1e-5, rtol=1e-5), "attention map mismatch (chunked)"
    assert jnp.allclose(y2, y_want, atol=1e-5, rtol=1e-5), "gated output mismatch (chunked)"

    print("KERNEL_OK")
</pallas_src>

<mosaic_0001>
module attributes {stable_mosaic.version = 11 : i64} {
  func.func @_fused_kernel(%arg0: i32, %arg1: memref<98xf32, #tpu.memory_space<smem>>, %arg2: memref<1x4x16x16xf32, #tpu.memory_space<vmem>>, %arg3: memref<1x4x16x16xf32, #tpu.memory_space<vmem>>, %arg4: memref<1x1x16x16xf32, #tpu.memory_space<vmem>>, %arg5: memref<2x27x128xf32, #tpu.memory_space<vmem>>) attributes {dimension_semantics = [#tpu.dimension_semantics<parallel>], iteration_bounds = array<i64: 2>, scalar_prefetch = 0 : i64, scratch_operands = 1 : i64, tpu.core_type = #tpu.core_type<tc>, window_params = [{transform_indices = @transform_0, window_bounds = array<i64: 98>}, {transform_indices = @transform_1, window_bounds = array<i64: 1, 4, 16, 16>}, {transform_indices = @transform_2, window_bounds = array<i64: 1, 4, 16, 16>}, {transform_indices = @transform_3, window_bounds = array<i64: 1, 1, 16, 16>}]} {
    %c0 = arith.constant 0 : index
    %c0_0 = arith.constant 0 : index
    %c0_1 = arith.constant 0 : index
    %c0_2 = arith.constant 0 : index
    %0 = vector.load %arg2[%c0, %c0_0, %c0_1, %c0_2] : memref<1x4x16x16xf32, #tpu.memory_space<vmem>>, vector<1x4x16x16xf32>
    %1 = vector.shape_cast %0 : vector<1x4x16x16xf32> to vector<4x16x16xf32>
    %cst = arith.constant dense<0.000000e+00> : vector<16x16xf32>
    %2 = vector.multi_reduction <add>, %1, %cst [0] : vector<4x16x16xf32> to vector<16x16xf32>
    %cst_3 = arith.constant 4.000000e+00 : f32
    %3 = vector.broadcast %cst_3 : f32 to vector<16x16xf32>
    %4 = arith.divf %2, %3 : vector<16x16xf32>
    %cst_4 = arith.constant dense<0xFF800000> : vector<16x16xf32>
    %5 = vector.multi_reduction <maximumf>, %1, %cst_4 [0] : vector<4x16x16xf32> to vector<16x16xf32>
    %cst_5 = arith.constant 0.000000e+00 : f32
    %6 = vector.broadcast %cst_5 : f32 to vector<3x128xf32>
    %c0_6 = arith.constant 0 : index
    %c5 = arith.constant 5 : index
    %c0_7 = arith.constant 0 : index
    %7 = vector.load %arg5[%c0_6, %c5, %c0_7] : memref<2x27x128xf32, #tpu.memory_space<vmem>>, vector<1x3x128xf32>
    %8 = vector.shape_cast %7 : vector<1x3x128xf32> to vector<3x128xf32>
    %9 = vector.shape_cast %6 : vector<3x128xf32> to vector<1x3x128xf32>
    tpu.vector_store %arg5[%c0_6, %c5, %c0_7], %9 {strides = array<i32>} : memref<2x27x128xf32, #tpu.memory_space<vmem>>, vector<1x3x128xf32>,
    %c0_8 = arith.constant 0 : index
    %c24 = arith.constant 24 : index
    %c0_9 = arith.constant 0 : index
    %10 = vector.load %arg5[%c0_8, %c24, %c0_9] : memref<2x27x128xf32, #tpu.memory_space<vmem>>, vector<1x3x128xf32>
    %11 = vector.shape_cast %10 : vector<1x3x128xf32> to vector<3x128xf32>
    %12 = vector.shape_cast %6 : vector<3x128xf32> to vector<1x3x128xf32>
    tpu.vector_store %arg5[%c0_8, %c24, %c0_9], %12 {strides = array<i32>} : memref<2x27x128xf32, #tpu.memory_space<vmem>>, vector<1x3x128xf32>,
    %c0_10 = arith.constant 0 : index
    %c8 = arith.constant 8 : index
    %c0_11 = arith.constant 0 : index
    %13 = vector.load %arg5[%c0_10, %c8, %c0_11] : memref<2x27x128xf32, #tpu.memory_space<vmem>>, vector<1x16x16xf32>
    %14 = vector.shape_cast %13 : vector<1x16x16xf32> to vector<16x16xf32>
    %15 = vector.shape_cast %4 : vector<16x16xf32> to vector<1x16x16xf32>
    tpu.vector_store %arg5[%c0_10, %c8, %c0_11], %15 {strides = array<i32>} : memref<2x27x128xf32, #tpu.memory_space<vmem>>, vector<1x16x16xf32>,
    %c1 = arith.constant 1 : index
    %c5_12 = arith.constant 5 : index
    %c0_13 = arith.constant 0 : index
    %16 = vector.load %arg5[%c1, %c5_12, %c0_13] : memref<2x27x128xf32, #tpu.memory_space<vmem>>, vector<1x3x128xf32>
    %17 = vector.shape_cast %16 : vector<1x3x128xf32> to vector<3x128xf32>
    %18 = vector.shape_cast %6 : vector<3x128xf32> to vector<1x3x128xf32>
    tpu.vector_store %arg5[%c1, %c5_12, %c0_13], %18 {strides = array<i32>} : memref<2x27x128xf32, #tpu.memory_space<vmem>>, vector<1x3x128xf32>,
    %c1_14 = arith.constant 1 : index
    %c24_15 = arith.constant 24 : index
    %c0_16 = arith.constant 0 : index
    %19 = vector.load %arg5[%c1_14, %c24_15, %c0_16] : memref<2x27x128xf32, #tpu.memory_space<vmem>>, vector<1x3x128xf32>
    %20 = vector.shape_cast %19 : vector<1x3x128xf32> to vector<3x128xf32>
    %21 = vector.shape_cast %6 : vector<3x128xf32> to vector<1x3x128xf32>
    tpu.vector_store %arg5[%c1_14, %c24_15, %c0_16], %21 {strides = array<i32>} : memref<2x27x128xf32, #tpu.memory_space<vmem>>, vector<1x3x128xf32>,
    %c1_17 = arith.constant 1 : index
    %c8_18 = arith.constant 8 : index
    %c0_19 = arith.constant 0 : index
    %22 = vector.load %arg5[%c1_17, %c8_18, %c0_19] : memref<2x27x128xf32, #tpu.memory_space<vmem>>, vector<1x16x16xf32>
    %23 = vector.shape_cast %22 : vector<1x16x16xf32> to vector<16x16xf32>
    %24 = vector.shape_cast %5 : vector<16x16xf32> to vector<1x16x16xf32>
    tpu.vector_store %arg5[%c1_17, %c8_18, %c0_19], %24 {strides = array<i32>} : memref<2x27x128xf32, #tpu.memory_space<vmem>>, vector<1x16x16xf32>,
    %25 = tpu.iota {dimensions = array<i32: 1>} : vector<1x128xi32>
    %cst_20 = arith.constant 0.000000e+00 : f32
    %26 = vector.broadcast %cst_20 : f32 to vector<16x128xf32>
    %c0_21 = arith.constant 0 : index
    %c5_22 = arith.constant 5 : index
    %c0_23 = arith.constant 0 : index
    %27 = vector.load %arg5[%c0_21, %c5_22, %c0_23] : memref<2x27x128xf32, #tpu.memory_space<vmem>>, vector<1x22x128xf32>
    %28 = vector.shape_cast %27 : vector<1x22x128xf32> to vector<22x128xf32>
    %c1_24 = arith.constant 1 : index
    %c5_25 = arith.constant 5 : index
    %c0_26 = arith.constant 0 : index
    %29 = vector.load %arg5[%c1_24, %c5_25, %c0_26] : memref<2x27x128xf32, #tpu.memory_space<vmem>>, vector<1x22x128xf32>
    %30 = vector.shape_cast %29 : vector<1x22x128xf32> to vector<22x128xf32>
    %c3_i32 = arith.constant 3 : i32
    %31 = tpu.dynamic_rotate %28 by %c3_i32 dim 1 : vector<22x128xf32>, i32 -> vector<22x128xf32>
    %c3_i32_27 = arith.constant 3 : i32
    %32 = tpu.dynamic_rotate %30 by %c3_i32_27 dim 1 : vector<22x128xf32>, i32 -> vector<22x128xf32>
    %c3_i32_28 = arith.constant 3 : i32
    %33 = vector.broadcast %c3_i32_28 : i32 to vector<1x128xi32>
    %34 = arith.cmpi sge, %25, %33 : vector<1x128xi32>
    %cst_29 = arith.constant 0.000000e+00 : f32
    %35 = vector.shape_cast %34 : vector<1x128xi1> to vector<1x128xi1>
    %36 = vector.broadcast %35 : vector<1x128xi1> to vector<22x128xi1>
    %37 = vector.broadcast %cst_29 : f32 to vector<22x128xf32>
    %38 = arith.select %36, %31, %37 : vector<22x128xi1>, vector<22x128xf32>
    %cst_30 = arith.constant 0.000000e+00 : f32
    %39 = vector.shape_cast %34 : vector<1x128xi1> to vector<1x128xi1>
    %40 = vector.broadcast %39 : vector<1x128xi1> to vector<22x128xi1>
    %41 = vector.broadcast %cst_30 : f32 to vector<22x128xf32>
    %42 = arith.select %40, %32, %41 : vector<22x128xi1>, vector<22x128xf32>
    %c0_31 = arith.constant 0 : index
    %43 = memref.load %arg1[%c0_31] : memref<98xf32, #tpu.memory_space<smem>>
    %c49 = arith.constant 49 : index
    %44 = memref.load %arg1[%c49] : memref<98xf32, #tpu.memory_space<smem>>
    %45 = vector.extract_strided_slice %38 {offsets = [0, 0], sizes = [16, 128], strides = [1, 1]} : vector<22x128xf32> to vector<16x128xf32>
    %46 = vector.broadcast %43 : f32 to vector<16x128xf32>
    %47 = arith.mulf %46, %45 : vector<16x128xf32>
    %48 = arith.addf %26, %47 : vector<16x128xf32>
    %49 = vector.extract_strided_slice %42 {offsets = [0, 0], sizes = [16, 128], strides = [1, 1]} : vector<22x128xf32> to vector<16x128xf32>
    %50 = vector.broadcast %44 : f32 to vector<16x128xf32>
    %51 = arith.mulf %50, %49 : vector<16x128xf32>
    %52 = arith.addf %48, %51 : vector<16x128xf32>
    %c7 = arith.constant 7 : index
    %53 = memref.load %arg1[%c7] : memref<98xf32, #tpu.memory_space<smem>>
    %c56 = arith.constant 56 : index
    %54 = memref.load %arg1[%c56] : memref<98xf32, #tpu.memory_space<smem>>
    %55 = vector.extract_strided_slice %38 {offsets = [1, 0], sizes = [16, 128], strides = [1, 1]} : vector<22x128xf32> to vector<16x128xf32>
    %56 = vector.broadcast %53 : f32 to vector<16x128xf32>
    %57 = arith.mulf %56, %55 : vector<16x128xf32>
    %58 = arith.addf %52, %57 : vector<16x128xf32>
    %59 = vector.extract_strided_slice %42 {offsets = [1, 0], sizes = [16, 128], strides = [1, 1]} : vector<22x128xf32> to vector<16x128xf32>
    %60 = vector.broadcast %54 : f32 to vector<16x128xf32>
    %61 = arith.mulf %60, %59 : vector<16x128xf32>
    %62 = arith.addf %58, %61 : vector<16x128xf32>
    %c14 = arith.constant 14 : index
    %63 = memref.load %arg1[%c14] : memref<98xf32, #tpu.memory_space<smem>>
    %c63 = arith.constant 63 : index
    %64 = memref.load %arg1[%c63] : memref<98xf32, #tpu.memory_space<smem>>
    %65 = vector.extract_strided_slice %38 {offsets = [2, 0], sizes = [16, 128], strides = [1, 1]} : vector<22x128xf32> to vector<16x128xf32>
    %66 = vector.broadcast %63 : f32 to vector<16x128xf32>
    %67 = arith.mulf %66, %65 : vector<16x128xf32>
    %68 = arith.addf %62, %67 : vector<16x128xf32>
    %69 = vector.extract_strided_slice %42 {offsets = [2, 0], sizes = [16, 128], strides = [1, 1]} : vector<22x128xf32> to vector<16x128xf32>
    %70 = vector.broadcast %64 : f32 to vector<16x128xf32>
    %71 = arith.mulf %70, %69 : vector<16x128xf32>
    %72 = arith.addf %68, %71 : vector<16x128xf32>
    %c21 = arith.constant 21 : index
    %73 = memref.load %arg1[%c21] : memref<98xf32, #tpu.memory_space<smem>>
    %c70 = arith.constant 70 : index
    %74 = memref.load %arg1[%c70] : memref<98xf32, #tpu.memory_space<smem>>
    %75 = vector.extract_strided_slice %38 {offsets = [3, 0], sizes = [16, 128], strides = [1, 1]} : vector<22x128xf32> to vector<16x128xf32>
    %76 = vector.broadcast %73 : f32 to vector<16x128xf32>
    %77 = arith.mulf %76, %75 : vector<16x128xf32>
    %78 = arith.addf %72, %77 : vector<16x128xf32>
    %79 = vector.extract_strided_slice %42 {offsets = [3, 0], sizes = [16, 128], strides = [1, 1]} : vector<22x128xf32> to vector<16x128xf32>
    %80 = vector.broadcast %74 : f32 to vector<16x128xf32>
    %81 = arith.mulf %80, %79 : vector<16x128xf32>
    %82 = arith.addf %78, %81 : vector<16x128xf32>
    %c28 = arith.constant 28 : index
    %83 = memref.load %arg1[%c28] : memref<98xf32, #tpu.memory_space<smem>>
    %c77 = arith.constant 77 : index
    %84 = memref.load %arg1[%c77] : memref<98xf32, #tpu.memory_space<smem>>
    %85 = vector.extract_strided_slice %38 {offsets = [4, 0], sizes = [16, 128], strides = [1, 1]} : vector<22x128xf32> to vector<16x128xf32>
    %86 = vector.broadcast %83 : f32 to vector<16x128xf32>
    %87 = arith.mulf %86, %85 : vector<16x128xf32>
    %88 = arith.addf %82, %87 : vector<16x128xf32>
    %89 = vector.extract_strided_slice %42 {offsets = [4, 0], sizes = [16, 128], strides = [1, 1]} : vector<22x128xf32> to vector<16x128xf32>
    %90 = vector.broadcast %84 : f32 to vector<16x128xf32>
    %91 = arith.mulf %90, %89 : vector<16x128xf32>
    %92 = arith.addf %88, %91 : vector<16x128xf32>
    %c35 = arith.constant 35 : index
    %93 = memref.load %arg1[%c35] : memref<98xf32, #tpu.memory_space<smem>>
    %c84 = arith.constant 84 : index
    %94 = memref.load %arg1[%c84] : memref<98xf32, #tpu.memory_space<smem>>
    %95 = vector.extract_strided_slice %38 {offsets = [5, 0], sizes = [16, 128], strides = [1, 1]} : vector<22x128xf32> to vector<16x128xf32>
    %96 = vector.broadcast %93 : f32 to vector<16x128xf32>
    %97 = arith.mulf %96, %95 : vector<16x128xf32>
    %98 = arith.addf %92, %97 : vector<16x128xf32>
    %99 = vector.extract_strided_slice %42 {offsets = [5, 0], sizes = [16, 128], strides = [1, 1]} : vector<22x128xf32> to vector<16x128xf32>
    %100 = vector.broadcast %94 : f32 to vector<16x128xf32>
    %101 = arith.mulf %100, %99 : vector<16x128xf32>
    %102 = arith.addf %98, %101 : vector<16x128xf32>
    %c42 = arith.constant 42 : index
    %103 = memref.load %arg1[%c42] : memref<98xf32, #tpu.memory_space<smem>>
    %c91 = arith.constant 91 : index
    %104 = memref.load %arg1[%c91] : memref<98xf32, #tpu.memory_space<smem>>
    %105 = vector.extract_strided_slice %38 {offsets = [6, 0], sizes = [16, 128], strides = [1, 1]} : vector<22x128xf32> to vector<16x128xf32>
    %106 = vector.broadcast %103 : f32 to vector<16x128xf32>
    %107 = arith.mulf %106, %105 : vector<16x128xf32>
    %108 = arith.addf %102, %107 : vector<16x128xf32>
    %109 = vector.extract_strided_slice %42 {offsets = [6, 0], sizes = [16, 128], strides = [1, 1]} : vector<22x128xf32> to vector<16x128xf32>
    %110 = vector.broadcast %104 : f32 to vector<16x128xf32>
    %111 = arith.mulf %110, %109 : vector<16x128xf32>
    %112 = arith.addf %108, %111 : vector<16x128xf32>
    %c0_32 = arith.constant 0 : index
    %c5_33 = arith.constant 5 : index
    %c0_34 = arith.constant 0 : index
    %113 = vector.load %arg5[%c0_32, %c5_33, %c0_34] : memref<2x27x128xf32, #tpu.memory_space<vmem>>, vector<1x22x128xf32>
    %114 = vector.shape_cast %113 : vector<1x22x128xf32> to vector<22x128xf32>
    %c1_35 = arith.constant 1 : index
    %c5_36 = arith.constant 5 : index
    %c0_37 = arith.constant 0 : index
    %115 = vector.load %arg5[%c1_35, %c5_36, %c0_37] : memref<2x27x128xf32, #tpu.memory_space<vmem>>, vector<1x22x128xf32>
    %116 = vector.shape_cast %115 : vector<1x22x128xf32> to vector<22x128xf32>
    %c2_i32 = arith.constant 2 : i32
    %117 = tpu.dynamic_rotate %114 by %c2_i32 dim 1 : vector<22x128xf32>, i32 -> vector<22x128xf32>
    %c2_i32_38 = arith.constant 2 : i32
    %118 = tpu.dynamic_rotate %116 by %c2_i32_38 dim 1 : vector<22x128xf32>, i32 -> vector<22x128xf32>
    %c2_i32_39 = arith.constant 2 : i32
    %119 = vector.broadcast %c2_i32_39 : i32 to vector<1x128xi32>
    %120 = arith.cmpi sge, %25, %119 : vector<1x128xi32>
    %cst_40 = arith.constant 0.000000e+00 : f32
    %121 = vector.shape_cast %120 : vector<1x128xi1> to vector<1x128xi1>
    %122 = vector.broadcast %121 : vector<1x128xi1> to vector<22x128xi1>
    %123 = vector.broadcast %cst_40 : f32 to vector<22x128xf32>
    %124 = arith.select %122, %117, %123 : vector<22x128xi1>, vector<22x128xf32>
    %cst_41 = arith.constant 0.000000e+00 : f32
    %125 = vector.shape_cast %120 : vector<1x128xi1> to vector<1x128xi1>
    %126 = vector.broadcast %125 : vector<1x128xi1> to vector<22x128xi1>
    %127 = vector.broadcast %cst_41 : f32 to vector<22x128xf32>
    %128 = arith.select %126, %118, %127 : vector<22x128xi1>, vector<22x128xf32>
    %c1_42 = arith.constant 1 : index
    %129 = memref.load %arg1[%c1_42] : memref<98xf32, #tpu.memory_space<smem>>
    %c50 = arith.constant 50 : index
    %130 = memref.load %arg1[%c50] : memref<98xf32, #tpu.memory_space<smem>>
    %131 = vector.extract_strided_slice %124 {offsets = [0, 0], sizes = [16, 128], strides = [1, 1]} : vector<22x128xf32> to vector<16x128xf32>
    %132 = vector.broadcast %129 : f32 to vector<16x128xf32>
    %133 = arith.mulf %132, %131 : vector<16x128xf32>
    %134 = arith.addf %112, %133 : vector<16x128xf32>
    %135 = vector.extract_strided_slice %128 {offsets = [0, 0], sizes = [16, 128], strides = [1, 1]} : vector<22x128xf32> to vector<16x128xf32>
    %136 = vector.broadcast %130 : f32 to vector<16x128xf32>
    %137 = arith.mulf %136, %135 : vector<16x128xf32>
    %138 = arith.addf %134, %137 : vector<16x128xf32>
    %c8_43 = arith.constant 8 : index
    %139 = memref.load %arg1[%c8_43] : memref<98xf32, #tpu.memory_space<smem>>
    %c57 = arith.constant 57 : index
    %140 = memref.load %arg1[%c57] : memref<98xf32, #tpu.memory_space<smem>>
    %141 = vector.extract_strided_slice %124 {offsets = [1, 0], sizes = [16, 128], strides = [1, 1]} : vector<22x128xf32> to vector<16x128xf32>
    %142 = vector.broadcast %139 : f32 to vector<16x128xf32>
    %143 = arith.mulf %142, %141 : vector<16x128xf32>
    %144 = arith.addf %138, %143 : vector<16x128xf32>
    %145 = vector.extract_strided_slice %128 {offsets = [1, 0], sizes = [16, 128], strides = [1, 1]} : vector<22x128xf32> to vector<16x128xf32>
    %146 = vector.broadcast %140 : f32 to vector<16x128xf32>
    %147 = arith.mulf %146, %145 : vector<16x128xf32>
    %148 = arith.addf %144, %147 : vector<16x128xf32>
    %c15 = arith.constant 15 : index
    %149 = memref.load %arg1[%c15] : memref<98xf32, #tpu.memory_space<smem>>
    %c64 = arith.constant 64 : index
    %150 = memref.load %arg1[%c64] : memref<98xf32, #tpu.memory_space<smem>>
    %151 = vector.extract_strided_slice %124 {offsets = [2, 0], sizes = [16, 128], strides = [1, 1]} : vector<22x128xf32> to vector<16x128xf32>
    %152 = vector.broadcast %149 : f32 to vector<16x128xf32>
    %153 = arith.mulf %152, %151 : vector<16x128xf32>
    %154 = arith.addf %148, %153 : vector<16x128xf32>
    %155 = vector.extract_strided_slice %128 {offsets = [2, 0], sizes = [16, 128], strides = [1, 1]} : vector<22x128xf32> to vector<16x128xf32>
    %156 = vector.broadcast %150 : f32 to vector<16x128xf32>
    %157 = arith.mulf %156, %155 : vector<16x128xf32>
    %158 = arith.addf %154, %157 : vector<16x128xf32>
    %c22 = arith.constant 22 : index
    %159 = memref.load %arg1[%c22] : memref<98xf32, #tpu.memory_space<smem>>
    %c71 = arith.constant 71 : index
    %160 = memref.load %arg1[%c71] : memref<98xf32, #tpu.memory_space<smem>>
    %161 = vector.extract_strided_slice %124 {offsets = [3, 0], sizes = [16, 128], strides = [1, 1]} : vector<22x128xf32> to vector<16x128xf32>
    %162 = vector.broadcast %159 : f32 to vector<16x128xf32>
    %163 = arith.mulf %162, %161 : vector<16x128xf32>
    %164 = arith.addf %158, %163 : vector<16x128xf32>
    %165 = vector.extract_strided_slice %128 {offsets = [3, 0], sizes = [16, 128], strides = [1, 1]} : vector<22x128xf32> to vector<16x128xf32>
    %166 = vector.broadcast %160 : f32 to vector<16x128xf32>
    %167 = arith.mulf %166, %165 : vector<16x128xf32>
    %168 = arith.addf %164, %167 : vector<16x128xf32>
    %c29 = arith.constant 29 : index
    %169 = memref.load %arg1[%c29] : memref<98xf32, #tpu.memory_space<smem>>
    %c78 = arith.constant 78 : index
    %170 = memref.load %arg1[%c78] : memref<98xf32, #tpu.memory_space<smem>>
    %171 = vector.extract_strided_slice %124 {offsets = [4, 0], sizes = [16, 128], strides = [1, 1]} : vector<22x128xf32> to vector<16x128xf32>
    %172 = vector.broadcast %169 : f32 to vector<16x128xf32>
    %173 = arith.mulf %172, %171 : vector<16x128xf32>
    %174 = arith.addf %168, %173 : vector<16x128xf32>
    %175 = vector.extract_strided_slice %128 {offsets = [4, 0], sizes = [16, 128], strides = [1, 1]} : vector<22x128xf32> to vector<16x128xf32>
    %176 = vector.broadcast %170 : f32 to vector<16x128xf32>
    %177 = arith.mulf %176, %175 : vector<16x128xf32>
    %178 = arith.addf %174, %177 : vector<16x128xf32>
    %c36 = arith.constant 36 : index
    %179 = memref.load %arg1[%c36] : memref<98xf32, #tpu.memory_space<smem>>
    %c85 = arith.constant 85 : index
    %180 = memref.load %arg1[%c85] : memref<98xf32, #tpu.memory_space<smem>>
    %181 = vector.extract_strided_slice %124 {offsets = [5, 0], sizes = [16, 128], strides = [1, 1]} : vector<22x128xf32> to vector<16x128xf32>
    %182 = vector.broadcast %179 : f32 to vector<16x128xf32>
    %183 = arith.mulf %182, %181 : vector<16x128xf32>
    %184 = arith.addf %178, %183 : vector<16x128xf32>
    %185 = vector.extract_strided_slice %128 {offsets = [5, 0], sizes = [16, 128], strides = [1, 1]} : vector<22x128xf32> to vector<16x128xf32>
    %186 = vector.broadcast %180 : f32 to vector<16x128xf32>
    %187 = arith.mulf %186, %185 : vector<16x128xf32>
    %188 = arith.addf %184, %187 : vector<16x128xf32>
    %c43 = arith.constant 43 : index
    %189 = memref.load %arg1[%c43] : memref<98xf32, #tpu.memory_space<smem>>
    %c92 = arith.constant 92 : index
    %190 = memref.load %arg1[%c92] : memref<98xf32, #tpu.memory_space<smem>>
    %191 = vector.extract_strided_slice %124 {offsets = [6, 0], sizes = [16, 128], strides = [1, 1]} : vector<22x128xf32> to vector<16x128xf32>
    %192 = vector.broadcast %189 : f32 to vector<16x128xf32>
    %193 = arith.mulf %192, %191 : vector<16x128xf32>
    %194 = arith.addf %188, %193 : vector<16x128xf32>
    %195 = vector.extract_strided_slice %128 {offsets = [6, 0], sizes = [16, 128], strides = [1, 1]} : vector<22x128xf32> to vector<16x128xf32>
    %196 = vector.broadcast %190 : f32 to vector<16x128xf32>
    %197 = arith.mulf %196, %195 : vector<16x128xf32>
    %198 = arith.addf %194, %197 : vector<16x128xf32>
    %c0_44 = arith.constant 0 : index
    %c5_45 = arith.constant 5 : index
    %c0_46 = arith.constant 0 : index
    %199 = vector.load %arg5[%c0_44, %c5_45, %c0_46] : memref<2x27x128xf32, #tpu.memory_space<vmem>>, vector<1x22x128xf32>
    %200 = vector.shape_cast %199 : vector<1x22x128xf32> to vector<22x128xf32>
    %c1_47 = arith.constant 1 : index
    %c5_48 = arith.constant 5 : index
    %c0_49 = arith.constant 0 : index
    %201 = vector.load %arg5[%c1_47, %c5_48, %c0_49] : memref<2x27x128xf32, #tpu.memory_space<vmem>>, vector<1x22x128xf32>
    %202 = vector.shape_cast %201 : vector<1x22x128xf32> to vector<22x128xf32>
    %c1_i32 = arith.constant 1 : i32
    %203 = tpu.dynamic_rotate %200 by %c1_i32 dim 1 : vector<22x128xf32>, i32 -> vector<22x128xf32>
    %c1_i32_50 = arith.constant 1 : i32
    %204 = tpu.dynamic_rotate %202 by %c1_i32_50 dim 1 : vector<22x128xf32>, i32 -> vector<22x128xf32>
    %c1_i32_51 = arith.constant 1 : i32
    %205 = vector.broadcast %c1_i32_51 : i32 to vector<1x128xi32>
    %206 = arith.cmpi sge, %25, %205 : vector<1x128xi32>
    %cst_52 = arith.constant 0.000000e+00 : f32
    %207 = vector.shape_cast %206 : vector<1x128xi1> to vector<1x128xi1>
    %208 = vector.broadcast %207 : vector<1x128xi1> to vector<22x128xi1>
    %209 = vector.broadcast %cst_52 : f32 to vector<22x128xf32>
    %210 = arith.select %208, %203, %209 : vector<22x128xi1>, vector<22x128xf32>
    %cst_53 = arith.constant 0.000000e+00 : f32
    %211 = vector.shape_cast %206 : vector<1x128xi1> to vector<1x128xi1>
    %212 = vector.broadcast %211 : vector<1x128xi1> to vector<22x128xi1>
    %213 = vector.broadcast %cst_53 : f32 to vector<22x128xf32>
    %214 = arith.select %212, %204, %213 : vector<22x128xi1>, vector<22x128xf32>
    %c2 = arith.constant 2 : index
    %215 = memref.load %arg1[%c2] : memref<98xf32, #tpu.memory_space<smem>>
    %c51 = arith.constant 51 : index
    %216 = memref.load %arg1[%c51] : memref<98xf32, #tpu.memory_space<smem>>
    %217 = vector.extract_strided_slice %210 {offsets = [0, 0], sizes = [16, 128], strides = [1, 1]} : vector<22x128xf32> to vector<16x128xf32>
    %218 = vector.broadcast %215 : f32 to vector<16x128xf32>
    %219 = arith.mulf %218, %217 : vector<16x128xf32>
    %220 = arith.addf %198, %219 : vector<16x128xf32>
    %221 = vector.extract_strided_slice %214 {offsets = [0, 0], sizes = [16, 128], strides = [1, 1]} : vector<22x128xf32> to vector<16x128xf32>
    %222 = vector.broadcast %216 : f32 to vector<16x128xf32>
    %223 = arith.mulf %222, %221 : vector<16x128xf32>
    %224 = arith.addf %220, %223 : vector<16x128xf32>
    %c9 = arith.constant 9 : index
    %225 = memref.load %arg1[%c9] : memref<98xf32, #tpu.memory_space<smem>>
    %c58 = arith.constant 58 : index
    %226 = memref.load %arg1[%c58] : memref<98xf32, #tpu.memory_space<smem>>
    %227 = vector.extract_strided_slice %210 {offsets = [1, 0], sizes = [16, 128], strides = [1, 1]} : vector<22x128xf32> to vector<16x128xf32>
    %228 = vector.broadcast %225 : f32 to vector<16x128xf32>
    %229 = arith.mulf %228, %227 : vector<16x128xf32>
    %230 = arith.addf %224, %229 : vector<16x128xf32>
    %231 = vector.extract_strided_slice %214 {offsets = [1, 0], sizes = [16, 128], strides = [1, 1]} : vector<22x128xf32> to vector<16x128xf32>
    %232 = vector.broadcast %226 : f32 to vector<16x128xf32>
    %233 = arith.mulf %232, %231 : vector<16x128xf32>
    %234 = arith.addf %230, %233 : vector<16x128xf32>
    %c16 = arith.constant 16 : index
    %235 = memref.load %arg1[%c16] : memref<98xf32, #tpu.memory_space<smem>>
    %c65 = arith.constant 65 : index
    %236 = memref.load %arg1[%c65] : memref<98xf32, #tpu.memory_space<smem>>
    %237 = vector.extract_strided_slice %210 {offsets = [2, 0], sizes = [16, 128], strides = [1, 1]} : vector<22x128xf32> to vector<16x128xf32>
    %238 = vector.broadcast %235 : f32 to vector<16x128xf32>
    %239 = arith.mulf %238, %237 : vector<16x128xf32>
    %240 = arith.addf %234, %239 : vector<16x128xf32>
    %241 = vector.extract_strided_slice %214 {offsets = [2, 0], sizes = [16, 128], strides = [1, 1]} : vector<22x128xf32> to vector<16x128xf32>
    %242 = vector.broadcast %236 : f32 to vector<16x128xf32>
    %243 = arith.mulf %242, %241 : vector<16x128xf32>
    %244 = arith.addf %240, %243 : vector<16x128xf32>
    %c23 = arith.constant 23 : index
    %245 = memref.load %arg1[%c23] : memref<98xf32, #tpu.memory_space<smem>>
    %c72 = arith.constant 72 : index
    %246 = memref.load %arg1[%c72] : memref<98xf32, #tpu.memory_space<smem>>
    %247 = vector.extract_strided_slice %210 {offsets = [3, 0], sizes = [16, 128], strides = [1, 1]} : vector<22x128xf32> to vector<16x128xf32>
    %248 = vector.broadcast %245 : f32 to vector<16x128xf32>
    %249 = arith.mulf %248, %247 : vector<16x128xf32>
    %250 = arith.addf %244, %249 : vector<16x128xf32>
    %251 = vector.extract_strided_slice %214 {offsets = [3, 0], sizes = [16, 128], strides = [1, 1]} : vector<22x128xf32> to vector<16x128xf32>
    %252 = vector.broadcast %246 : f32 to vector<16x128xf32>
    %253 = arith.mulf %252, %251 : vector<16x128xf32>
    %254 = arith.addf %250, %253 : vector<16x128xf32>
    %c30 = arith.constant 30 : index
    %255 = memref.load %arg1[%c30] : memref<98xf32, #tpu.memory_space<smem>>
    %c79 = arith.constant 79 : index
    %256 = memref.load %arg1[%c79] : memref<98xf32, #tpu.memory_space<smem>>
    %257 = vector.extract_strided_slice %210 {offsets = [4, 0], sizes = [16, 128], strides = [1, 1]} : vector<22x128xf32> to vector<16x128xf32>
    %258 = vector.broadcast %255 : f32 to vector<16x128xf32>
    %259 = arith.mulf %258, %257 : vector<16x128xf32>
    %260 = arith.addf %254, %259 : vector<16x128xf32>
    %261 = vector.extract_strided_slice %214 {offsets = [4, 0], sizes = [16, 128], strides = [1, 1]} : vector<22x128xf32> to vector<16x128xf32>
    %262 = vector.broadcast %256 : f32 to vector<16x128xf32>
    %263 = arith.mulf %262, %261 : vector<16x128xf32>
    %264 = arith.addf %260, %263 : vector<16x128xf32>
    %c37 = arith.constant 37 : index
    %265 = memref.load %arg1[%c37] : memref<98xf32, #tpu.memory_space<smem>>
    %c86 = arith.constant 86 : index
    %266 = memref.load %arg1[%c86] : memref<98xf32, #tpu.memory_space<smem>>
    %267 = vector.extract_strided_slice %210 {offsets = [5, 0], sizes = [16, 128], strides = [1, 1]} : vector<22x128xf32> to vector<16x128xf32>
    %268 = vector.broadcast %265 : f32 to vector<16x128xf32>
    %269 = arith.mulf %268, %267 : vector<16x128xf32>
    %270 = arith.addf %264, %269 : vector<16x128xf32>
    %271 = vector.extract_strided_slice %214 {offsets = [5, 0], sizes = [16, 128], strides = [1, 1]} : vector<22x128xf32> to vector<16x128xf32>
    %272 = vector.broadcast %266 : f32 to vector<16x128xf32>
    %273 = arith.mulf %272, %271 : vector<16x128xf32>
    %274 = arith.addf %270, %273 : vector<16x128xf32>
    %c44 = arith.constant 44 : index
    %275 = memref.load %arg1[%c44] : memref<98xf32, #tpu.memory_space<smem>>
    %c93 = arith.constant 93 : index
    %276 = memref.load %arg1[%c93] : memref<98xf32, #tpu.memory_space<smem>>
    %277 = vector.extract_strided_slice %210 {offsets = [6, 0], sizes = [16, 128], strides = [1, 1]} : vector<22x128xf32> to vector<16x128xf32>
    %278 = vector.broadcast %275 : f32 to vector<16x128xf32>
    %279 = arith.mulf %278, %277 : vector<16x128xf32>
    %280 = arith.addf %274, %279 : vector<16x128xf32>
    %281 = vector.extract_strided_slice %214 {offsets = [6, 0], sizes = [16, 128], strides = [1, 1]} : vector<22x128xf32> to vector<16x128xf32>
    %282 = vector.broadcast %276 : f32 to vector<16x128xf32>
    %283 = arith.mulf %282, %281 : vector<16x128xf32>
    %284 = arith.addf %280, %283 : vector<16x128xf32>
    %c0_54 = arith.constant 0 : index
    %c5_55 = arith.constant 5 : index
    %c0_56 = arith.constant 0 : index
    %285 = vector.load %arg5[%c0_54, %c5_55, %c0_56] : memref<2x27x128xf32, #tpu.memory_space<vmem>>, vector<1x22x128xf32>
    %286 = vector.shape_cast %285 : vector<1x22x128xf32> to vector<22x128xf32>
    %c1_57 = arith.constant 1 : index
    %c5_58 = arith.constant 5 : index
    %c0_59 = arith.constant 0 : index
    %287 = vector.load %arg5[%c1_57, %c5_58, %c0_59] : memref<2x27x128xf32, #tpu.memory_space<vmem>>, vector<1x22x128xf32>
    %288 = vector.shape_cast %287 : vector<1x22x128xf32> to vector<22x128xf32>
    %c3 = arith.constant 3 : index
    %289 = memref.load %arg1[%c3] : memref<98xf32, #tpu.memory_space<smem>>
    %c52 = arith.constant 52 : index
    %290 = memref.load %arg1[%c52] : memref<98xf32, #tpu.memory_space<smem>>
    %291 = vector.extract_strided_slice %286 {offsets = [0, 0], sizes = [16, 128], strides = [1, 1]} : vector<22x128xf32> to vector<16x128xf32>
    %292 = vector.broadcast %289 : f32 to vector<16x128xf32>
    %293 = arith.mulf %292, %291 : vector<16x128xf32>
    %294 = arith.addf %284, %293 : vector<16x128xf32>
    %295 = vector.extract_strided_slice %288 {offsets = [0, 0], sizes = [16, 128], strides = [1, 1]} : vector<22x128xf32> to vector<16x128xf32>
    %296 = vector.broadcast %290 : f32 to vector<16x128xf32>
    %297 = arith.mulf %296, %295 : vector<16x128xf32>
    %298 = arith.addf %294, %297 : vector<16x128xf32>
    %c10 = arith.constant 10 : index
    %299 = memref.load %arg1[%c10] : memref<98xf32, #tpu.memory_space<smem>>
    %c59 = arith.constant 59 : index
    %300 = memref.load %arg1[%c59] : memref<98xf32, #tpu.memory_space<smem>>
    %301 = vector.extract_strided_slice %286 {offsets = [1, 0], sizes = [16, 128], strides = [1, 1]} : vector<22x128xf32> to vector<16x128xf32>
    %302 = vector.broadcast %299 : f32 to vector<16x128xf32>
    %303 = arith.mulf %302, %301 : vector<16x128xf32>
    %304 = arith.addf %298, %303 : vector<16x128xf32>
    %305 = vector.extract_strided_slice %288 {offsets = [1, 0], sizes = [16, 128], strides = [1, 1]} : vector<22x128xf32> to vector<16x128xf32>
    %306 = vector.broadcast %300 : f32 to vector<16x128xf32>
    %307 = arith.mulf %306, %305 : vector<16x128xf32>
    %308 = arith.addf %304, %307 : vector<16x128xf32>
    %c17 = arith.constant 17 : index
    %309 = memref.load %arg1[%c17] : memref<98xf32, #tpu.memory_space<smem>>
    %c66 = arith.constant 66 : index
    %310 = memref.load %arg1[%c66] : memref<98xf32, #tpu.memory_space<smem>>
    %311 = vector.extract_strided_slice %286 {offsets = [2, 0], sizes = [16, 128], strides = [1, 1]} : vector<22x128xf32> to vector<16x128xf32>
    %312 = vector.broadcast %309 : f32 to vector<16x128xf32>
    %313 = arith.mulf %312, %311 : vector<16x128xf32>
    %314 = arith.addf %308, %313 : vector<16x128xf32>
    %315 = vector.extract_strided_slice %288 {offsets = [2, 0], sizes = [16, 128], strides = [1, 1]} : vector<22x128xf32> to vector<16x128xf32>
    %316 = vector.broadcast %310 : f32 to vector<16x128xf32>
    %317 = arith.mulf %316, %315 : vector<16x128xf32>
    %318 = arith.addf %314, %317 : vector<16x128xf32>
    %c24_60 = arith.constant 24 : index
    %319 = memref.load %arg1[%c24_60] : memref<98xf32, #tpu.memory_space<smem>>
    %c73 = arith.constant 73 : index
    %320 = memref.load %arg1[%c73] : memref<98xf32, #tpu.memory_space<smem>>
    %321 = vector.extract_strided_slice %286 {offsets = [3, 0], sizes = [16, 128], strides = [1, 1]} : vector<22x128xf32> to vector<16x128xf32>
    %322 = vector.broadcast %319 : f32 to vector<16x128xf32>
    %323 = arith.mulf %322, %321 : vector<16x128xf32>
    %324 = arith.addf %318, %323 : vector<16x128xf32>
    %325 = vector.extract_strided_slice %288 {offsets = [3, 0], sizes = [16, 128], strides = [1, 1]} : vector<22x128xf32> to vector<16x128xf32>
    %326 = vector.broadcast %320 : f32 to vector<16x128xf32>
    %327 = arith.mulf %326, %325 : vector<16x128xf32>
    %328 = arith.addf %324, %327 : vector<16x128xf32>
    %c31 = arith.constant 31 : index
    %329 = memref.load %arg1[%c31] : memref<98xf32, #tpu.memory_space<smem>>
    %c80 = arith.constant 80 : index
    %330 = memref.load %arg1[%c80] : memref<98xf32, #tpu.memory_space<smem>>
    %331 = vector.extract_strided_slice %286 {offsets = [4, 0], sizes = [16, 128], strides = [1, 1]} : vector<22x128xf32> to vector<16x128xf32>
    %332 = vector.broadcast %329 : f32 to vector<16x128xf32>
    %333 = arith.mulf %332, %331 : vector<16x128xf32>
    %334 = arith.addf %328, %333 : vector<16x128xf32>
    %335 = vector.extract_strided_slice %288 {offsets = [4, 0], sizes = [16, 128], strides = [1, 1]} : vector<22x128xf32> to vector<16x128xf32>
    %336 = vector.broadcast %330 : f32 to vector<16x128xf32>
    %337 = arith.mulf %336, %335 : vector<16x128xf32>
    %338 = arith.addf %334, %337 : vector<16x128xf32>
    %c38 = arith.constant 38 : index
    %339 = memref.load %arg1[%c38] : memref<98xf32, #tpu.memory_space<smem>>
    %c87 = arith.constant 87 : index
    %340 = memref.load %arg1[%c87] : memref<98xf32, #tpu.memory_space<smem>>
    %341 = vector.extract_strided_slice %286 {offsets = [5, 0], sizes = [16, 128], strides = [1, 1]} : vector<22x128xf32> to vector<16x128xf32>
    %342 = vector.broadcast %339 : f32 to vector<16x128xf32>
    %343 = arith.mulf %342, %341 : vector<16x128xf32>
    %344 = arith.addf %338, %343 : vector<16x128xf32>
    %345 = vector.extract_strided_slice %288 {offsets = [5, 0], sizes = [16, 128], strides = [1, 1]} : vector<22x128xf32> to vector<16x128xf32>
    %346 = vector.broadcast %340 : f32 to vector<16x128xf32>
    %347 = arith.mulf %346, %345 : vector<16x128xf32>
    %348 = arith.addf %344, %347 : vector<16x128xf32>
    %c45 = arith.constant 45 : index
    %349 = memref.load %arg1[%c45] : memref<98xf32, #tpu.memory_space<smem>>
    %c94 = arith.constant 94 : index
    %350 = memref.load %arg1[%c94] : memref<98xf32, #tpu.memory_space<smem>>
    %351 = vector.extract_strided_slice %286 {offsets = [6, 0], sizes = [16, 128], strides = [1, 1]} : vector<22x128xf32> to vector<16x128xf32>
    %352 = vector.broadcast %349 : f32 to vector<16x128xf32>
    %353 = arith.mulf %352, %351 : vector<16x128xf32>
    %354 = arith.addf %348, %353 : vector<16x128xf32>
    %355 = vector.extract_strided_slice %288 {offsets = [6, 0], sizes = [16, 128], strides = [1, 1]} : vector<22x128xf32> to vector<16x128xf32>
    %356 = vector.broadcast %350 : f32 to vector<16x128xf32>
    %357 = arith.mulf %356, %355 : vector<16x128xf32>
    %358 = arith.addf %354, %357 : vector<16x128xf32>
    %c0_61 = arith.constant 0 : index
    %c5_62 = arith.constant 5 : index
    %c0_63 = arith.constant 0 : index
    %359 = vector.load %arg5[%c0_61, %c5_62, %c0_63] : memref<2x27x128xf32, #tpu.memory_space<vmem>>, vector<1x22x128xf32>
    %360 = vector.shape_cast %359 : vector<1x22x128xf32> to vector<22x128xf32>
    %c1_64 = arith.constant 1 : index
    %c5_65 = arith.constant 5 : index
    %c0_66 = arith.constant 0 : index
    %361 = vector.load %arg5[%c1_64, %c5_65, %c0_66] : memref<2x27x128xf32, #tpu.memory_space<vmem>>, vector<1x22x128xf32>
    %362 = vector.shape_cast %361 : vector<1x22x128xf32> to vector<22x128xf32>
    %c127_i32 = arith.constant 127 : i32
    %363 = tpu.dynamic_rotate %360 by %c127_i32 dim 1 : vector<22x128xf32>, i32 -> vector<22x128xf32>
    %c127_i32_67 = arith.constant 127 : i32
    %364 = tpu.dynamic_rotate %362 by %c127_i32_67 dim 1 : vector<22x128xf32>, i32 -> vector<22x128xf32>
    %c15_i32 = arith.constant 15 : i32
    %365 = vector.broadcast %c15_i32 : i32 to vector<1x128xi32>
    %366 = arith.cmpi slt, %25, %365 : vector<1x128xi32>
    %cst_68 = arith.constant 0.000000e+00 : f32
    %367 = vector.shape_cast %366 : vector<1x128xi1> to vector<1x128xi1>
    %368 = vector.broadcast %367 : vector<1x128xi1> to vector<22x128xi1>
    %369 = vector.broadcast %cst_68 : f32 to vector<22x128xf32>
    %370 = arith.select %368, %363, %369 : vector<22x128xi1>, vector<22x128xf32>
    %cst_69 = arith.constant 0.000000e+00 : f32
    %371 = vector.shape_cast %366 : vector<1x128xi1> to vector<1x128xi1>
    %372 = vector.broadcast %371 : vector<1x128xi1> to vector<22x128xi1>
    %373 = vector.broadcast %cst_69 : f32 to vector<22x128xf32>
    %374 = arith.select %372, %364, %373 : vector<22x128xi1>, vector<22x128xf32>
    %c4 = arith.constant 4 : index
    %375 = memref.load %arg1[%c4] : memref<98xf32, #tpu.memory_space<smem>>
    %c53 = arith.constant 53 : index
    %376 = memref.load %arg1[%c53] : memref<98xf32, #tpu.memory_space<smem>>
    %377 = vector.extract_strided_slice %370 {offsets = [0, 0], sizes = [16, 128], strides = [1, 1]} : vector<22x128xf32> to vector<16x128xf32>
    %378 = vector.broadcast %375 : f32 to vector<16x128xf32>
    %379 = arith.mulf %378, %377 : vector<16x128xf32>
    %380 = arith.addf %358, %379 : vector<16x128xf32>
    %381 = vector.extract_strided_slice %374 {offsets = [0, 0], sizes = [16, 128], strides = [1, 1]} : vector<22x128xf32> to vector<16x128xf32>
    %382 = vector.broadcast %376 : f32 to vector<16x128xf32>
    %383 = arith.mulf %382, %381 : vector<16x128xf32>
    %384 = arith.addf %380, %383 : vector<16x128xf32>
    %c11 = arith.constant 11 : index
    %385 = memref.load %arg1[%c11] : memref<98xf32, #tpu.memory_space<smem>>
    %c60 = arith.constant 60 : index
    %386 = memref.load %arg1[%c60] : memref<98xf32, #tpu.memory_space<smem>>
    %387 = vector.extract_strided_slice %370 {offsets = [1, 0], sizes = [16, 128], strides = [1, 1]} : vector<22x128xf32> to vector<16x128xf32>
    %388 = vector.broadcast %385 : f32 to vector<16x128xf32>
    %389 = arith.mulf %388, %387 : vector<16x128xf32>
    %390 = arith.addf %384, %389 : vector<16x128xf32>
    %391 = vector.extract_strided_slice %374 {offsets = [1, 0], sizes = [16, 128], strides = [1, 1]} : vector<22x128xf32> to vector<16x128xf32>
    %392 = vector.broadcast %386 : f32 to vector<16x128xf32>
    %393 = arith.mulf %392, %391 : vector<16x128xf32>
    %394 = arith.addf %390, %393 : vector<16x128xf32>
    %c18 = arith.constant 18 : index
    %395 = memref.load %arg1[%c18] : memref<98xf32, #tpu.memory_space<smem>>
    %c67 = arith.constant 67 : index
    %396 = memref.load %arg1[%c67] : memref<98xf32, #tpu.memory_space<smem>>
    %397 = vector.extract_strided_slice %370 {offsets = [2, 0], sizes = [16, 128], strides = [1, 1]} : vector<22x128xf32> to vector<16x128xf32>
    %398 = vector.broadcast %395 : f32 to vector<16x128xf32>
    %399 = arith.mulf %398, %397 : vector<16x128xf32>
    %400 = arith.addf %394, %399 : vector<16x128xf32>
    %401 = vector.extract_strided_slice %374 {offsets = [2, 0], sizes = [16, 128], strides = [1, 1]} : vector<22x128xf32> to vector<16x128xf32>
    %402 = vector.broadcast %396 : f32 to vector<16x128xf32>
    %403 = arith.mulf %402, %401 : vector<16x128xf32>
    %404 = arith.addf %400, %403 : vector<16x128xf32>
    %c25 = arith.constant 25 : index
    %405 = memref.load %arg1[%c25] : memref<98xf32, #tpu.memory_space<smem>>
    %c74 = arith.constant 74 : index
    %406 = memref.load %arg1[%c74] : memref<98xf32, #tpu.memory_space<smem>>
    %407 = vector.extract_strided_slice %370 {offsets = [3, 0], sizes = [16, 128], strides = [1, 1]} : vector<22x128xf32> to vector<16x128xf32>
    %408 = vector.broadcast %405 : f32 to vector<16x128xf32>
    %409 = arith.mulf %408, %407 : vector<16x128xf32>
    %410 = arith.addf %404, %409 : vector<16x128xf32>
    %411 = vector.extract_strided_slice %374 {offsets = [3, 0], sizes = [16, 128], strides = [1, 1]} : vector<22x128xf32> to vector<16x128xf32>
    %412 = vector.broadcast %406 : f32 to vector<16x128xf32>
    %413 = arith.mulf %412, %411 : vector<16x128xf32>
    %414 = arith.addf %410, %413 : vector<16x128xf32>
    %c32 = arith.constant 32 : index
    %415 = memref.load %arg1[%c32] : memref<98xf32, #tpu.memory_space<smem>>
    %c81 = arith.constant 81 : index
    %416 = memref.load %arg1[%c81] : memref<98xf32, #tpu.memory_space<smem>>
    %417 = vector.extract_strided_slice %370 {offsets = [4, 0], sizes = [16, 128], strides = [1, 1]} : vector<22x128xf32> to vector<16x128xf32>
    %418 = vector.broadcast %415 : f32 to vector<16x128xf32>
    %419 = arith.mulf %418, %417 : vector<16x128xf32>
    %420 = arith.addf %414, %419 : vector<16x128xf32>
    %421 = vector.extract_strided_slice %374 {offsets = [4, 0], sizes = [16, 128], strides = [1, 1]} : vector<22x128xf32> to vector<16x128xf32>
    %422 = vector.broadcast %416 : f32 to vector<16x128xf32>
    %423 = arith.mulf %422, %421 : vector<16x128xf32>
    %424 = arith.addf %420, %423 : vector<16x128xf32>
    %c39 = arith.constant 39 : index
    %425 = memref.load %arg1[%c39] : memref<98xf32, #tpu.memory_space<smem>>
    %c88 = arith.constant 88 : index
    %426 = memref.load %arg1[%c88] : memref<98xf32, #tpu.memory_space<smem>>
    %427 = vector.extract_strided_slice %370 {offsets = [5, 0], sizes = [16, 128], strides = [1, 1]} : vector<22x128xf32> to vector<16x128xf32>
    %428 = vector.broadcast %425 : f32 to vector<16x128xf32>
    %429 = arith.mulf %428, %427 : vector<16x128xf32>
    %430 = arith.addf %424, %429 : vector<16x128xf32>
    %431 = vector.extract_strided_slice %374 {offsets = [5, 0], sizes = [16, 128], strides = [1, 1]} : vector<22x128xf32> to vector<16x128xf32>
    %432 = vector.broadcast %426 : f32 to vector<16x128xf32>
    %433 = arith.mulf %432, %431 : vector<16x128xf32>
    %434 = arith.addf %430, %433 : vector<16x128xf32>
    %c46 = arith.constant 46 : index
    %435 = memref.load %arg1[%c46] : memref<98xf32, #tpu.memory_space<smem>>
    %c95 = arith.constant 95 : index
    %436 = memref.load %arg1[%c95] : memref<98xf32, #tpu.memory_space<smem>>
    %437 = vector.extract_strided_slice %370 {offsets = [6, 0], sizes = [16, 128], strides = [1, 1]} : vector<22x128xf32> to vector<16x128xf32>
    %438 = vector.broadcast %435 : f32 to vector<16x128xf32>
    %439 = arith.mulf %438, %437 : vector<16x128xf32>
    %440 = arith.addf %434, %439 : vector<16x128xf32>
    %441 = vector.extract_strided_slice %374 {offsets = [6, 0], sizes = [16, 128], strides = [1, 1]} : vector<22x128xf32> to vector<16x128xf32>
    %442 = vector.broadcast %436 : f32 to vector<16x128xf32>
    %443 = arith.mulf %442, %441 : vector<16x128xf32>
    %444 = arith.addf %440, %443 : vector<16x128xf32>
    %c0_70 = arith.constant 0 : index
    %c5_71 = arith.constant 5 : index
    %c0_72 = arith.constant 0 : index
    %445 = vector.load %arg5[%c0_70, %c5_71, %c0_72] : memref<2x27x128xf32, #tpu.memory_space<vmem>>, vector<1x22x128xf32>
    %446 = vector.shape_cast %445 : vector<1x22x128xf32> to vector<22x128xf32>
    %c1_73 = arith.constant 1 : index
    %c5_74 = arith.constant 5 : index
    %c0_75 = arith.constant 0 : index
    %447 = vector.load %arg5[%c1_73, %c5_74, %c0_75] : memref<2x27x128xf32, #tpu.memory_space<vmem>>, vector<1x22x128xf32>
    %448 = vector.shape_cast %447 : vector<1x22x128xf32> to vector<22x128xf32>
    %c126_i32 = arith.constant 126 : i32
    %449 = tpu.dynamic_rotate %446 by %c126_i32 dim 1 : vector<22x128xf32>, i32 -> vector<22x128xf32>
    %c126_i32_76 = arith.constant 126 : i32
    %450 = tpu.dynamic_rotate %448 by %c126_i32_76 dim 1 : vector<22x128xf32>, i32 -> vector<22x128xf32>
    %c14_i32 = arith.constant 14 : i32
    %451 = vector.broadcast %c14_i32 : i32 to vector<1x128xi32>
    %452 = arith.cmpi slt, %25, %451 : vector<1x128xi32>
    %cst_77 = arith.constant 0.000000e+00 : f32
    %453 = vector.shape_cast %452 : vector<1x128xi1> to vector<1x128xi1>
    %454 = vector.broadcast %453 : vector<1x128xi1> to vector<22x128xi1>
    %455 = vector.broadcast %cst_77 : f32 to vector<22x128xf32>
    %456 = arith.select %454, %449, %455 : vector<22x128xi1>, vector<22x128xf32>
    %cst_78 = arith.constant 0.000000e+00 : f32
    %457 = vector.shape_cast %452 : vector<1x128xi1> to vector<1x128xi1>
    %458 = vector.broadcast %457 : vector<1x128xi1> to vector<22x128xi1>
    %459 = vector.broadcast %cst_78 : f32 to vector<22x128xf32>
    %460 = arith.select %458, %450, %459 : vector<22x128xi1>, vector<22x128xf32>
    %c5_79 = arith.constant 5 : index
    %461 = memref.load %arg1[%c5_79] : memref<98xf32, #tpu.memory_space<smem>>
    %c54 = arith.constant 54 : index
    %462 = memref.load %arg1[%c54] : memref<98xf32, #tpu.memory_space<smem>>
    %463 = vector.extract_strided_slice %456 {offsets = [0, 0], sizes = [16, 128], strides = [1, 1]} : vector<22x128xf32> to vector<16x128xf32>
    %464 = vector.broadcast %461 : f32 to vector<16x128xf32>
    %465 = arith.mulf %464, %463 : vector<16x128xf32>
    %466 = arith.addf %444, %465 : vector<16x128xf32>
    %467 = vector.extract_strided_slice %460 {offsets = [0, 0], sizes = [16, 128], strides = [1, 1]} : vector<22x128xf32> to vector<16x128xf32>
    %468 = vector.broadcast %462 : f32 to vector<16x128xf32>
    %469 = arith.mulf %468, %467 : vector<16x128xf32>
    %470 = arith.addf %466, %469 : vector<16x128xf32>
    %c12 = arith.constant 12 : index
    %471 = memref.load %arg1[%c12] : memref<98xf32, #tpu.memory_space<smem>>
    %c61 = arith.constant 61 : index
    %472 = memref.load %arg1[%c61] : memref<98xf32, #tpu.memory_space<smem>>
    %473 = vector.extract_strided_slice %456 {offsets = [1, 0], sizes = [16, 128], strides = [1, 1]} : vector<22x128xf32> to vector<16x128xf32>
    %474 = vector.broadcast %471 : f32 to vector<16x128xf32>
    %475 = arith.mulf %474, %473 : vector<16x128xf32>
    %476 = arith.addf %470, %475 : vector<16x128xf32>
    %477 = vector.extract_strided_slice %460 {offsets = [1, 0], sizes = [16, 128], strides = [1, 1]} : vector<22x128xf32> to vector<16x128xf32>
    %478 = vector.broadcast %472 : f32 to vector<16x128xf32>
    %479 = arith.mulf %478, %477 : vector<16x128xf32>
    %480 = arith.addf %476, %479 : vector<16x128xf32>
    %c19 = arith.constant 19 : index
    %481 = memref.load %arg1[%c19] : memref<98xf32, #tpu.memory_space<smem>>
    %c68 = arith.constant 68 : index
    %482 = memref.load %arg1[%c68] : memref<98xf32, #tpu.memory_space<smem>>
    %483 = vector.extract_strided_slice %456 {offsets = [2, 0], sizes = [16, 128], strides = [1, 1]} : vector<22x128xf32> to vector<16x128xf32>
    %484 = vector.broadcast %481 : f32 to vector<16x128xf32>
    %485 = arith.mulf %484, %483 : vector<16x128xf32>
    %486 = arith.addf %480, %485 : vector<16x128xf32>
    %487 = vector.extract_strided_slice %460 {offsets = [2, 0], sizes = [16, 128], strides = [1, 1]} : vector<22x128xf32> to vector<16x128xf32>
    %488 = vector.broadcast %482 : f32 to vector<16x128xf32>
    %489 = arith.mulf %488, %487 : vector<16x128xf32>
    %490 = arith.addf %486, %489 : vector<16x128xf32>
    %c26 = arith.constant 26 : index
    %491 = memref.load %arg1[%c26] : memref<98xf32, #tpu.memory_space<smem>>
    %c75 = arith.constant 75 : index
    %492 = memref.load %arg1[%c75] : memref<98xf32, #tpu.memory_space<smem>>
    %493 = vector.extract_strided_slice %456 {offsets = [3, 0], sizes = [16, 128], strides = [1, 1]} : vector<22x128xf32> to vector<16x128xf32>
    %494 = vector.broadcast %491 : f32 to vector<16x128xf32>
    %495 = arith.mulf %494, %493 : vector<16x128xf32>
    %496 = arith.addf %490, %495 : vector<16x128xf32>
    %497 = vector.extract_strided_slice %460 {offsets = [3, 0], sizes = [16, 128], strides = [1, 1]} : vector<22x128xf32> to vector<16x128xf32>
    %498 = vector.broadcast %492 : f32 to vector<16x128xf32>
    %499 = arith.mulf %498, %497 : vector<16x128xf32>
    %500 = arith.addf %496, %499 : vector<16x128xf32>
    %c33 = arith.constant 33 : index
    %501 = memref.load %arg1[%c33] : memref<98xf32, #tpu.memory_space<smem>>
    %c82 = arith.constant 82 : index
    %502 = memref.load %arg1[%c82] : memref<98xf32, #tpu.memory_space<smem>>
    %503 = vector.extract_strided_slice %456 {offsets = [4, 0], sizes = [16, 128], strides = [1, 1]} : vector<22x128xf32> to vector<16x128xf32>
    %504 = vector.broadcast %501 : f32 to vector<16x128xf32>
    %505 = arith.mulf %504, %503 : vector<16x128xf32>
    %506 = arith.addf %500, %505 : vector<16x128xf32>
    %507 = vector.extract_strided_slice %460 {offsets = [4, 0], sizes = [16, 128], strides = [1, 1]} : vector<22x128xf32> to vector<16x128xf32>
    %508 = vector.broadcast %502 : f32 to vector<16x128xf32>
    %509 = arith.mulf %508, %507 : vector<16x128xf32>
    %510 = arith.addf %506, %509 : vector<16x128xf32>
    %c40 = arith.constant 40 : index
    %511 = memref.load %arg1[%c40] : memref<98xf32, #tpu.memory_space<smem>>
    %c89 = arith.constant 89 : index
    %512 = memref.load %arg1[%c89] : memref<98xf32, #tpu.memory_space<smem>>
    %513 = vector.extract_strided_slice %456 {offsets = [5, 0], sizes = [16, 128], strides = [1, 1]} : vector<22x128xf32> to vector<16x128xf32>
    %514 = vector.broadcast %511 : f32 to vector<16x128xf32>
    %515 = arith.mulf %514, %513 : vector<16x128xf32>
    %516 = arith.addf %510, %515 : vector<16x128xf32>
    %517 = vector.extract_strided_slice %460 {offsets = [5, 0], sizes = [16, 128], strides = [1, 1]} : vector<22x128xf32> to vector<16x128xf32>
    %518 = vector.broadcast %512 : f32 to vector<16x128xf32>
    %519 = arith.mulf %518, %517 : vector<16x128xf32>
    %520 = arith.addf %516, %519 : vector<16x128xf32>
    %c47 = arith.constant 47 : index
    %521 = memref.load %arg1[%c47] : memref<98xf32, #tpu.memory_space<smem>>
    %c96 = arith.constant 96 : index
    %522 = memref.load %arg1[%c96] : memref<98xf32, #tpu.memory_space<smem>>
    %523 = vector.extract_strided_slice %456 {offsets = [6, 0], sizes = [16, 128], strides = [1, 1]} : vector<22x128xf32> to vector<16x128xf32>
    %524 = vector.broadcast %521 : f32 to vector<16x128xf32>
    %525 = arith.mulf %524, %523 : vector<16x128xf32>
    %526 = arith.addf %520, %525 : vector<16x128xf32>
    %527 = vector.extract_strided_slice %460 {offsets = [6, 0], sizes = [16, 128], strides = [1, 1]} : vector<22x128xf32> to vector<16x128xf32>
    %528 = vector.broadcast %522 : f32 to vector<16x128xf32>
    %529 = arith.mulf %528, %527 : vector<16x128xf32>
    %530 = arith.addf %526, %529 : vector<16x128xf32>
    %c0_80 = arith.constant 0 : index
    %c5_81 = arith.constant 5 : index
    %c0_82 = arith.constant 0 : index
    %531 = vector.load %arg5[%c0_80, %c5_81, %c0_82] : memref<2x27x128xf32, #tpu.memory_space<vmem>>, vector<1x22x128xf32>
    %532 = vector.shape_cast %531 : vector<1x22x128xf32> to vector<22x128xf32>
    %c1_83 = arith.constant 1 : index
    %c5_84 = arith.constant 5 : index
    %c0_85 = arith.constant 0 : index
    %533 = vector.load %arg5[%c1_83, %c5_84, %c0_85] : memref<2x27x128xf32, #tpu.memory_space<vmem>>, vector<1x22x128xf32>
    %534 = vector.shape_cast %533 : vector<1x22x128xf32> to vector<22x128xf32>
    %c125_i32 = arith.constant 125 : i32
    %535 = tpu.dynamic_rotate %532 by %c125_i32 dim 1 : vector<22x128xf32>, i32 -> vector<22x128xf32>
    %c125_i32_86 = arith.constant 125 : i32
    %536 = tpu.dynamic_rotate %534 by %c125_i32_86 dim 1 : vector<22x128xf32>, i32 -> vector<22x128xf32>
    %c13_i32 = arith.constant 13 : i32
    %537 = vector.broadcast %c13_i32 : i32 to vector<1x128xi32>
    %538 = arith.cmpi slt, %25, %537 : vector<1x128xi32>
    %cst_87 = arith.constant 0.000000e+00 : f32
    %539 = vector.shape_cast %538 : vector<1x128xi1> to vector<1x128xi1>
    %540 = vector.broadcast %539 : vector<1x128xi1> to vector<22x128xi1>
    %541 = vector.broadcast %cst_87 : f32 to vector<22x128xf32>
    %542 = arith.select %540, %535, %541 : vector<22x128xi1>, vector<22x128xf32>
    %cst_88 = arith.constant 0.000000e+00 : f32
    %543 = vector.shape_cast %538 : vector<1x128xi1> to vector<1x128xi1>
    %544 = vector.broadcast %543 : vector<1x128xi1> to vector<22x128xi1>
    %545 = vector.broadcast %cst_88 : f32 to vector<22x128xf32>
    %546 = arith.select %544, %536, %545 : vector<22x128xi1>, vector<22x128xf32>
    %c6 = arith.constant 6 : index
    %547 = memref.load %arg1[%c6] : memref<98xf32, #tpu.memory_space<smem>>
    %c55 = arith.constant 55 : index
    %548 = memref.load %arg1[%c55] : memref<98xf32, #tpu.memory_space<smem>>
    %549 = vector.extract_strided_slice %542 {offsets = [0, 0], sizes = [16, 128], strides = [1, 1]} : vector<22x128xf32> to vector<16x128xf32>
    %550 = vector.broadcast %547 : f32 to vector<16x128xf32>
    %551 = arith.mulf %550, %549 : vector<16x128xf32>
    %552 = arith.addf %530, %551 : vector<16x128xf32>
    %553 = vector.extract_strided_slice %546 {offsets = [0, 0], sizes = [16, 128], strides = [1, 1]} : vector<22x128xf32> to vector<16x128xf32>
    %554 = vector.broadcast %548 : f32 to vector<16x128xf32>
    %555 = arith.mulf %554, %553 : vector<16x128xf32>
    %556 = arith.addf %552, %555 : vector<16x128xf32>
    %c13 = arith.constant 13 : index
    %557 = memref.load %arg1[%c13] : memref<98xf32, #tpu.memory_space<smem>>
    %c62 = arith.constant 62 : index
    %558 = memref.load %arg1[%c62] : memref<98xf32, #tpu.memory_space<smem>>
    %559 = vector.extract_strided_slice %542 {offsets = [1, 0], sizes = [16, 128], strides = [1, 1]} : vector<22x128xf32> to vector<16x128xf32>
    %560 = vector.broadcast %557 : f32 to vector<16x128xf32>
    %561 = arith.mulf %560, %559 : vector<16x128xf32>
    %562 = arith.addf %556, %561 : vector<16x128xf32>
    %563 = vector.extract_strided_slice %546 {offsets = [1, 0], sizes = [16, 128], strides = [1, 1]} : vector<22x128xf32> to vector<16x128xf32>
    %564 = vector.broadcast %558 : f32 to vector<16x128xf32>
    %565 = arith.mulf %564, %563 : vector<16x128xf32>
    %566 = arith.addf %562, %565 : vector<16x128xf32>
    %c20 = arith.constant 20 : index
    %567 = memref.load %arg1[%c20] : memref<98xf32, #tpu.memory_space<smem>>
    %c69 = arith.constant 69 : index
    %568 = memref.load %arg1[%c69] : memref<98xf32, #tpu.memory_space<smem>>
    %569 = vector.extract_strided_slice %542 {offsets = [2, 0], sizes = [16, 128], strides = [1, 1]} : vector<22x128xf32> to vector<16x128xf32>
    %570 = vector.broadcast %567 : f32 to vector<16x128xf32>
    %571 = arith.mulf %570, %569 : vector<16x128xf32>
    %572 = arith.addf %566, %571 : vector<16x128xf32>
    %573 = vector.extract_strided_slice %546 {offsets = [2, 0], sizes = [16, 128], strides = [1, 1]} : vector<22x128xf32> to vector<16x128xf32>
    %574 = vector.broadcast %568 : f32 to vector<16x128xf32>
    %575 = arith.mulf %574, %573 : vector<16x128xf32>
    %576 = arith.addf %572, %575 : vector<16x128xf32>
    %c27 = arith.constant 27 : index
    %577 = memref.load %arg1[%c27] : memref<98xf32, #tpu.memory_space<smem>>
    %c76 = arith.constant 76 : index
    %578 = memref.load %arg1[%c76] : memref<98xf32, #tpu.memory_space<smem>>
    %579 = vector.extract_strided_slice %542 {offsets = [3, 0], sizes = [16, 128], strides = [1, 1]} : vector<22x128xf32> to vector<16x128xf32>
    %580 = vector.broadcast %577 : f32 to vector<16x128xf32>
    %581 = arith.mulf %580, %579 : vector<16x128xf32>
    %582 = arith.addf %576, %581 : vector<16x128xf32>
    %583 = vector.extract_strided_slice %546 {offsets = [3, 0], sizes = [16, 128], strides = [1, 1]} : vector<22x128xf32> to vector<16x128xf32>
    %584 = vector.broadcast %578 : f32 to vector<16x128xf32>
    %585 = arith.mulf %584, %583 : vector<16x128xf32>
    %586 = arith.addf %582, %585 : vector<16x128xf32>
    %c34 = arith.constant 34 : index
    %587 = memref.load %arg1[%c34] : memref<98xf32, #tpu.memory_space<smem>>
    %c83 = arith.constant 83 : index
    %588 = memref.load %arg1[%c83] : memref<98xf32, #tpu.memory_space<smem>>
    %589 = vector.extract_strided_slice %542 {offsets = [4, 0], sizes = [16, 128], strides = [1, 1]} : vector<22x128xf32> to vector<16x128xf32>
    %590 = vector.broadcast %587 : f32 to vector<16x128xf32>
    %591 = arith.mulf %590, %589 : vector<16x128xf32>
    %592 = arith.addf %586, %591 : vector<16x128xf32>
    %593 = vector.extract_strided_slice %546 {offsets = [4, 0], sizes = [16, 128], strides = [1, 1]} : vector<22x128xf32> to vector<16x128xf32>
    %594 = vector.broadcast %588 : f32 to vector<16x128xf32>
    %595 = arith.mulf %594, %593 : vector<16x128xf32>
    %596 = arith.addf %592, %595 : vector<16x128xf32>
    %c41 = arith.constant 41 : index
    %597 = memref.load %arg1[%c41] : memref<98xf32, #tpu.memory_space<smem>>
    %c90 = arith.constant 90 : index
    %598 = memref.load %arg1[%c90] : memref<98xf32, #tpu.memory_space<smem>>
    %599 = vector.extract_strided_slice %542 {offsets = [5, 0], sizes = [16, 128], strides = [1, 1]} : vector<22x128xf32> to vector<16x128xf32>
    %600 = vector.broadcast %597 : f32 to vector<16x128xf32>
    %601 = arith.mulf %600, %599 : vector<16x128xf32>
    %602 = arith.addf %596, %601 : vector<16x128xf32>
    %603 = vector.extract_strided_slice %546 {offsets = [5, 0], sizes = [16, 128], strides = [1, 1]} : vector<22x128xf32> to vector<16x128xf32>
    %604 = vector.broadcast %598 : f32 to vector<16x128xf32>
    %605 = arith.mulf %604, %603 : vector<16x128xf32>
    %606 = arith.addf %602, %605 : vector<16x128xf32>
    %c48 = arith.constant 48 : index
    %607 = memref.load %arg1[%c48] : memref<98xf32, #tpu.memory_space<smem>>
    %c97 = arith.constant 97 : index
    %608 = memref.load %arg1[%c97] : memref<98xf32, #tpu.memory_space<smem>>
    %609 = vector.extract_strided_slice %542 {offsets = [6, 0], sizes = [16, 128], strides = [1, 1]} : vector<22x128xf32> to vector<16x128xf32>
    %610 = vector.broadcast %607 : f32 to vector<16x128xf32>
    %611 = arith.mulf %610, %609 : vector<16x128xf32>
    %612 = arith.addf %606, %611 : vector<16x128xf32>
    %613 = vector.extract_strided_slice %546 {offsets = [6, 0], sizes = [16, 128], strides = [1, 1]} : vector<22x128xf32> to vector<16x128xf32>
    %614 = vector.broadcast %608 : f32 to vector<16x128xf32>
    %615 = arith.mulf %614, %613 : vector<16x128xf32>
    %616 = arith.addf %612, %615 : vector<16x128xf32>
    %617 = vector.extract_strided_slice %616 {offsets = [0, 0], sizes = [16, 16], strides = [1, 1]} : vector<16x128xf32> to vector<16x16xf32>
    %c0_89 = arith.constant 0 : index
    %c0_90 = arith.constant 0 : index
    %c0_91 = arith.constant 0 : index
    %c0_92 = arith.constant 0 : index
    %618 = vector.load %arg4[%c0_89, %c0_90, %c0_91, %c0_92] : memref<1x1x16x16xf32, #tpu.memory_space<vmem>>, vector<1x1x16x16xf32>
    %619 = vector.shape_cast %618 : vector<1x1x16x16xf32> to vector<16x16xf32>
    %620 = vector.shape_cast %617 : vector<16x16xf32> to vector<1x1x16x16xf32>
    tpu.vector_store %arg4[%c0_89, %c0_90, %c0_91, %c0_92], %620 {strides = array<i32>} : memref<1x1x16x16xf32, #tpu.memory_space<vmem>>, vector<1x1x16x16xf32>,
    %621 = arith.negf %617 : vector<16x16xf32>
    %622 = math.exp %621 : vector<16x16xf32>
    %cst_93 = arith.constant 1.000000e+00 : f32
    %623 = vector.broadcast %cst_93 : f32 to vector<16x16xf32>
    %624 = arith.addf %623, %622 : vector<16x16xf32>
    %625 = arith.divf %623, %624 : vector<16x16xf32>
    %626 = vector.shape_cast %625 : vector<16x16xf32> to vector<1x16x16xf32>
    %627 = vector.broadcast %626 : vector<1x16x16xf32> to vector<4x16x16xf32>
    %628 = arith.mulf %627, %1 : vector<4x16x16xf32>
    %c0_94 = arith.constant 0 : index
    %c0_95 = arith.constant 0 : index
    %c0_96 = arith.constant 0 : index
    %c0_97 = arith.constant 0 : index
    %629 = vector.load %arg3[%c0_94, %c0_95, %c0_96, %c0_97] : memref<1x4x16x16xf32, #tpu.memory_space<vmem>>, vector<1x4x16x16xf32>
    %630 = vector.shape_cast %629 : vector<1x4x16x16xf32> to vector<4x16x16xf32>
    %631 = vector.shape_cast %628 : vector<4x16x16xf32> to vector<1x4x16x16xf32>
    tpu.vector_store %arg3[%c0_94, %c0_95, %c0_96, %c0_97], %631 {strides = array<i32>} : memref<1x4x16x16xf32, #tpu.memory_space<vmem>>, vector<1x4x16x16xf32>,
    return
  }
  func.func @transform_0(%arg0: i32) -> i32 {
    %c0_i32 = arith.constant 0 : i32
    %c0_i32_0 = arith.constant 0 : i32
    return %c0_i32 : i32
  }
  func.func @transform_1(%arg0: i32) -> (i32, i32, i32, i32) {
    %c0_i32 = arith.constant 0 : i32
    %c0_i32_0 = arith.constant 0 : i32
    %c0_i32_1 = arith.constant 0 : i32
    %c0_i32_2 = arith.constant 0 : i32
    return %arg0, %c0_i32, %c0_i32_0, %c0_i32_1 : i32, i32, i32, i32
  }
  func.func @transform_2(%arg0: i32) -> (i32, i32, i32, i32) {
    %c0_i32 = arith.constant 0 : i32
    %c0_i32_0 = arith.constant 0 : i32
    %c0_i32_1 = arith.constant 0 : i32
    %c0_i32_2 = arith.constant 0 : i32
    return %arg0, %c0_i32, %c0_i32_0, %c0_i32_1 : i32, i32, i32, i32
  }
  func.func @transform_3(%arg0: i32) -> (i32, i32, i32, i32) {
    %c0_i32 = arith.constant 0 : i32
    %c0_i32_0 = arith.constant 0 : i32
    %c0_i32_1 = arith.constant 0 : i32
    %c0_i32_2 = arith.constant 0 : i32
    return %arg0, %c0_i32, %c0_i32_0, %c0_i32_1 : i32, i32, i32, i32
  }
}

</mosaic_0001>

<bundles_post_ra>
// kernel: tpu_custom_call.1
= control target key start
LH: loop header
LB: loop body
LE: loop exit
PB: predicated region body
PF: predicated region fallthrough
CT: control target
= control target key end

     0   :  { %s4315_s0 = inlined_call_operand.hbm [shape: f32[98], index: 0, kind: input, shape index: {}]   ;;  %s4316_s1 = inlined_call_operand.hbm [shape: f32[2,4,16,16], index: 1, kind: input, shape index: {}]   ;;  %s4317_s2 = inlined_call_operand.hbm [shape: f32[2,4,16,16], index: 2, kind: output, shape index: {0}]   ;;  %s4318_s3 = inlined_call_operand.hbm [shape: f32[2,1,16,16], index: 3, kind: output, shape index: {1}]  }
   0x1   :  { %4359 = sst [smem:[#allocation62_spill]] %s4315_s0 }
   0x2   :  { %4360 = sst [smem:[#allocation63_spill]] %s4316_s1 }
   0x3   :  { %4361 = sst [smem:[#allocation64_spill]] %s4317_s2 }
   0x4   :  { %4362 = sst [smem:[#allocation65_spill]] %s4318_s3 }
   0x5   :  { %9 = vsyncpa [#allocation6], 0 }
   0x6   :  { %10 = vsyncpa [#allocation4], 0 }
   0x7   :  { %12 = vsyncpa [#allocation4 + $0x1], 0 }
   0x8   :  { %13 = vsyncpa [#allocation5], 0 }
   0x9   :  { %15 = vsyncpa [#allocation5 + $0x1], 0 }
   0xa   :  { %16 = vsyncpa [#allocation10], 0 }
   0xb   :  { %18 = vsyncpa [#allocation10 + $0x1], 0  ;;  %s2494_s12 = smov 0   ;;  %s2496_s13 = smov 0  }
   0xc   :  { %s2498_s14 = smov 0   ;;  %s2500_s15 = smov 0  }
   0xd LB: > { %4363 = sst [smem:[#allocation15_spill]] %s2445_s12  ;;  %s2515_s16 = sadd.s32 4294967295, %s2457_s15   ;;  %s2457_s15 = sphi %s2500_s15, %s4493_s15   ;;  %s2453_s14 = sphi %s2498_s14, %s4496_s14   ;;  %s2449_s13 = sphi %s2496_s13, %s4495_s13   ;;  %s2445_s12 = sphi %s2494_s12, %s4494_s12  }
   0xe   : > { %4364 = sst [smem:[#allocation16_spill]] %s2449_s13  ;;  %s2095_s17 = sadd.s32 4294967294, %s2457_s15  }
   0xf   : > { %4365 = sst [smem:[#allocation17_spill]] %s2453_s14  ;;  %s2519_s18 = sadd.s32 1, %s2457_s15  }
  0x10   : > { %4366 = sst [smem:[#allocation18_spill]] %s2457_s15  ;;  %s52_s19 = sadd.s32 1, %s2453_s14 }
  0x11   : > { %4367 = sst [smem:[#allocation19_spill]] %s2515_s16  ;;  %s49_s20 = ssub.s32 %s2457_s15, %s2519_s18 }
  0x12   : > { %4368 = sst [smem:[#allocation20_spill]] %s2519_s18  ;;  %p59_p0 = scmp.ne.s32.totalorder %s2453_s14, %s2449_s13 }
  0x13   : > { %p50_p1 = scmp.eq.s32.totalorder %s49_s20, 0  ;;  %p60_p2 = scmp.eq.s32.totalorder %s2457_s15, 0 }
  0x14   : > { %p65_p3 = scmp.ne.s32.totalorder %s2449_s13, %s2445_s12  ;;  %p4319_p4 = scmp.eq.s32.totalorder %s2515_s16, 0 }
  0x15   : > { %s2531_s21 = scalar_select %p50_p1, %s2453_s14, %s52_s19  }
  0x16   : > { %p2533_p5 = por %p60_p2, %p59_p0  ;;  %p2539_p6 = por %p4319_p4, %p65_p3 }
  0x17   : > { %4369 = sst [smem:[#allocation21_spill]] %s2531_s21  ;;  %p89_p7 = scmp.eq.s32.totalorder %s2515_s16, 1 }
  0x18   : > { %s4371_s23 = scalar_select %p2539_p6, 1, 0 }
  0x19   : > { %p95_p8 = scmp.eq.s32.totalorder %s2095_s17, 1  ;;  %p2096_p9 = scmp.ge.s32.totalorder %s2457_s15, 1 }
  0x1a   : > { %p128_p10 = scmp.lt.s32.totalorder %s2457_s15, 3  ;;  %p2546_p11 = por %p89_p7, %p59_p0 }
  0x1b   : > { %p2550_p12 = por %p95_p8, %p65_p3  ;;  %p2243_p4 = scmp.lt.s32.totalorder %s2457_s15, 2 }
  0x1c   : > { %s4372_s24 = scalar_select %p2546_p11, 1, 0 }
  0x1d   : > { %s4374_s25 = scalar_select %p2550_p12, 1, 0 }
  0x1e   : > { %4373 = sst [smem:[#allocation22_spill]] %s4372_s24  ;;  %p2554_p13 = pnand %p2096_p9, %p128_p10 }
  0x1f   : > { %4375 = sst [smem:[#allocation23_spill]] %s4374_s25  ;;  %s150_s27 = sand.u32 1, %s2453_s14  }
  0x20   : > { %p2227_p2 = pneg %p2554_p13  ;;  %s2214_s28 = sshll.u32 %s2457_s15, 10 }
  0x21   : > { %p4377_p6 = scmp.eq.s32.totalorder %s2515_s16, 0  ;;  %p2568_p7 = pnand %p2243_p4, %p2533_p5 }
  0x22   : > { %s2099_s30 = sshll.u32 %s150_s27, 6  ;;  %s4379_s0 = sld [smem:[#allocation62_spill]] }
  0x23   : > { %p2228_p0 = pnand %p2227_p2, %p4377_p6 }
  0x25   : > { %p2314_p8 = pneg %p2228_p0 }
  0x28   : > { %s2312_s6 = scalar_lea.hbm %s4379_s0, 16 }
  0x29   : > { %p2313_p3 = scmp.ne.s32.totalorder %s4379_s0, %s2312_s6  ;;  %p2319_p6 = scmp.lt.u32.totalorder %s2312_s6, %s4379_s0 }
  0x2b   : > { %p2315_p9 = pnand %p2314_p8, %p2313_p3 }
  0x2d   : > { %p2316_p10 = pneg %p2315_p9 }
  0x2f   : > { %p2321_p4 = pnand %p2319_p6, %p2316_p10 }
  0x31   : > { %2324 = shalt.err (!%p2321_p4)
}
  0x32   : > { %s2459_s11 = smov [#allocation3]   ;;  %s4380_s1 = sld [smem:[#allocation63_spill]] }
  0x33   : > { %2230 = dma.hbm_to_smem (!%p2228_p0), %s4379_s0, 16, %s2459_s11, [#allocation6]  }
  0x34   : > { %s154_s5 = scalar_lea.vmem [#allocation7], %s2099_s30  ;;  %s2591_s7 = scalar_lea.sflag [#allocation4], %s150_s27 }
  0x35   : > { %s161_s6 = sshll.u32 %s154_s5, 4  ;;  %p2327_p2 = pneg %p2568_p7  ;;  %s2589_s6 = int_to_ptr.vmem [resolvable:$true] %s161_s6 }
  0x38   : > { %s2587_s4 = scalar_lea.hbm %s4380_s1, %s2214_s28  ;;  %s2330_s10 = scalar_lea.hbm %s4380_s1, 2048 }
  0x39   : > { %s2325_s8 = scalar_lea.hbm %s2587_s4, 1024  ;;  %p2331_p8 = scmp.lt.u32.totalorder %s2587_s4, %s4380_s1 }
  0x3a   : > { %p2326_p5 = scmp.ne.s32.totalorder %s2587_s4, %s2325_s8  ;;  %p2332_p9 = scmp.lt.u32.totalorder %s2330_s10, %s2325_s8 }
  0x3b   : > { %p2334_p6 = scmp.lt.u32.totalorder %s2325_s8, %s2587_s4 }
  0x3c   : > { %p2328_p0 = pnand %p2327_p2, %p2326_p5  ;;  %p2333_p10 = por %p2332_p9, %p2331_p8 }
  0x3e   : > { %p2329_p3 = pneg %p2328_p0  ;;  %p2335_p4 = por %p2334_p6, %p2333_p10 }
  0x40   : > { %p2336_p1 = pnand %p2335_p4, %p2329_p3 }
  0x42   : > { %2339 = shalt.err (!%p2336_p1)
}
  0x43   : > { %s2340_s27 = scalar_lea.vmem %s2589_s6, 1024  ;;  %s2460_s30 = smov [#allocation7]  }
  0x44   : > { %p2341_p5 = scmp.ne.s32.totalorder %s2589_s6, %s2340_s27  ;;  %s2345_s19 = sshll.u32 %s2460_s30, 4  ;;  %s2346_s19 = int_to_ptr.vmem [resolvable:$false] %s2345_s19 }
  0x45   : > { %s2347_s20 = scalar_lea.vmem %s2346_s19, 2048  ;;  %p2348_p11 = scmp.lt.s32.totalorder %s2589_s6, %s2346_s19 }
  0x46   : > { %p2343_p0 = pnand %p2341_p5, %p2327_p2  ;;  %p2349_p8 = scmp.lt.s32.totalorder %s2347_s20, %s2340_s27 }
  0x48   : > { %p2344_p12 = pneg %p2343_p0  ;;  %p2350_p9 = por %p2349_p8, %p2348_p11 }
  0x4a   : > { %p2351_p10 = pnand %p2350_p9, %p2344_p12 }
  0x4c   : > { %2354 = shalt.err (!%p2351_p10)
}
  0x4d   : > { %s2461_s22 = smov 128   ;;  %s2462_s5 = smov 8  }
  0x4e   : > { %2234 = dma.hbm_to_vmem [thread:$0]  (!%p2568_p7), %s2587_s4, 1024, %s2589_s6, %s2591_s7, %s2461_s22, %s2461_s22, %s2462_s5  }
  0x4f   : > { %173 = sbr.rel (%p2554_p13) target bundleno = 528 (0x210), region = 28 }
  0x56   : > { %p4381_p1 = scmp.eq.s32.totalorder %s2515_s16, 0 }
  0x58   : > { %2428 = dma.done.wait (%p4381_p1), [#allocation6], 16   ;;  %p4382_p2 = pmov %p4381_p1 }
  0x59   : > { %s2626_s8 = sand.u32 1, %s2449_s13   ;;  %p4385_p11 = scmp.ne.s32.totalorder %s4371_s23, 0 }
  0x5a   : > { %2430 = vsyncadd (%p4382_p2), [#allocation6], 4294967280  ;;  %4383 = sst [smem:[#allocation24_spill]] %s2626_s8  ;;  %s4322_s28 = sshll.u32 %s2626_s8, 6 }
  0x5b   : > { %s180_s9 = scalar_lea.sflag [#allocation4], %s2626_s8  ;;  %s2632_s29 = scalar_lea.vmem [#allocation7], %s4322_s28 }
  0x5c   : > { %4384 = sst [smem:[#allocation25_spill]] %s2632_s29 }
  0x5d   : > { %2432 = dma.done.wait (%p4385_p11), %s180_s9, 1024  }
  0x5e   : > { %2434 = vsyncadd (%p4385_p11), %s180_s9, 4294966272 }
  0x5f   : > { %188 = sfence }
  0x60   : > { %v212_v0 = vld [vmem:[%s2632_s29] sm:$0xff]  ;;  %v214_v1 = vld [vmem:[%s2632_s29 + $0x10] sm:$0xff]  ;;  %vm220_vm0 = vcmask 130048   ;;  %v2463_v7 = vmov 0.0   ;;  %v213_v9 = vld [vmem:[%s2632_s29 + $0x8] sm:$0xff]  ;;  %s2464_s23 = smov 3   ;;  %v261_v45 = vlaneseq }
  0x61   : > { %v216_v2 = vld [vmem:[%s2632_s29 + $0x20] sm:$0xff]  ;;  %v218_v3 = vld [vmem:[%s2632_s29 + $0x30] sm:$0xff]  ;;  %v238_v4 = vsel %vm220_vm0, %v212_v0, -inf  ;;  %v239_v5 = vsel %vm220_vm0, %v214_v1, -inf  ;;  %257 = vst [vmem:[#allocation2 + $0x25] sm:$0x7] %v2463_v7 }
  0x62   : > { %v240_v6 = vsel %vm220_vm0, %v216_v2, -inf  ;;  %252 = vst [vmem:[#allocation2 + $0x5] sm:$0x7] %v2463_v7  ;;  %253 = vst [vmem:[#allocation2 + $0x18] sm:$0x7] %v2463_v7  ;;  %v221_v8 = vsel %vm220_vm0, %v212_v0, 0.0 }
  0x63   : > { %258 = vst [vmem:[#allocation2 + $0x38] sm:$0x7] %v2463_v7  ;;  %v241_v10 = vmax.f32 %v238_v4, %v240_v6  ;;  %v242_v11 = vsel %vm220_vm0, %v218_v3, -inf  ;;  %v222_v12 = vsel %vm220_vm0, %v214_v1, 0.0  ;;  %v224_v13 = vsel %vm220_vm0, %v216_v2, 0.0  ;;  %v215_v14 = vld [vmem:[%s2632_s29 + $0x18] sm:$0xff] }
  0x64   : > { %v217_v15 = vld [vmem:[%s2632_s29 + $0x28] sm:$0xff]  ;;  %v243_v16 = vmax.f32 %v239_v5, %v242_v11  ;;  %v223_v17 = vadd.f32 %v222_v12, %v221_v8  ;;  %v219_v18 = vld [vmem:[%s2632_s29 + $0x38] sm:$0xff]  ;;  %v228_v19 = vsel %vm220_vm0, %v213_v9, 0.0  ;;  %v226_v20 = vsel %vm220_vm0, %v218_v3, 0.0  ;;  %s2465_s26 = smov 2   ;;  %s2466_s4 = smov 1  }
  0x65   : > { %v229_v21 = vsel %vm220_vm0, %v215_v14, 0.0  ;;  %v231_v22 = vsel %vm220_vm0, %v217_v15, 0.0  ;;  %v245_v23 = vsel %vm220_vm0, %v213_v9, -inf  ;;  %v246_v27 = vsel %vm220_vm0, %v215_v14, -inf  ;;  %s2467_s6 = smov 127   ;;  %s2468_s7 = smov 126  }
  0x66   : > { %v244_v24 = vmax.f32 %v241_v10, %v243_v16  ;;  %v225_v25 = vadd.f32 %v224_v13, %v223_v17  ;;  %v230_v26 = vadd.f32 %v229_v21, %v228_v19  ;;  %v233_v28 = vsel %vm220_vm0, %v219_v18, 0.0  ;;  %s2469_s10 = smov 125   ;;  %s2714_s11 = sld [smem:[#allocation3 + $0x31]] }
  0x67   : > { %v247_v29 = vsel %vm220_vm0, %v217_v15, -inf  ;;  %v249_v30 = vsel %vm220_vm0, %v219_v18, -inf  ;;  %s2716_s17 = sld [smem:[#allocation3]]  ;;  %s2718_s27 = sld [smem:[#allocation3 + $0x7]]  ;;  %v2786_v46 = vand.u32 127, %v261_v45  ;;  %vm311_vm2 = vcmask 1046528  }
  0x68   : > { %259 = vst.msk [vmem:[#allocation2 + $0x28] sm:$0xff] %vm220_vm0, %v244_v24  ;;  %v227_v31 = vadd.f32 %v226_v20, %v225_v25  ;;  %v232_v32 = vadd.f32 %v231_v22, %v230_v26  ;;  %v248_v33 = vmax.f32 %v245_v23, %v247_v29  ;;  %v250_v34 = vmax.f32 %v246_v27, %v249_v30  ;;  %s2720_s30 = sld [smem:[#allocation3 + $0xe]]  ;;  %s2722_s19 = sld [smem:[#allocation3 + $0x15]] }
  0x69   : > { %s2724_s20 = sld [smem:[#allocation3 + $0x1c]]  ;;  %s2726_s22 = sld [smem:[#allocation3 + $0x23]]  ;;  %vm281_vm1 = vcmp.ge.s32.totalorder %v2786_v46, 3  ;;  %vm346_vm3 = vcmask 1045504   ;;  %vm381_vm4 = vcmask 1044480   ;;  %vm416_vm5 = vcmask 1043456  }
  0x6a   : > { %v236_v35 = vmul.f32 0.25, %v227_v31  ;;  %v234_v36 = vadd.f32 %v233_v28, %v232_v32  ;;  %v251_v37 = vmax.f32 %v248_v33, %v250_v34  ;;  %s2728_s5 = sld [smem:[#allocation3 + $0x2a]]  ;;  %s2730_s9 = sld [smem:[#allocation3 + $0x38]]  ;;  %vm451_vm6 = vcmask 1042432  }
  0x6b   : > { %s2744_s28 = sld [smem:[#allocation3 + $0x8]]  ;;  %s2746_s0 = sld [smem:[#allocation3 + $0x32]]  ;;  %vm486_vm7 = vcmask 1041408   ;;  %vm524_vm8 = vcmp.ge.s32.totalorder %v2786_v46, 2  ;;  %vm761_vm9 = vcmp.ge.s32.totalorder %v2786_v46, 1  ;;  %vm1214_vm10 = vcmp.lt.s32.totalorder %v2786_v46, 15 }
  0x6c   : > { %254 = vst.msk [vmem:[#allocation2 + $0x8] sm:$0xff] %vm220_vm0, %v236_v35  ;;  %v237_v38 = vmul.f32 0.25, %v234_v36  ;;  %260 = vst.msk [vmem:[#allocation2 + $0x30] sm:$0xff] %vm220_vm0, %v251_v37  ;;  %4386 = sst [smem:[#allocation26_spill]] %s2714_s11  ;;  %s2748_s1 = sld [smem:[#allocation3 + $0xf]]  ;;  %vm1451_vm11 = vcmp.lt.s32.totalorder %v2786_v46, 14 }
  0x6d   : > { %s2750_s21 = sld [smem:[#allocation3 + $0x16]]  ;;  %s2752_s14 = sld [smem:[#allocation3 + $0x1d]]  ;;  %v2795_v49 = vstv %s2718_s27  ;;  %vm1688_vm12 = vcmp.lt.s32.totalorder %v2786_v46, 13 }
  0x6e   : > { %255 = vst.msk [vmem:[#allocation2 + $0x10] sm:$0xff] %vm220_vm0, %v237_v38  ;;  %s2754_s13 = sld [smem:[#allocation3 + $0x24]]  ;;  %s2756_s18 = sld [smem:[#allocation3 + $0x2b]]  ;;  %v2798_v50 = vstv %s2720_s30  ;;  %v2801_v51 = vstv %s2722_s19 }
  0x6f   : > { %v2666_v39 = vld [vmem:[#allocation2 + $0x25] sm:$0xff]  ;;  %s2758_s15 = sld [smem:[#allocation3 + $0x39]]  ;;  %s2760_s25 = sld [smem:[#allocation3 + $0x40]]  ;;  %v2808_v52 = vstv %s2724_s20  ;;  %v2811_v53 = vstv %s2726_s22 }
  0x70   : > { %275 = vrot.lane.b32.xlu1 %v2666_v39, %s2464_s23  ;;  %s2762_s12 = sld [smem:[#allocation3 + $0x47]]  ;;  %s2764_s2 = sld [smem:[#allocation3 + $0x4e]]  ;;  %v2814_v54 = vstv %s2728_s5  ;;  %v2817_v55 = vstv %s2730_s9 }
  0x71   : > { %s2766_s29 = sld [smem:[#allocation3 + $0x55]]  ;;  %s2768_s3 = sld [smem:[#allocation3 + $0x5c]]  ;;  %v2845_v63 = vstv %s2744_s28 }
  0x72   : > { %s2770_s24 = sld [smem:[#allocation3 + $0x2]]  ;;  %s2772_s16 = sld [smem:[#allocation3 + $0x9]]  ;;  %v2852_v0 = vstv %s2748_s1 }
  0x73   : > { %v2669_v40 = vld [vmem:[#allocation2 + $0x5] sm:$0xff]  ;;  %v2677_v43 = vld [vmem:[#allocation2 + $0x35] sm:$0x3f]  ;;  %v2680_v44 = vld [vmem:[#allocation2 + $0x2d] sm:$0xff]  ;;  %s2774_s8 = sld [smem:[#allocation3 + $0x10]]  ;;  %s2819_s27 = sld [smem:[#allocation3 + $0x4f]]  ;;  %v2855_v1 = vstv %s2750_s21  ;;  %v2858_v2 = vstv %s2752_s14 }
  0x74   : > { %269 = vrot.lane.b32.xlu0 %v2669_v40, %s2464_s23  ;;  %s2805_s11 = sld [smem:[#allocation3 + $0x48]]  ;;  %s2821_s30 = sld [smem:[#allocation3 + $0x42]]  ;;  %v2861_v3 = vstv %s2754_s13  ;;  %v2866_v4 = vstv %s2756_s18 }
  0x75   : > { %v2672_v41 = vld [vmem:[#allocation2 + $0x15] sm:$0x3f]  ;;  %v2674_v42 = vld [vmem:[#allocation2 + $0xd] sm:$0xff]  ;;  %4388 = sst [smem:[#allocation28_spill]] %s2760_s25  ;;  %s2776_s25 = sld [smem:[#allocation3 + $0x17]]  ;;  %v2869_v5 = vstv %s2758_s15 }
  0x76   : > { %273 = vrot.lane.b32.xlu1 %v2672_v41, %s2464_s23  ;;  %4389 = sst [smem:[#allocation29_spill]] %s2762_s12  ;;  %s2784_s12 = sld [smem:[#allocation3 + $0x3b]] }
  0x77   : > { %4390 = sst [smem:[#allocation30_spill]] %s2764_s2  ;;  %s2778_s2 = sld [smem:[#allocation3 + $0x1e]] }
  0x78   : > { %271 = vrot.lane.b32.xlu0 %v2674_v42, %s2464_s23  ;;  %4391 = sst [smem:[#allocation31_spill]] %s2766_s29  ;;  %s2780_s29 = sld [smem:[#allocation3 + $0x25]]  ;;  %v2892_v13 = vstv %s2772_s16 }
  0x79   : > { %4392 = sst [smem:[#allocation32_spill]] %s2768_s3  ;;  %s2782_s3 = sld [smem:[#allocation3 + $0x2c]]  ;;  %v2925_v26 = vstv %s2819_s27 }
  0x7a   : > { %279 = vrot.lane.b32.xlu1 %v2677_v43, %s2464_s23  ;;  %4393 = sst [smem:[#allocation33_spill]] %s2774_s8  ;;  %s2789_s8 = sld [smem:[#allocation3 + $0x33]]  ;;  %v1050_v23 = vstv %s2821_s30  ;;  %v2922_v25 = vstv %s2805_s11  ;;  %4412 = vst [vmem:[#allocation44_spill] sm:$0xff] %v2925_v26 }
  0x7b   : > { %4394 = sst [smem:[#allocation34_spill]] %s2776_s25  ;;  %s2791_s25 = sld [smem:[#allocation3 + $0x3a]]  ;;  %4411 = vst [vmem:[#allocation43_spill] sm:$0xff] %v2922_v25  ;;  %v1051_v32 = vmul.f32 %v1050_v23, %v2666_v39  ;;  %v1052_v33 = vmul.f32 %v1050_v23, %v2680_v44  ;;  %v1053_v34 = vmul.f32 %v1050_v23, %v2677_v43 }
  0x7c   : > { %277 = vrot.lane.b32.xlu0 %v2680_v44, %s2464_s23  ;;  %s2732_s23 = sld [smem:[#allocation3 + $0x3f]]  ;;  %s4396_s19 = sld [smem:[#allocation28_spill]]  ;;  %v1016_v11 = vstv %s2784_s12 }
  0x7d   : > { %s2835_s20 = sld [smem:[#allocation3 + $0x56]]  ;;  %s2837_s5 = sld [smem:[#allocation3 + $0xa]]  ;;  %v2903_v16 = vstv %s2778_s2  ;;  %v1017_v21 = vmul.f32 %v1016_v11, %v2666_v39  ;;  %v1018_v22 = vmul.f32 %v1016_v11, %v2680_v44  ;;  %v1019_v30 = vmul.f32 %v1016_v11, %v2677_v43 }
  0x7e   : > { %518 = vrot.lane.b32.xlu1 %v2666_v39, %s2465_s26  ;;  %s4397_s22 = sld [smem:[#allocation29_spill]]  ;;  %s4398_s9 = sld [smem:[#allocation30_spill]]  ;;  %4406 = vst [vmem:[#allocation38_spill] sm:$0xff] %v2903_v16  ;;  %v2906_v17 = vstv %s2780_s29 }
  0x7f   : > { %4395 = sst [smem:[#allocation35_spill]] %s2782_s3  ;;  %s2803_s3 = sld [smem:[#allocation3 + $0x41]]  ;;  %4407 = vst [vmem:[#allocation39_spill] sm:$0xff] %v2906_v17  ;;  %v1023_v38 = vrot.slane %v1017_v21, 1  ;;  %v1024_v45 = vrot.slane %v1018_v22, 1  ;;  %v1026_v47 = vrot.slane %v1019_v30, 1 }
  0x80   : > { %512 = vrot.lane.b32.xlu0 %v2669_v40, %s2465_s26  ;;  %s2863_s28 = sld [smem:[#allocation3 + $0x18]]  ;;  %s4403_s1 = sld [smem:[#allocation35_spill]]  ;;  %v1057_v21 = vrot.slane %v1051_v32, 2  ;;  %v1058_v22 = vrot.slane %v1052_v33, 2 }
  0x81   : > { %s2877_s21 = sld [smem:[#allocation3 + $0x34]]  ;;  %s2900_s13 = sld [smem:[#allocation3 + $0x3]]  ;;  %v2913_v20 = vstv %s2791_s25  ;;  %v2960_v30 = vsel %vm311_vm2, %v1023_v38, %v1024_v45 }
  0x82   : > { %514 = vrot.lane.b32.xlu1 %v2674_v42, %s2465_s26  ;;  %v2824_v56 = vstv %s2732_s23  ;;  %s4399_s23 = sld [smem:[#allocation31_spill]]  ;;  %v2872_v6 = vstv %s4396_s19  ;;  %4409 = vst [vmem:[#allocation41_spill] sm:$0xff] %v2913_v20  ;;  %4418 = vst [vmem:[#allocation50_spill] sm:$0xff] %v2960_v30  ;;  %s4422_s2 = sld [smem:[#allocation26_spill]] }
  0x83   : > { %v1000_v27 = vstv %s2837_s5  ;;  %v2929_v28 = vstv %s2835_s20  ;;  %s3426_s12 = sld [smem:[#allocation3 + $0x50]]  ;;  %s3437_s14 = sld [smem:[#allocation3 + $0x1f]] }
  0x84   : > { %516 = vrot.lane.b32.xlu0 %v2672_v41, %s2465_s26  ;;  %v2875_v7 = vstv %s4397_s22  ;;  %v2881_v8 = vstv %s4398_s9  ;;  %4413 = vst [vmem:[#allocation45_spill] sm:$0xff] %v2929_v28  ;;  %v1003_v37 = vmul.f32 %v1000_v27, %v2672_v41  ;;  %v1001_v12 = vmul.f32 %v1000_v27, %v2669_v40  ;;  %s3440_s15 = sld [smem:[#allocation3 + $0x26]]  ;;  %s3455_s16 = sld [smem:[#allocation3 + $0x57]] }
  0x85   : > { %v2919_v24 = vstv %s2803_s3  ;;  %v1002_v62 = vmul.f32 %v1000_v27, %v2674_v42  ;;  %v1060_v28 = vrot.slane %v1053_v34, 2  ;;  %s3458_s18 = sld [smem:[#allocation3 + $0x2d]]  ;;  %s3485_s25 = sld [smem:[#allocation3 + $0x4]] }
  0x86   : > { %522 = vrot.lane.b32.xlu1 %v2677_v43, %s2465_s26  ;;  %v2909_v18 = vstv %s4403_s1  ;;  %4410 = vst [vmem:[#allocation42_spill] sm:$0xff] %v2919_v24  ;;  %v1068_v35 = vstv %s2863_s28  ;;  %v1010_v25 = vrot.slane %v1003_v37, 1  ;;  %v1007_v24 = vrot.slane %v1001_v12, 1  ;;  %s3552_s29 = sld [smem:[#allocation3 + $0x12]]  ;;  %s3559_s11 = sld [smem:[#allocation3 + $0x19]] }
  0x87   : > { %4408 = vst [vmem:[#allocation40_spill] sm:$0xff] %v2909_v18  ;;  %v993_v36 = vstv %s2877_s21  ;;  %v988_v48 = vstv %s2900_s13  ;;  %s3615_s27 = sld [smem:[#allocation3 + $0x2e]]  ;;  %s3635_s30 = sld [smem:[#allocation3 + $0x35]] }
  0x88   : > { %520 = vrot.lane.b32.xlu0 %v2680_v44, %s2465_s26  ;;  %s2734_s26 = sld [smem:[#allocation3 + $0x46]]  ;;  %v2884_v9 = vstv %s4399_s23  ;;  %v2952_v23 = vmul.f32 %v993_v36, %v2666_v39  ;;  %v2957_v26 = vmul.f32 %v993_v36, %v2680_v44  ;;  %v2973_v36 = vsel %vm346_vm3, %v1057_v21, %v1058_v22  ;;  %s3646_s19 = sld [smem:[#allocation3 + $0x3c]] }
  0x89   : > { %4421 = vst [vmem:[#allocation53_spill] sm:$0xff] %v2973_v36  ;;  %v2991_v37 = vmul.f32 %v988_v48, %v2674_v42  ;;  %s3673_s20 = sld [smem:[#allocation3 + $0x43]]  ;;  %s3683_s22 = sld [smem:[#allocation3 + $0x4a]] }
  0x8a   : > { %751 = vrot.lane.b32.xlu1 %v2674_v42, %s2466_s4  ;;  %4416 = vst [vmem:[#allocation48_spill] sm:$0xff] %v2952_v23  ;;  %4417 = vst [vmem:[#allocation49_spill] sm:$0xff] %v2957_v26  ;;  %s3705_s5 = sld [smem:[#allocation3 + $0x51]]  ;;  %s3735_s9 = sld [smem:[#allocation3 + $0x58]] }
  0x8b   : > { %4425 = vst [vmem:[#allocation56_spill] sm:$0xff] %v2991_v37  ;;  %s3752_s23 = sld [smem:[#allocation3 + $0x5f]]  ;;  %s3798_s28 = sld [smem:[#allocation3 + $0x21]] }
  0x8c   : > { %749 = vrot.lane.b32.xlu0 %v2669_v40, %s2466_s4  ;;  %s3812_s1 = sld [smem:[#allocation3 + $0x28]]  ;;  %s3828_s21 = sld [smem:[#allocation3 + $0x36]] }
  0x8d   : > { %s3842_s13 = sld [smem:[#allocation3 + $0x2f]] }
  0x8e   : > { %755 = vrot.lane.b32.xlu1 %v2666_v39, %s2466_s4  ;;  %v2827_v57 = vstv %s2734_s26  ;;  %s4400_s26 = sld [smem:[#allocation32_spill]] }
  0x90   : > { %753 = vrot.lane.b32.xlu0 %v2672_v41, %s2466_s4 }
  0x92   : > { %759 = vrot.lane.b32.xlu1 %v2677_v43, %s2466_s4 }
  0x94   : > { %757 = vrot.lane.b32.xlu0 %v2680_v44, %s2466_s4  ;;  %s2736_s4 = sld [smem:[#allocation3 + $0x4d]]  ;;  %v2887_v10 = vstv %s4400_s26  ;;  %s3779_s26 = sld [smem:[#allocation3 + $0xc]] }
  0x96   : > { %1204 = vrot.lane.b32.xlu1 %v2674_v42, %s2467_s6 }
  0x98   : > { %1202 = vrot.lane.b32.xlu0 %v2669_v40, %s2467_s6 }
  0x9a   : > { %1208 = vrot.lane.b32.xlu1 %v2666_v39, %s2467_s6  ;;  %v2830_v58 = vstv %s2736_s4  ;;  %s2847_s4 = sld [smem:[#allocation3 + $0x5d]] }
  0x9c   : > { %1206 = vrot.lane.b32.xlu0 %v2672_v41, %s2467_s6 }
  0x9e   : > { %1212 = vrot.lane.b32.xlu1 %v2677_v43, %s2467_s6 }
  0xa0   : > { %1210 = vrot.lane.b32.xlu0 %v2680_v44, %s2467_s6  ;;  %s2738_s6 = sld [smem:[#allocation3 + $0x54]]  ;;  %v2932_v29 = vstv %s2847_s4  ;;  %s3783_s4 = sld [smem:[#allocation3 + $0x13]] }
  0xa1   : > { %4414 = vst [vmem:[#allocation46_spill] sm:$0xff] %v2932_v29 }
  0xa2   : > { %1441 = vrot.lane.b32.xlu1 %v2674_v42, %s2468_s7 }
  0xa4   : > { %1439 = vrot.lane.b32.xlu0 %v2669_v40, %s2468_s7 }
  0xa6   : > { %1445 = vrot.lane.b32.xlu1 %v2666_v39, %s2468_s7  ;;  %v2833_v59 = vstv %s2738_s6  ;;  %s2849_s6 = sld [smem:[#allocation3 + $0x11]] }
  0xa8   : > { %1443 = vrot.lane.b32.xlu0 %v2672_v41, %s2468_s7 }
  0xaa   : > { %1449 = vrot.lane.b32.xlu1 %v2677_v43, %s2468_s7 }
  0xac   : > { %1447 = vrot.lane.b32.xlu0 %v2680_v44, %s2468_s7  ;;  %s2740_s7 = sld [smem:[#allocation3 + $0x5b]]  ;;  %v1034_v31 = vstv %s2849_s6  ;;  %s3790_s6 = sld [smem:[#allocation3 + $0x5]] }
  0xad   : > { %v1035_v11 = vmul.f32 %v1034_v31, %v2669_v40  ;;  %v1036_v61 = vmul.f32 %v1034_v31, %v2674_v42  ;;  %v1037_v29 = vmul.f32 %v1034_v31, %v2672_v41 }
  0xae   : > { %1678 = vrot.lane.b32.xlu1 %v2674_v42, %s2469_s10 }
  0xaf   : > { %v1041_v20 = vrot.slane %v1035_v11, 2  ;;  %v1042_v18 = vrot.slane %v1036_v61, 2  ;;  %v1044_v32 = vrot.slane %v1037_v29, 2 }
  0xb0   : > { %1676 = vrot.lane.b32.xlu0 %v2669_v40, %s2469_s10 }
  0xb1   : > { %v3002_v11 = vsel %vm346_vm3, %v1041_v20, %v1042_v18 }
  0xb2   : > { %1682 = vrot.lane.b32.xlu1 %v2666_v39, %s2469_s10  ;;  %v2840_v60 = vstv %s2740_s7  ;;  %s4401_s7 = sld [smem:[#allocation33_spill]]  ;;  %v2963_v39 = vsel %vm311_vm2, %v1024_v45, %v1026_v47  ;;  %v2979_v47 = vmul.f32 %v988_v48, %v2669_v40  ;;  %4428 = vst [vmem:[#allocation59_spill] sm:$0xff] %v3002_v11 }
  0xb3   : > { %4419 = vst [vmem:[#allocation51_spill] sm:$0xff] %v2963_v39 }
  0xb4   : > { %1680 = vrot.lane.b32.xlu0 %v2672_v41, %s2469_s10  ;;  %4424 = vst [vmem:[#allocation55_spill] sm:$0xff] %v2979_v47 }
  0xb6   : > { %1686 = vrot.lane.b32.xlu1 %v2677_v43, %s2469_s10  ;;  %v2949_v43 = vmul.f32 %v1068_v35, %v2672_v41  ;;  %v1008_v41 = vrot.slane %v1002_v62, 1  ;;  %v2976_v62 = vsel %vm346_vm3, %v1058_v22, %v1060_v28 }
  0xb7   : > { %4423 = vst [vmem:[#allocation54_spill] sm:$0xff] %v2976_v62  ;;  %v4432_v62 = vstv %s2716_s17 }
  0xb8   : > { %1684 = vrot.lane.b32.xlu0 %v2680_v44, %s2469_s10  ;;  %s2742_s10 = sld [smem:[#allocation3 + $0x1]]  ;;  %v2895_v14 = vstv %s4401_s7  ;;  %4415 = vst [vmem:[#allocation47_spill] sm:$0xff] %v2949_v43  ;;  %v2996_v38 = vsel %vm311_vm2, %v1007_v24, %v1008_v41  ;;  %v2999_v45 = vsel %vm311_vm2, %v1008_v41, %v1010_v25  ;;  %v4430_v24 = vstv %s4422_s2  ;;  %s3792_s7 = sld [smem:[#allocation3 + $0x1a]] }
  0xb9   : > { %4404 = vst [vmem:[#allocation36_spill] sm:$0xff] %v2895_v14  ;;  %4426 = vst [vmem:[#allocation57_spill] sm:$0xff] %v2996_v38  ;;  %v3020_v41 = vmul.f32 %v1068_v35, %v2669_v40  ;;  %v4433_v43 = vstv %s2716_s17  ;;  %s3562_s17 = sld [smem:[#allocation3 + $0x20]] }
  0xba   : > { %4427 = vst [vmem:[#allocation58_spill] sm:$0xff] %v2999_v45 }
  0xbb   : > { %4431 = vst [vmem:[#allocation61_spill] sm:$0xff] %v3020_v41 }
  0xbe   : > { %4387 = sst [smem:[#allocation27_spill]] %s2742_s10  ;;  %s4402_s10 = sld [smem:[#allocation34_spill]] }
  0xbf   : > { %s4437_s3 = sld [smem:[#allocation27_spill]] }
  0xc4   : > { %v2898_v15 = vstv %s4402_s10  ;;  %s3570_s10 = sld [smem:[#allocation3 + $0x27]] }
  0xc5   : > { %4405 = vst [vmem:[#allocation37_spill] sm:$0xff] %v2898_v15 }
  0xe2   : > { %v276_v19 = vpop.permute.xlu1 %275 }
  0xe3   : > { %v287_v27 = vsel %vm281_vm1, %v276_v19, 0.0  ;;  %v2967_v19 = vmul.f32 %v1068_v35, %v2674_v42  ;;  %v3011_v42 = vsel %vm346_vm3, %v1042_v18, %v1044_v32 }
  0xe4   : > { %v2970_v34 = vmul.f32 %v2817_v55, %v287_v27  ;;  %v2982_v61 = vmul.f32 %v2824_v56, %v287_v27  ;;  %v2985_v12 = vmul.f32 %v2827_v57, %v287_v27  ;;  %v2988_v29 = vmul.f32 %v2830_v58, %v287_v27  ;;  %4429 = vst [vmem:[#allocation60_spill] sm:$0xff] %v3011_v42 }
  0xe5   : > { %4420 = vst [vmem:[#allocation52_spill] sm:$0xff] %v2967_v19  ;;  %v3005_v22 = vmul.f32 %v2833_v59, %v287_v27  ;;  %v3008_v33 = vmul.f32 %v2840_v60, %v287_v27 }
  0xe6   : > { %v270_v31 = vpop.permute.xlu0 %269 }
  0xe7   : > { %v284_v28 = vsel %vm281_vm1, %v270_v31, 0.0  ;;  %v298_v31 = vmul.f32 %v4430_v24, %v287_v27 }
  0xe8   : > { %v274_v44 = vpop.permute.xlu1 %273  ;;  %v293_v36 = vmul.f32 %v4432_v62, %v284_v28  ;;  %v305_v32 = vmul.f32 %v2795_v49, %v284_v28  ;;  %v340_v27 = vmul.f32 %v2798_v50, %v284_v28  ;;  %v3030_v24 = vmul.f32 %v2801_v51, %v284_v28 }
  0xe9   : > { %v286_v25 = vsel %vm281_vm1, %v274_v44, 0.0  ;;  %v3044_v11 = vmul.f32 %v2808_v52, %v284_v28  ;;  %v3047_v20 = vmul.f32 %v2811_v53, %v284_v28  ;;  %v3054_v45 = vmul.f32 %v2814_v54, %v284_v28 }
  0xea   : > { %v272_v21 = vpop.permute.xlu0 %271  ;;  %v307_v35 = vmul.f32 %v2795_v49, %v286_v25  ;;  %v3036_v62 = vmul.f32 %v2798_v50, %v286_v25  ;;  %v3041_v39 = vmul.f32 %v2801_v51, %v286_v25  ;;  %v300_v42 = vadd.f32 %v298_v31, %v293_v36 }
  0xeb   : > { %v285_v44 = vsel %vm281_vm1, %v272_v21, 0.0  ;;  %v3051_v30 = vmul.f32 %v2808_v52, %v286_v25  ;;  %v312_v48 = vrot.slane %v305_v32, 1  ;;  %v347_v38 = vrot.slane %v340_v27, 2 }
  0xec   : > { %v280_v40 = vpop.permute.xlu1 %279  ;;  %v306_v21 = vmul.f32 %v2795_v49, %v285_v44  ;;  %v382_v26 = vrot.slane %v3030_v24, 3  ;;  %v3062_v23 = vmul.f32 %v2811_v53, %v286_v25  ;;  %v315_v37 = vrot.slane %v307_v35, 1 }
  0xed   : > { %v3058_v18 = vsel %vm281_vm1, %v280_v40, 0.0  ;;  %v350_v49 = vrot.slane %v3036_v62, 2  ;;  %v3066_v36 = vmul.f32 %v2814_v54, %v286_v25  ;;  %v341_v28 = vmul.f32 %v2798_v50, %v285_v44 }
  0xee   : > { %v385_v31 = vrot.slane %v3041_v39, 3  ;;  %v417_v32 = vrot.slane %v3044_v11, 4  ;;  %v313_v27 = vrot.slane %v306_v21, 1  ;;  %v324_v24 = vmul.f32 %v2817_v55, %v3058_v18  ;;  %v278_v40 = vpop.permute.xlu0 %277 }
  0xef   : > { %v420_v35 = vrot.slane %v3051_v30, 4  ;;  %v452_v25 = vrot.slane %v3047_v20, 5  ;;  %v376_v62 = vmul.f32 %v2801_v51, %v285_v44  ;;  %v411_v50 = vmul.f32 %v2808_v52, %v285_v44 }
  0xf0   : > { %v455_v39 = vrot.slane %v3062_v23, 5  ;;  %v487_v47 = vrot.slane %v3054_v45, 6  ;;  %v446_v11 = vmul.f32 %v2811_v53, %v285_v44  ;;  %v3081_v21 = vmul.f32 %v2814_v54, %v285_v44 }
  0xf1   : > { %v294_v30 = vmul.f32 %v4433_v43, %v285_v44  ;;  %v348_v41 = vrot.slane %v341_v28, 2  ;;  %v288_v51 = vsel %vm281_vm1, %v278_v40, 0.0  ;;  %v314_v52 = vsel %vm311_vm2, %v312_v48, %v313_v27 }
  0xf2   : > { %v331_v20 = vrot.slane %v324_v24, 1  ;;  %v4434_v23 = vstv %s4422_s2  ;;  %v323_v45 = vmul.f32 %v2817_v55, %v288_v51  ;;  %v383_v53 = vrot.slane %v376_v62, 3  ;;  %s3851_s2 = sld [smem:[#allocation3 + $0x3d]] }
  0xf3   : > { %v299_v17 = vmul.f32 %v4434_v23, %v288_v51  ;;  %v418_v54 = vrot.slane %v411_v50, 4  ;;  %v359_v19 = vmul.f32 %v2824_v56, %v3058_v18  ;;  %v358_v16 = vmul.f32 %v2824_v56, %v288_v51 }
  0xf4   : > { %v453_v43 = vrot.slane %v446_v11, 5  ;;  %v488_v44 = vrot.slane %v3081_v21, 6  ;;  %v329_v48 = vrot.slane %v323_v45, 1  ;;  %v319_v24 = vadd.f32 %v314_v52, %v300_v42 }
  0xf5   : > { %v301_v28 = vadd.f32 %v299_v17, %v294_v30  ;;  %v349_v40 = vsel %vm346_vm3, %v347_v38, %v348_v41  ;;  %v316_v55 = vsel %vm311_vm2, %v313_v27, %v315_v37  ;;  %v393_v62 = vmul.f32 %v2827_v57, %v288_v51 }
  0xf6   : > { %v4435_v23 = vrot.slane %v2970_v34, 1  ;;  %v332_v56 = vsel %vm311_vm2, %v329_v48, %v331_v20  ;;  %v364_v14 = vrot.slane %v358_v16, 2  ;;  %v351_v11 = vsel %vm346_vm3, %v348_v41, %v350_v49 }
  0xf7   : > { %v320_v50 = vadd.f32 %v316_v55, %v301_v28  ;;  %v366_v21 = vrot.slane %v359_v19, 2  ;;  %v394_v17 = vmul.f32 %v2827_v57, %v3058_v18  ;;  %v384_v38 = vsel %vm381_vm4, %v382_v26, %v383_v53  ;;  %v513_v28 = vpop.permute.xlu0 %512 }
  0xf8   : > { %v330_v15 = vsel %vm311_vm2, %v4435_v23, %v329_v48  ;;  %v386_v37 = vsel %vm381_vm4, %v383_v53, %v385_v31  ;;  %v428_v30 = vmul.f32 %v2830_v58, %v288_v51  ;;  %v419_v34 = vsel %vm416_vm5, %v417_v32, %v418_v54  ;;  %v519_v48 = vpop.permute.xlu1 %518 }
  0xf9   : > { %v335_v42 = vadd.f32 %v330_v15, %v319_v24  ;;  %v336_v27 = vadd.f32 %v332_v56, %v320_v50  ;;  %v421_v52 = vsel %vm416_vm5, %v418_v54, %v420_v35  ;;  %v429_v16 = vmul.f32 %v2830_v58, %v3058_v18 }
  0xfa   : > { %v464_v19 = vmul.f32 %v2833_v59, %v3058_v18  ;;  %v4436_v15 = vrot.slane %v2982_v61, 2  ;;  %v399_v49 = vrot.slane %v393_v62, 3  ;;  %v401_v31 = vrot.slane %v394_v17, 3 }
  0xfb   : > { %v354_v41 = vadd.f32 %v349_v40, %v335_v42  ;;  %v355_v57 = vadd.f32 %v351_v11, %v336_v27  ;;  %v367_v20 = vsel %vm346_vm3, %v364_v14, %v366_v21  ;;  %v463_v32 = vmul.f32 %v2833_v59, %v288_v51 }
  0xfc   : > { %v365_v26 = vsel %vm346_vm3, %v4436_v15, %v364_v14  ;;  %v454_v35 = vsel %vm451_vm6, %v452_v25, %v453_v43  ;;  %v499_v58 = vmul.f32 %v2840_v60, %v3058_v18  ;;  %v434_v54 = vrot.slane %v428_v30, 4 }
  0xfd   : > { %v370_v45 = vadd.f32 %v365_v26, %v354_v41  ;;  %v371_v53 = vadd.f32 %v367_v20, %v355_v57  ;;  %v456_v61 = vsel %vm451_vm6, %v453_v43, %v455_v39  ;;  %v436_v24 = vrot.slane %v429_v16, 4  ;;  %v515_v16 = vpop.permute.xlu1 %514 }
  0xfe   : > { %v498_v55 = vmul.f32 %v2840_v60, %v288_v51  ;;  %v489_v14 = vsel %vm486_vm7, %v487_v47, %v488_v44  ;;  %v4438_v59 = vrot.slane %v2985_v12, 3  ;;  %v527_v18 = vsel %vm524_vm8, %v513_v28, 0.0 }
  0xff   : > { %v389_v40 = vadd.f32 %v384_v38, %v370_v45  ;;  %v390_v62 = vadd.f32 %v386_v37, %v371_v53  ;;  %v471_v50 = vrot.slane %v464_v19, 5  ;;  %v402_v23 = vsel %vm381_vm4, %v399_v49, %v401_v31 }
 0x100   : > { %v400_v25 = vsel %vm381_vm4, %v4438_v59, %v399_v49  ;;  %v469_v39 = vrot.slane %v463_v32, 5  ;;  %v4439_v43 = vrot.slane %v3066_v36, 6  ;;  %v506_v51 = vrot.slane %v499_v58, 6 }
 0x101   : > { %v405_v56 = vadd.f32 %v400_v25, %v389_v40  ;;  %v406_v11 = vadd.f32 %v402_v23, %v390_v62  ;;  %v4440_v47 = vrot.slane %v2988_v29, 4  ;;  %v437_v17 = vsel %vm416_vm5, %v434_v54, %v436_v24  ;;  %v517_v29 = vpop.permute.xlu0 %516 }
 0x102   : > { %v491_v60 = vsel %vm486_vm7, %v488_v44, %v4439_v43  ;;  %v504_v42 = vrot.slane %v498_v55, 6  ;;  %v4441_v38 = vstv %s4437_s3  ;;  %v3144_v30 = vsel %vm524_vm8, %v519_v48, 0.0  ;;  %s3871_s3 = sld [smem:[#allocation3 + $0x44]] }
 0x103   : > { %v435_v12 = vsel %vm416_vm5, %v4440_v47, %v434_v54  ;;  %v424_v21 = vadd.f32 %v419_v34, %v405_v56  ;;  %v536_v37 = vmul.f32 %v4441_v38, %v527_v18  ;;  %v425_v27 = vadd.f32 %v421_v52, %v406_v11 }
 0x104   : > { %v548_v36 = vmul.f32 %v2845_v63, %v527_v18  ;;  %v3148_v44 = vmul.f32 %v2852_v0, %v527_v18  ;;  %v4442_v34 = vrot.slane %v3005_v22, 5  ;;  %v472_v57 = vsel %vm451_vm6, %v469_v39, %v471_v50 }
 0x105   : > { %v440_v41 = vadd.f32 %v435_v12, %v424_v21  ;;  %v3155_v52 = vmul.f32 %v2855_v1, %v527_v18  ;;  %v441_v15 = vadd.f32 %v437_v17, %v425_v27  ;;  %v3158_v26 = vmul.f32 %v2858_v2, %v527_v18  ;;  %v521_v50 = vpop.permute.xlu0 %520 }
 0x106   : > { %v470_v19 = vsel %vm451_vm6, %v4442_v34, %v469_v39  ;;  %v3161_v49 = vmul.f32 %v2861_v3, %v527_v18  ;;  %v529_v31 = vsel %vm524_vm8, %v517_v29, 0.0  ;;  %v4443_v22 = vrot.slane %v3008_v33, 6 }
 0x107   : > { %v459_v20 = vadd.f32 %v454_v35, %v440_v41  ;;  %v4444_v32 = vstv %s2746_s0  ;;  %v528_v53 = vsel %vm524_vm8, %v515_v16, 0.0  ;;  %v460_v54 = vadd.f32 %v456_v61, %v441_v15  ;;  %s3320_s0 = sld [smem:[#allocation3 + $0x49]] }
 0x108   : > { %v505_v45 = vsel %vm486_vm7, %v4443_v22, %v504_v42  ;;  %v541_v58 = vmul.f32 %v4444_v32, %v3144_v30  ;;  %v554_v28 = vrot.slane %v548_v36, 1  ;;  %v588_v48 = vrot.slane %v3148_v44, 2 }
 0x109   : > { %v3175_v24 = vmul.f32 %v2866_v4, %v527_v18  ;;  %v475_v40 = vadd.f32 %v470_v19, %v459_v20  ;;  %v622_v35 = vrot.slane %v3155_v52, 3  ;;  %v550_v33 = vmul.f32 %v2845_v63, %v529_v31  ;;  %v523_v20 = vpop.permute.xlu1 %522 }
 0x10a   : > { %v507_v55 = vsel %vm486_vm7, %v504_v42, %v506_v51  ;;  %v476_v62 = vadd.f32 %v472_v57, %v460_v54  ;;  %v656_v59 = vrot.slane %v3158_v26, 4  ;;  %v690_v25 = vrot.slane %v3161_v49, 5 }
 0x10b   : > { %v549_v61 = vmul.f32 %v2845_v63, %v528_v53  ;;  %v494_v23 = vadd.f32 %v489_v14, %v475_v40  ;;  %v584_v18 = vmul.f32 %v2852_v0, %v529_v31  ;;  %v618_v56 = vmul.f32 %v2855_v1, %v529_v31 }
 0x10c   : > { %v3186_v39 = vmul.f32 %v2858_v2, %v529_v31  ;;  %v3189_v43 = vmul.f32 %v2861_v3, %v529_v31  ;;  %v3192_v51 = vmul.f32 %v2866_v4, %v529_v31  ;;  %v495_v11 = vadd.f32 %v491_v60, %v476_v62 }
 0x10d   : > { %v4445_v47 = vmov %v4441_v38  ;;  %v510_v63 = vadd.f32 %v505_v45, %v494_v23  ;;  %v724_v21 = vrot.slane %v3175_v24, 6  ;;  %v557_v14 = vrot.slane %v550_v33, 1 }
 0x10e   : > { %v537_v12 = vmul.f32 %v4445_v47, %v528_v53  ;;  %v3199_v17 = vsel %vm524_vm8, %v521_v50, 0.0  ;;  %v511_v42 = vadd.f32 %v507_v55, %v495_v11  ;;  %v555_v38 = vrot.slane %v549_v61, 1 }
 0x10f   : > { %v583_v27 = vmul.f32 %v2852_v0, %v528_v53  ;;  %v4446_v36 = vmov %v4444_v32  ;;  %v538_v16 = vadd.f32 %v536_v37, %v510_v63  ;;  %v591_v41 = vrot.slane %v584_v18, 2 }
 0x110   : > { %v542_v29 = vmul.f32 %v4446_v36, %v3199_v17  ;;  %v625_v60 = vrot.slane %v618_v56, 3  ;;  %v564_v34 = vmul.f32 %v2869_v5, %v3144_v30  ;;  %v659_v19 = vrot.slane %v3186_v39, 4 }
 0x111   : > { %v693_v57 = vrot.slane %v3189_v43, 5  ;;  %v727_v15 = vrot.slane %v3192_v51, 6  ;;  %v539_v31 = vadd.f32 %v537_v12, %v511_v42  ;;  %v543_v22 = vadd.f32 %v541_v58, %v538_v16 }
 0x112   : > { %v617_v0 = vmul.f32 %v2855_v1, %v528_v53  ;;  %v651_v45 = vmul.f32 %v2858_v2, %v528_v53  ;;  %v3213_v37 = vmul.f32 %v2861_v3, %v528_v53  ;;  %v556_v32 = vsel %vm311_vm2, %v554_v28, %v555_v38 }
 0x113   : > { %v589_v54 = vrot.slane %v583_v27, 2  ;;  %v544_v40 = vadd.f32 %v542_v29, %v539_v31  ;;  %v598_v33 = vmul.f32 %v2872_v6, %v3144_v30  ;;  %v570_v55 = vrot.slane %v564_v34, 1 }
 0x114   : > { %v3220_v62 = vsel %vm524_vm8, %v523_v20, 0.0  ;;  %v565_v1 = vmul.f32 %v2869_v5, %v3199_v17  ;;  %v599_v2 = vmul.f32 %v2872_v6, %v3199_v17  ;;  %v561_v3 = vadd.f32 %v556_v32, %v543_v22 }
 0x115   : > { %v3227_v58 = vmul.f32 %v2866_v4, %v528_v53  ;;  %v558_v28 = vsel %vm311_vm2, %v555_v38, %v557_v14  ;;  %v566_v61 = vmul.f32 %v2869_v5, %v3220_v62  ;;  %v623_v50 = vrot.slane %v617_v0, 3 }
 0x116   : > { %v562_v23 = vadd.f32 %v558_v28, %v544_v40  ;;  %v571_v18 = vrot.slane %v565_v1, 1  ;;  %v600_v56 = vmul.f32 %v2872_v6, %v3220_v62  ;;  %v657_v11 = vrot.slane %v651_v45, 4 }
 0x117   : > { %v691_v47 = vrot.slane %v3213_v37, 5  ;;  %v632_v12 = vmul.f32 %v2875_v7, %v3144_v30  ;;  %v573_v63 = vrot.slane %v566_v61, 1  ;;  %v604_v4 = vrot.slane %v598_v33, 2 }
 0x118   : > { %v572_v53 = vsel %vm311_vm2, %v570_v55, %v571_v18  ;;  %v605_v14 = vrot.slane %v599_v2, 2  ;;  %v633_v5 = vmul.f32 %v2875_v7, %v3199_v17  ;;  %v607_v27 = vrot.slane %v600_v56, 2 }
 0x119   : > { %v574_v42 = vsel %vm311_vm2, %v571_v18, %v573_v63  ;;  %v577_v38 = vadd.f32 %v572_v53, %v561_v3  ;;  %v634_v6 = vmul.f32 %v2875_v7, %v3220_v62  ;;  %v590_v36 = vsel %vm346_vm3, %v588_v48, %v589_v54  ;;  %v752_v53 = vpop.permute.xlu1 %751 }
 0x11a   : > { %v592_v29 = vsel %vm346_vm3, %v589_v54, %v591_v41  ;;  %v624_v16 = vsel %vm381_vm4, %v622_v35, %v623_v50  ;;  %v578_v34 = vadd.f32 %v574_v42, %v562_v23  ;;  %v626_v31 = vsel %vm381_vm4, %v623_v50, %v625_v60 }
 0x11b   : > { %v666_v20 = vmul.f32 %v2881_v8, %v3144_v30  ;;  %v595_v22 = vadd.f32 %v590_v36, %v577_v38  ;;  %v667_v7 = vmul.f32 %v2881_v8, %v3199_v17  ;;  %v638_v0 = vrot.slane %v632_v12, 3 }
 0x11c   : > { %v596_v44 = vadd.f32 %v592_v29, %v578_v34  ;;  %v606_v48 = vsel %vm346_vm3, %v604_v4, %v605_v14  ;;  %v639_v45 = vrot.slane %v633_v5, 3  ;;  %v608_v41 = vsel %vm346_vm3, %v605_v14, %v607_v27  ;;  %v750_v4 = vpop.permute.xlu0 %749 }
 0x11d   : > { %v611_v52 = vadd.f32 %v606_v48, %v595_v22  ;;  %v641_v32 = vrot.slane %v634_v6, 3  ;;  %v668_v35 = vmul.f32 %v2881_v8, %v3220_v62  ;;  %v658_v60 = vsel %vm416_vm5, %v656_v59, %v657_v11  ;;  %v4449_v22 = vld [vmem:[#allocation36_spill] sm:$0xff]  ;;  %v4450_v48 = vld [vmem:[#allocation37_spill] sm:$0xff] }
 0x11e   : > { %v700_v54 = vmul.f32 %v2884_v9, %v3144_v30  ;;  %v734_v40 = vmul.f32 %v2887_v10, %v3144_v30  ;;  %v612_v33 = vadd.f32 %v608_v41, %v596_v44  ;;  %v672_v55 = vrot.slane %v666_v20, 4 }
 0x11f   : > { %v629_v1 = vadd.f32 %v624_v16, %v611_v52  ;;  %v673_v2 = vrot.slane %v667_v7, 4  ;;  %v701_v3 = vmul.f32 %v2884_v9, %v3199_v17  ;;  %v640_v8 = vsel %vm381_vm4, %v638_v0, %v639_v45 }
 0x120   : > { %v630_v28 = vadd.f32 %v626_v31, %v612_v33  ;;  %v702_v26 = vmul.f32 %v2884_v9, %v3220_v62  ;;  %v735_v59 = vmul.f32 %v2887_v10, %v3199_v17  ;;  %v660_v30 = vsel %vm416_vm5, %v657_v11, %v659_v19  ;;  %v754_v20 = vpop.permute.xlu0 %753  ;;  %v4452_v33 = vld [vmem:[#allocation39_spill] sm:$0xff] }
 0x121   : > { %v642_v61 = vsel %vm381_vm4, %v639_v45, %v641_v32  ;;  %v645_v50 = vadd.f32 %v640_v8, %v629_v1  ;;  %v675_v23 = vrot.slane %v668_v35, 4  ;;  %v725_v18 = vrot.slane %v3227_v58, 6  ;;  %v4451_v35 = vld [vmem:[#allocation38_spill] sm:$0xff] }
 0x122   : > { %v706_v56 = vrot.slane %v700_v54, 5  ;;  %v740_v12 = vrot.slane %v734_v40, 6  ;;  %v646_v63 = vadd.f32 %v642_v61, %v630_v28  ;;  %v674_v9 = vsel %vm416_vm5, %v672_v55, %v673_v2 }
 0x123   : > { %v663_v14 = vadd.f32 %v658_v60, %v645_v50  ;;  %v707_v5 = vrot.slane %v701_v3, 5  ;;  %v736_v39 = vmul.f32 %v2887_v10, %v3220_v62  ;;  %v709_v19 = vrot.slane %v702_v26, 5 }
 0x124   : > { %v664_v17 = vadd.f32 %v660_v30, %v646_v63  ;;  %v741_v11 = vrot.slane %v735_v59, 6  ;;  %v764_v42 = vsel %vm761_vm9, %v750_v4, 0.0  ;;  %v692_v58 = vsel %vm451_vm6, %v690_v25, %v691_v47  ;;  %v756_v59 = vpop.permute.xlu1 %755 }
 0x125   : > { %v676_v38 = vsel %vm416_vm5, %v673_v2, %v675_v23  ;;  %v679_v27 = vadd.f32 %v674_v9, %v663_v14  ;;  %v765_v10 = vsel %vm761_vm9, %v752_v53, 0.0  ;;  %v694_v62 = vsel %vm451_vm6, %v691_v47, %v693_v57 }
 0x126   : > { %v726_v6 = vsel %vm486_vm7, %v724_v21, %v725_v18  ;;  %v728_v49 = vsel %vm486_vm7, %v725_v18, %v727_v15  ;;  %v680_v25 = vadd.f32 %v676_v38, %v664_v17  ;;  %v708_v29 = vsel %vm451_vm6, %v706_v56, %v707_v5  ;;  %v758_v18 = vpop.permute.xlu0 %757 }
 0x127   : > { %v697_v36 = vadd.f32 %v692_v58, %v679_v27  ;;  %v743_v16 = vrot.slane %v736_v39, 6  ;;  %v4447_v34 = vstv %s2770_s24  ;;  %v710_v37 = vsel %vm451_vm6, %v707_v5, %v709_v19  ;;  %v4453_v39 = vld [vmem:[#allocation40_spill] sm:$0xff]  ;;  %s3464_s24 = sld [smem:[#allocation3 + $0x5e]] }
 0x128   : > { %v773_v31 = vmul.f32 %v4447_v34, %v764_v42  ;;  %v698_v43 = vadd.f32 %v694_v62, %v680_v25  ;;  %v742_v57 = vsel %vm486_vm7, %v740_v12, %v741_v11  ;;  %v4448_v47 = vmov %v4447_v34  ;;  %v4456_v62 = vld [vmem:[#allocation41_spill] sm:$0xff]  ;;  %v760_v34 = vpop.permute.xlu1 %759 }
 0x129   : > { %v774_v24 = vmul.f32 %v4448_v47, %v765_v10  ;;  %v713_v21 = vadd.f32 %v708_v29, %v697_v36  ;;  %v785_v51 = vmul.f32 %v2892_v13, %v764_v42  ;;  %v786_v15 = vmul.f32 %v2892_v13, %v765_v10  ;;  %v4457_v25 = vld [vmem:[#allocation61_spill] sm:$0xff] }
 0x12a   : > { %v819_v7 = vmul.f32 %v4449_v22, %v764_v42  ;;  %v714_v0 = vadd.f32 %v710_v37, %v698_v43  ;;  %v3314_v44 = vmul.f32 %v4449_v22, %v765_v10  ;;  %v853_v45 = vmul.f32 %v4450_v48, %v764_v42 }
 0x12b   : > { %v3318_v41 = vmul.f32 %v4450_v48, %v765_v10  ;;  %v744_v52 = vsel %vm486_vm7, %v741_v11, %v743_v16  ;;  %v731_v32 = vadd.f32 %v726_v6, %v713_v21  ;;  %v887_v60 = vmul.f32 %v4451_v35, %v764_v42  ;;  %v4458_v21 = vld [vmem:[#allocation42_spill] sm:$0xff] }
 0x12c   : > { %v3325_v54 = vmul.f32 %v4451_v35, %v765_v10  ;;  %v732_v40 = vadd.f32 %v728_v49, %v714_v0  ;;  %v921_v55 = vmul.f32 %v4452_v33, %v764_v42  ;;  %v3329_v1 = vmul.f32 %v4452_v33, %v765_v10 }
 0x12d   : > { %v3333_v2 = vsel %vm761_vm9, %v754_v20, 0.0  ;;  %v747_v3 = vadd.f32 %v742_v57, %v731_v32  ;;  %v791_v28 = vrot.slane %v785_v51, 1  ;;  %v792_v8 = vrot.slane %v786_v15, 1 }
 0x12e   : > { %v825_v26 = vrot.slane %v819_v7, 2  ;;  %v748_v30 = vadd.f32 %v744_v52, %v732_v40  ;;  %v826_v61 = vrot.slane %v3314_v44, 2  ;;  %v859_v50 = vrot.slane %v853_v45, 3 }
 0x12f   : > { %v860_v23 = vrot.slane %v3318_v41, 3  ;;  %v775_v56 = vadd.f32 %v773_v31, %v747_v3  ;;  %v893_v12 = vrot.slane %v887_v60, 4  ;;  %v894_v63 = vrot.slane %v3325_v54, 4 }
 0x130   : > { %v787_v4 = vmul.f32 %v2892_v13, %v3333_v2  ;;  %v776_v53 = vadd.f32 %v774_v24, %v748_v30  ;;  %v927_v14 = vrot.slane %v921_v55, 5  ;;  %v928_v9 = vrot.slane %v3329_v1, 5 }
 0x131   : > { %v3343_v5 = vsel %vm761_vm9, %v756_v59, 0.0  ;;  %v955_v17 = vmul.f32 %v4453_v39, %v764_v42  ;;  %v3347_v19 = vmul.f32 %v4453_v39, %v765_v10  ;;  %v4454_v11 = vstv %s2789_s8  ;;  %s3550_s8 = sld [smem:[#allocation3 + $0xb]] }
 0x132   : > { %v778_v58 = vmul.f32 %v4454_v11, %v3343_v5  ;;  %v3354_v38 = vsel %vm761_vm9, %v758_v18, 0.0  ;;  %v4455_v13 = vmov %v4454_v11  ;;  %v801_v6 = vmul.f32 %v4456_v62, %v3343_v5 }
 0x133   : > { %v779_v27 = vmul.f32 %v4455_v13, %v3354_v38  ;;  %v3362_v49 = vstv %s3320_s0  ;;  %v1075_v42 = vrot.slane %v4457_v25, 3  ;;  %v827_v10 = vsel %vm346_vm3, %v825_v26, %v826_v61  ;;  %v4460_v13 = vld [vmem:[#allocation44_spill] sm:$0xff]  ;;  %s3879_s0 = sld [smem:[#allocation3 + $0x4b]] }
 0x134   : > { %v861_v36 = vsel %vm381_vm4, %v859_v50, %v860_v23  ;;  %v794_v29 = vrot.slane %v787_v4, 1  ;;  %v780_v16 = vadd.f32 %v778_v58, %v775_v56  ;;  %v3372_v31 = vsel %vm416_vm5, %v893_v12, %v894_v63 }
 0x135   : > { %v3377_v43 = vsel %vm451_vm6, %v927_v14, %v928_v9  ;;  %v821_v37 = vmul.f32 %v4449_v22, %v3333_v2  ;;  %v781_v57 = vadd.f32 %v779_v27, %v776_v53  ;;  %v961_v47 = vrot.slane %v955_v17, 6 }
 0x136   : > { %v962_v24 = vrot.slane %v3347_v19, 6  ;;  %v793_v20 = vsel %vm311_vm2, %v791_v28, %v792_v8  ;;  %v835_v51 = vmul.f32 %v4458_v21, %v3343_v5  ;;  %v807_v15 = vrot.slane %v801_v6, 1 }
 0x137   : > { %v3387_v7 = vsel %vm761_vm9, %v760_v34, 0.0  ;;  %v802_v0 = vmul.f32 %v4456_v62, %v3354_v38  ;;  %v836_v22 = vmul.f32 %v4458_v21, %v3354_v38  ;;  %v795_v44 = vsel %vm311_vm2, %v792_v8, %v794_v29  ;;  %v4459_v8 = vld [vmem:[#allocation43_spill] sm:$0xff] }
 0x138   : > { %v798_v45 = vadd.f32 %v793_v20, %v780_v16  ;;  %v803_v52 = vmul.f32 %v4456_v62, %v3387_v7  ;;  %v837_v32 = vmul.f32 %v4458_v21, %v3387_v7  ;;  %v828_v60 = vrot.slane %v821_v37, 2 }
 0x139   : > { %v855_v40 = vmul.f32 %v4450_v48, %v3333_v2  ;;  %v799_v55 = vadd.f32 %v795_v44, %v781_v57  ;;  %v808_v3 = vrot.slane %v802_v0, 1  ;;  %v889_v28 = vmul.f32 %v4451_v35, %v3333_v2 }
 0x13a   : > { %v923_v26 = vmul.f32 %v4452_v33, %v3333_v2  ;;  %v869_v59 = vmul.f32 %v4459_v8, %v3343_v5  ;;  %v810_v30 = vrot.slane %v803_v52, 1  ;;  %v841_v50 = vrot.slane %v835_v51, 2 }
 0x13b   : > { %v809_v18 = vsel %vm311_vm2, %v807_v15, %v808_v3  ;;  %v842_v56 = vrot.slane %v836_v22, 2  ;;  %v870_v12 = vmul.f32 %v4459_v8, %v3354_v38  ;;  %v844_v53 = vrot.slane %v837_v32, 2  ;;  %v4461_v22 = vld [vmem:[#allocation45_spill] sm:$0xff] }
 0x13c   : > { %v811_v48 = vsel %vm311_vm2, %v808_v3, %v810_v30  ;;  %v814_v4 = vadd.f32 %v809_v18, %v798_v45  ;;  %v871_v35 = vmul.f32 %v4459_v8, %v3387_v7  ;;  %v3415_v33 = vsel %vm486_vm7, %v961_v47, %v962_v24  ;;  %v4462_v3 = vld [vmem:[#allocation46_spill] sm:$0xff] }
 0x13d   : > { %v829_v14 = vsel %vm346_vm3, %v826_v61, %v828_v60  ;;  %v862_v17 = vrot.slane %v855_v40, 3  ;;  %v815_v11 = vadd.f32 %v811_v48, %v799_v55  ;;  %v875_v58 = vrot.slane %v869_v59, 3 }
 0x13e   : > { %v903_v27 = vmul.f32 %v4460_v13, %v3343_v5  ;;  %v832_v62 = vadd.f32 %v827_v10, %v814_v4  ;;  %v904_v6 = vmul.f32 %v4460_v13, %v3354_v38  ;;  %v843_v16 = vsel %vm346_vm3, %v841_v50, %v842_v56 }
 0x13f   : > { %v833_v29 = vadd.f32 %v829_v14, %v815_v11  ;;  %v876_v34 = vrot.slane %v870_v12, 3  ;;  %v905_v37 = vmul.f32 %v4460_v13, %v3387_v7  ;;  %v896_v57 = vrot.slane %v889_v28, 4 }
 0x140   : > { %v845_v61 = vsel %vm346_vm3, %v842_v56, %v844_v53  ;;  %v848_v47 = vadd.f32 %v843_v16, %v832_v62  ;;  %v878_v20 = vrot.slane %v871_v35, 3  ;;  %v863_v10 = vsel %vm381_vm4, %v860_v23, %v862_v17  ;;  %v2298_v56 = vld [vmem:[#allocation2 + $0x25] sm:$0xff]  ;;  %v2299_v35 = vld [vmem:[#allocation2 + $0x2d] sm:$0xff] }
 0x141   : > { %v930_v21 = vrot.slane %v923_v26, 5  ;;  %v957_v51 = vmul.f32 %v4453_v39, %v3333_v2  ;;  %v849_v15 = vadd.f32 %v845_v61, %v833_v29  ;;  %v909_v0 = vrot.slane %v903_v27, 4 }
 0x142   : > { %v937_v44 = vmul.f32 %v4461_v22, %v3343_v5  ;;  %v866_v45 = vadd.f32 %v861_v36, %v848_v47  ;;  %v938_v52 = vmul.f32 %v4461_v22, %v3354_v38  ;;  %v877_v41 = vsel %vm381_vm4, %v875_v58, %v876_v34  ;;  %v2300_v47 = vld [vmem:[#allocation2 + $0xd] sm:$0xff] }
 0x143   : > { %v867_v32 = vadd.f32 %v863_v10, %v849_v15  ;;  %v910_v60 = vrot.slane %v904_v6, 4  ;;  %v912_v23 = vrot.slane %v905_v37, 4  ;;  %v897_v2 = vsel %vm416_vm5, %v894_v63, %v896_v57 }
 0x144   : > { %v879_v39 = vsel %vm381_vm4, %v876_v34, %v878_v20  ;;  %v882_v40 = vadd.f32 %v877_v41, %v866_v45  ;;  %v939_v36 = vmul.f32 %v4461_v22, %v3387_v7  ;;  %v931_v55 = vsel %vm451_vm6, %v928_v9, %v930_v21  ;;  %v4463_v41 = vld [vmem:[#allocation47_spill] sm:$0xff] }
 0x145   : > { %v971_v28 = vmul.f32 %v4462_v3, %v3343_v5  ;;  %v883_v26 = vadd.f32 %v879_v39, %v867_v32  ;;  %v972_v8 = vmul.f32 %v4462_v3, %v3354_v38  ;;  %v964_v54 = vrot.slane %v957_v51, 6 }
 0x146   : > { %v943_v63 = vrot.slane %v937_v44, 5  ;;  %v900_v59 = vadd.f32 %v3372_v31, %v882_v40  ;;  %v944_v30 = vrot.slane %v938_v52, 5  ;;  %v911_v9 = vsel %vm416_vm5, %v909_v0, %v910_v60 }
 0x147   : > { %v901_v1 = vadd.f32 %v897_v2, %v883_v26  ;;  %v913_v50 = vsel %vm416_vm5, %v910_v60, %v912_v23  ;;  %v973_v5 = vmul.f32 %v4462_v3, %v3387_v7  ;;  %v946_v18 = vrot.slane %v939_v36, 5  ;;  %v4465_v23 = vld [vmem:[#allocation52_spill] sm:$0xff]  ;;  %v4468_v3 = vld [vmem:[#allocation55_spill] sm:$0xff] }
 0x148   : > { %v916_v38 = vadd.f32 %v911_v9, %v900_v59  ;;  %v1085_v31 = vmul.f32 %v2298_v56, %v3362_v49  ;;  %v3468_v12 = vstv %s3426_s12  ;;  %v977_v48 = vrot.slane %v971_v28, 6  ;;  %s3906_s12 = sld [smem:[#allocation3 + $0x52]] }
 0x149   : > { %v917_v4 = vadd.f32 %v913_v50, %v901_v1  ;;  %v978_v53 = vrot.slane %v972_v8, 6  ;;  %v3471_v14 = vmul.f32 %v2299_v35, %v3362_v49  ;;  %v965_v7 = vsel %vm486_vm7, %v962_v24, %v964_v54  ;;  %v4470_v1 = vld [vmem:[#allocation48_spill] sm:$0xff] }
 0x14a   : > { %v934_v17 = vadd.f32 %v3377_v43, %v916_v38  ;;  %v945_v11 = vsel %vm451_vm6, %v943_v63, %v944_v30  ;;  %v1102_v58 = vstv %s3437_s14  ;;  %v1119_v27 = vmul.f32 %v2298_v56, %v3468_v12  ;;  %v4469_v63 = vld [vmem:[#allocation56_spill] sm:$0xff]  ;;  %s3938_s14 = sld [smem:[#allocation3 + $0x59]] }
 0x14b   : > { %v935_v13 = vadd.f32 %v931_v55, %v917_v4  ;;  %v3481_v62 = vmul.f32 %v2299_v35, %v3468_v12  ;;  %v1136_v6 = vstv %s3440_s15  ;;  %v947_v29 = vsel %vm451_vm6, %v944_v30, %v946_v18  ;;  %v4471_v18 = vld [vmem:[#allocation49_spill] sm:$0xff]  ;;  %s3954_s15 = sld [smem:[#allocation3 + $0x60]] }
 0x14c   : > { %v950_v16 = vadd.f32 %v945_v11, %v934_v17  ;;  %v980_v19 = vrot.slane %v973_v5, 6  ;;  %v1091_v24 = vrot.slane %v1085_v31, 3  ;;  %v979_v34 = vsel %vm486_vm7, %v977_v48, %v978_v53  ;;  %v2301_v48 = vld [vmem:[#allocation2 + $0x5] sm:$0xff] }
 0x14d   : > { %v951_v43 = vadd.f32 %v947_v29, %v935_v13  ;;  %v1092_v37 = vrot.slane %v3471_v14, 3  ;;  %v1152_v57 = vstv %s3455_s16  ;;  %v3491_v20 = vmul.f32 %v2300_v47, %v1102_v58  ;;  %v4473_v29 = vld [vmem:[#allocation58_spill] sm:$0xff]  ;;  %s3983_s16 = sld [smem:[#allocation3 + $0xd]] }
 0x14e   : > { %v968_v61 = vadd.f32 %v3415_v33, %v950_v16  ;;  %v3493_v10 = vmul.f32 %v2300_v47, %v1136_v6  ;;  %v1170_v21 = vstv %s3458_s18  ;;  %v1125_v15 = vrot.slane %v1119_v27, 4  ;;  %v2302_v27 = vld [vmem:[#allocation2 + $0x35] sm:$0x3f]  ;;  %s3988_s18 = sld [smem:[#allocation3 + $0x14]] }
 0x14f   : > { %v969_v51 = vadd.f32 %v965_v7, %v951_v43  ;;  %v1126_v0 = vrot.slane %v3481_v62, 4  ;;  %v3499_v22 = vstv %s3464_s24  ;;  %v981_v44 = vsel %vm486_vm7, %v978_v53, %v980_v19  ;;  %v4472_v7 = vld [vmem:[#allocation57_spill] sm:$0xff]  ;;  %s3995_s24 = sld [smem:[#allocation3 + $0x1b]] }
 0x150   : > { %v984_v45 = vadd.f32 %v979_v34, %v968_v61  ;;  %v1153_v52 = vmul.f32 %v2298_v56, %v1152_v57  ;;  %v3502_v32 = vmul.f32 %v2299_v35, %v1152_v57  ;;  %v4464_v60 = vrot.slane %v4463_v41, 3  ;;  %v4474_v34 = vld [vmem:[#allocation50_spill] sm:$0xff] }
 0x151   : > { %v985_v33 = vadd.f32 %v981_v44, %v969_v51  ;;  %v4466_v2 = vrot.slane %v4465_v23, 3  ;;  %v3511_v40 = vmul.f32 %v2300_v47, %v1170_v21  ;;  %v3522_v26 = vsel %vm381_vm4, %v1091_v24, %v1092_v37  ;;  %v1203_v51 = vpop.permute.xlu0 %1202  ;;  %v4477_v23 = vld [vmem:[#allocation60_spill] sm:$0xff] }
 0x152   : > { %v991_v28 = vadd.f32 %v4468_v3, %v984_v45  ;;  %v1110_v8 = vrot.slane %v3491_v20, 4  ;;  %v1187_v54 = vmul.f32 %v2298_v56, %v3499_v22  ;;  %v3530_v30 = vsel %vm416_vm5, %v1125_v15, %v1126_v0  ;;  %v2303_v15 = vld [vmem:[#allocation2 + $0x15] sm:$0x3f] }
 0x153   : > { %v3509_v39 = vsel %vm381_vm4, %v4466_v2, %v4464_v60  ;;  %v4467_v36 = vmov %v4466_v2  ;;  %v992_v59 = vadd.f32 %v4469_v63, %v985_v33  ;;  %v1144_v25 = vrot.slane %v3493_v10, 5 }
 0x154   : > { %v1077_v55 = vsel %vm381_vm4, %v1075_v42, %v4467_v36  ;;  %v3534_v42 = vmul.f32 %v2299_v35, %v3499_v22  ;;  %v996_v9 = vadd.f32 %v4470_v1, %v991_v28  ;;  %v1159_v50 = vrot.slane %v1153_v52, 5 }
 0x155   : > { %v1160_v5 = vrot.slane %v3502_v32, 5  ;;  %v1225_v38 = vstv %s3485_s25  ;;  %v997_v56 = vadd.f32 %v4471_v18, %v992_v59  ;;  %v1178_v31 = vrot.slane %v3511_v40, 6  ;;  %s3999_s25 = sld [smem:[#allocation3 + $0x6]] }
 0x156   : > { %v1103_v4 = vmul.f32 %v2301_v48, %v1102_v58  ;;  %v1137_v53 = vmul.f32 %v2301_v48, %v1136_v6  ;;  %v1014_v17 = vadd.f32 %v4472_v7, %v996_v9  ;;  %v1193_v11 = vrot.slane %v1187_v54, 6  ;;  %v4478_v54 = vld [vmem:[#allocation53_spill] sm:$0xff]  ;;  %v1205_v9 = vpop.permute.xlu1 %1204 }
 0x157   : > { %v1171_v13 = vmul.f32 %v2301_v48, %v1170_v21  ;;  %v1087_v35 = vmul.f32 %v2302_v27, %v3362_v49  ;;  %v1015_v16 = vadd.f32 %v4473_v29, %v997_v56  ;;  %v1194_v19 = vrot.slane %v3534_v42, 6  ;;  %v4475_v49 = vld [vmem:[#allocation51_spill] sm:$0xff] }
 0x158   : > { %v1121_v24 = vmul.f32 %v2302_v27, %v3468_v12  ;;  %v1155_v43 = vmul.f32 %v2302_v27, %v1152_v57  ;;  %v1030_v61 = vadd.f32 %v4474_v34, %v1014_v17  ;;  %v3548_v47 = vsel %vm451_vm6, %v1159_v50, %v1160_v5  ;;  %v4476_v57 = vld [vmem:[#allocation59_spill] sm:$0xff]  ;;  %v4479_v50 = vld [vmem:[#allocation54_spill] sm:$0xff]  ;;  %v1207_v34 = vpop.permute.xlu0 %1206 }
 0x159   : > { %v1105_v44 = vmul.f32 %v2303_v15, %v1102_v58  ;;  %v1139_v45 = vmul.f32 %v2303_v15, %v1136_v6  ;;  %v1031_v52 = vadd.f32 %v4475_v49, %v1015_v16  ;;  %v1109_v32 = vrot.slane %v1103_v4, 4 }
 0x15a   : > { %v1143_v33 = vrot.slane %v1137_v53, 5  ;;  %v3557_v12 = vsel %vm1214_vm10, %v1203_v51, 0.0  ;;  %v1048_v41 = vadd.f32 %v4476_v57, %v1030_v61  ;;  %v1177_v60 = vrot.slane %v1171_v13, 6 }
 0x15b   : > { %v1094_v58 = vrot.slane %v1087_v35, 3  ;;  %v1173_v6 = vmul.f32 %v2303_v15, %v1170_v21  ;;  %v1049_v2 = vadd.f32 %v4477_v23, %v1031_v52  ;;  %v3568_v36 = vsel %vm486_vm7, %v1193_v11, %v1194_v19  ;;  %v1209_v23 = vpop.permute.xlu1 %1208 }
 0x15c   : > { %v1128_v3 = vrot.slane %v1121_v24, 4  ;;  %v1162_v28 = vrot.slane %v1155_v43, 5  ;;  %v1064_v63 = vadd.f32 %v4478_v54, %v1048_v41  ;;  %v3576_v59 = vmul.f32 %v1225_v38, %v3557_v12 }
 0x15d   : > { %v1112_v21 = vrot.slane %v1105_v44, 4  ;;  %v1146_v1 = vrot.slane %v1139_v45, 5  ;;  %v1065_v18 = vadd.f32 %v4479_v50, %v1049_v2  ;;  %v1111_v56 = vsel %vm416_vm5, %v1109_v32, %v1110_v8 }
 0x15e   : > { %v1145_v48 = vsel %vm451_vm6, %v1143_v33, %v1144_v25  ;;  %v1189_v4 = vmul.f32 %v2302_v27, %v3499_v22  ;;  %v1082_v53 = vadd.f32 %v1077_v55, %v1064_v63  ;;  %v1179_v7 = vsel %vm486_vm7, %v1177_v60, %v1178_v31  ;;  %v1211_v63 = vpop.permute.xlu0 %1210 }
 0x15f   : > { %v1095_v17 = vsel %vm381_vm4, %v1092_v37, %v1094_v58  ;;  %v1180_v11 = vrot.slane %v1173_v6, 6  ;;  %v1083_v13 = vadd.f32 %v3509_v39, %v1065_v18  ;;  %v1129_v35 = vsel %vm416_vm5, %v1126_v0, %v1128_v3 }
 0x160   : > { %v1163_v22 = vsel %vm451_vm6, %v1160_v5, %v1162_v28  ;;  %v3599_v55 = vsel %vm1214_vm10, %v1205_v9, 0.0  ;;  %v1098_v27 = vadd.f32 %v3522_v26, %v1082_v53  ;;  %v1113_v14 = vsel %vm416_vm5, %v1110_v8, %v1112_v21 }
 0x161   : > { %v1147_v62 = vsel %vm451_vm6, %v1144_v25, %v1146_v1  ;;  %v1237_v37 = vstv %s3550_s8  ;;  %v1196_v39 = vrot.slane %v1189_v4, 6  ;;  %v1099_v0 = vadd.f32 %v1095_v17, %v1083_v13  ;;  %s4001_s8 = sld [smem:[#allocation3 + $0x22]] }
 0x162   : > { %v3610_v29 = vstv %s3552_s29  ;;  %v3613_v5 = vstv %s3559_s11  ;;  %v1116_v16 = vadd.f32 %v1111_v56, %v1098_v27  ;;  %v1181_v20 = vsel %vm486_vm7, %v1178_v31, %v1180_v11  ;;  %s4018_s29 = sld [smem:[#allocation3 + $0x29]]  ;;  %s4033_s11 = sld [smem:[#allocation3 + $0x37]] }
 0x163   : > { %v1227_v26 = vmul.f32 %v1225_v38, %v3599_v55  ;;  %v3624_v10 = vstv %s3562_s17  ;;  %v1117_v8 = vadd.f32 %v1113_v14, %v1099_v0  ;;  %v3627_v25 = vmul.f32 %v1237_v37, %v3557_v12  ;;  %s4044_s17 = sld [smem:[#allocation3 + $0x30]] }
 0x164   : > { %v3630_v24 = vmul.f32 %v1237_v37, %v3599_v55  ;;  %v3633_v43 = vstv %s3570_s10  ;;  %v1132_v40 = vadd.f32 %v3530_v30, %v1116_v16  ;;  %v1272_v31 = vmul.f32 %v3610_v29, %v3557_v12  ;;  %s4046_s10 = sld [smem:[#allocation3 + $0x3e]] }
 0x165   : > { %v3642_v38 = vmul.f32 %v3610_v29, %v3599_v55  ;;  %v1306_v61 = vmul.f32 %v3613_v5, %v3557_v12  ;;  %v1197_v51 = vsel %vm486_vm7, %v1194_v19, %v1196_v39  ;;  %v1133_v15 = vadd.f32 %v1129_v35, %v1117_v8 }
 0x166   : > { %v3653_v30 = vmul.f32 %v3613_v5, %v3599_v55  ;;  %v1340_v44 = vmul.f32 %v3624_v10, %v3557_v12  ;;  %v1150_v45 = vadd.f32 %v1145_v48, %v1132_v40  ;;  %v3659_v49 = vmul.f32 %v3624_v10, %v3599_v55 }
 0x167   : > { %v1374_v52 = vmul.f32 %v3633_v43, %v3557_v12  ;;  %v3665_v42 = vsel %vm1214_vm10, %v1207_v34, 0.0  ;;  %v1151_v19 = vadd.f32 %v1147_v62, %v1133_v15  ;;  %v1244_v32 = vrot.slane %v3627_v25, 1  ;;  %v1213_v62 = vpop.permute.xlu1 %1212 }
 0x168   : > { %v1245_v33 = vrot.slane %v3630_v24, 1  ;;  %v3671_v57 = vmul.f32 %v3633_v43, %v3599_v55  ;;  %v1166_v41 = vadd.f32 %v3548_v47, %v1150_v45  ;;  %v1278_v60 = vrot.slane %v1272_v31, 2 }
 0x169   : > { %v1279_v58 = vrot.slane %v3642_v38, 2  ;;  %v1312_v6 = vrot.slane %v1306_v61, 3  ;;  %v1167_v2 = vadd.f32 %v1163_v22, %v1151_v19  ;;  %v1313_v3 = vrot.slane %v3653_v30, 3 }
 0x16a   : > { %v3679_v28 = vstv %s3615_s27  ;;  %v1240_v54 = vmul.f32 %v1237_v37, %v3665_v42  ;;  %v1184_v21 = vadd.f32 %v1179_v7, %v1166_v41  ;;  %v1346_v1 = vrot.slane %v1340_v44, 4  ;;  %s4065_s27 = sld [smem:[#allocation3 + $0x45]] }
 0x16b   : > { %v1347_v9 = vrot.slane %v3659_v49, 4  ;;  %v1380_v47 = vrot.slane %v1374_v52, 5  ;;  %v1185_v50 = vadd.f32 %v1181_v20, %v1167_v2  ;;  %v1381_v18 = vrot.slane %v3671_v57, 5 }
 0x16c   : > { %v1230_v56 = vstv %s3635_s30  ;;  %v3689_v48 = vsel %vm1214_vm10, %v1209_v23, 0.0  ;;  %v1200_v4 = vadd.f32 %v3568_v36, %v1184_v21  ;;  %v3694_v53 = vmul.f32 %v3679_v28, %v3557_v12  ;;  %s4081_s30 = sld [smem:[#allocation3 + $0x4c]] }
 0x16d   : > { %v3698_v7 = vsel %vm1214_vm10, %v1211_v63, 0.0  ;;  %v1253_v17 = vstv %s3646_s19  ;;  %v1201_v11 = vadd.f32 %v1197_v51, %v1185_v50  ;;  %v1280_v13 = vsel %vm346_vm3, %v1278_v60, %v1279_v58  ;;  %s4107_s19 = sld [smem:[#allocation3 + $0x53]] }
 0x16e   : > { %v1247_v35 = vrot.slane %v1240_v54, 1  ;;  %v1232_v22 = vmul.f32 %v1230_v56, %v3698_v7  ;;  %v1228_v36 = vadd.f32 %v3576_v59, %v1200_v4  ;;  %v3711_v12 = vsel %vm381_vm4, %v1312_v6, %v1313_v3 }
 0x16f   : > { %v1231_v27 = vmul.f32 %v1230_v56, %v3689_v48  ;;  %v1254_v14 = vmul.f32 %v1253_v17, %v3689_v48  ;;  %v1229_v37 = vadd.f32 %v1227_v26, %v1201_v11  ;;  %v3718_v39 = vsel %vm416_vm5, %v1346_v1, %v1347_v9 }
 0x170   : > { %v3722_v59 = vmul.f32 %v3679_v28, %v3599_v55  ;;  %v1287_v0 = vstv %s3673_s20  ;;  %v3728_v16 = vsel %vm451_vm6, %v1380_v47, %v1381_v18  ;;  %v1414_v20 = vrot.slane %v3694_v53, 6  ;;  %s4137_s20 = sld [smem:[#allocation3 + $0x5a]] }
 0x171   : > { %v1274_v26 = vmul.f32 %v3610_v29, %v3665_v42  ;;  %v1233_v8 = vadd.f32 %v1231_v27, %v1228_v36  ;;  %v1248_v25 = vsel %vm311_vm2, %v1245_v33, %v1247_v35  ;;  %v1246_v24 = vsel %vm311_vm2, %v1244_v32, %v1245_v33 }
 0x172   : > { %v1234_v34 = vadd.f32 %v1232_v22, %v1229_v37  ;;  %v3739_v55 = vsel %vm1214_vm10, %v1213_v62, 0.0  ;;  %v1260_v40 = vrot.slane %v1254_v14, 1  ;;  %v1288_v31 = vmul.f32 %v1287_v0, %v3689_v48 }
 0x173   : > { %v1321_v61 = vstv %s3683_s22  ;;  %v1255_v51 = vmul.f32 %v1253_v17, %v3698_v7  ;;  %v1251_v29 = vadd.f32 %v1246_v24, %v1233_v8  ;;  %v1256_v15 = vmul.f32 %v1253_v17, %v3739_v55  ;;  %s4152_s22 = sld [smem:[#allocation3 + $0x61]] }
 0x174   : > { %v1289_v44 = vmul.f32 %v1287_v0, %v3698_v7  ;;  %v1290_v45 = vmul.f32 %v1287_v0, %v3739_v55  ;;  %v1281_v52 = vrot.slane %v1274_v26, 2  ;;  %v1308_v19 = vmul.f32 %v3613_v5, %v3665_v42 }
 0x175   : > { %v1252_v32 = vadd.f32 %v1248_v25, %v1234_v34  ;;  %v1261_v33 = vrot.slane %v1255_v51, 1  ;;  %v1415_v41 = vrot.slane %v3722_v59, 6  ;;  %v1322_v60 = vmul.f32 %v1321_v61, %v3689_v48 }
 0x176   : > { %v1355_v6 = vstv %s3705_s5  ;;  %v1263_v23 = vrot.slane %v1256_v15, 1  ;;  %v1294_v2 = vrot.slane %v1288_v31, 2  ;;  %v1295_v63 = vrot.slane %v1289_v44, 2  ;;  %s4480_s5 = sld [smem:[#allocation24_spill]] }
 0x177   : > { %v1262_v54 = vsel %vm311_vm2, %v1260_v40, %v1261_v33  ;;  %v1323_v21 = vmul.f32 %v1321_v61, %v3698_v7  ;;  %v1297_v47 = vrot.slane %v1290_v45, 2  ;;  %v1324_v50 = vmul.f32 %v1321_v61, %v3739_v55 }
 0x178   : > { %v1264_v1 = vsel %vm311_vm2, %v1261_v33, %v1263_v23  ;;  %v1267_v5 = vadd.f32 %v1262_v54, %v1251_v29  ;;  %v1282_v56 = vsel %vm346_vm3, %v1279_v58, %v1281_v52  ;;  %v1315_v4 = vrot.slane %v1308_v19, 3 }
 0x179   : > { %v1342_v17 = vmul.f32 %v3624_v10, %v3665_v42  ;;  %v1268_v11 = vadd.f32 %v1264_v1, %v1252_v32  ;;  %v1328_v35 = vrot.slane %v1322_v60, 3  ;;  %v1356_v22 = vmul.f32 %v1355_v6, %v3689_v48  ;;  %v1442_v1 = vpop.permute.xlu1 %1441 }
 0x17a   : > { %v1389_v36 = vstv %s3735_s9  ;;  %v1285_v27 = vadd.f32 %v1280_v13, %v1267_v5  ;;  %v1296_v62 = vsel %vm346_vm3, %v1294_v2, %v1295_v63  ;;  %v1329_v37 = vrot.slane %v1323_v21, 3  ;;  %s4481_s9 = sld [smem:[#allocation19_spill]] }
 0x17b   : > { %v1286_v14 = vadd.f32 %v1282_v56, %v1268_v11  ;;  %v1357_v0 = vmul.f32 %v1355_v6, %v3698_v7  ;;  %v1298_v38 = vsel %vm346_vm3, %v1295_v63, %v1297_v47  ;;  %v1331_v26 = vrot.slane %v1324_v50, 3 }
 0x17c   : > { %v1301_v58 = vadd.f32 %v1296_v62, %v1285_v27  ;;  %v1358_v8 = vmul.f32 %v1355_v6, %v3739_v55  ;;  %v1316_v10 = vsel %vm381_vm4, %v1313_v3, %v1315_v4  ;;  %v1349_v25 = vrot.slane %v1342_v17, 4 }
 0x17d   : > { %v1376_v13 = vmul.f32 %v3633_v43, %v3665_v42  ;;  %v1302_v24 = vadd.f32 %v1298_v38, %v1286_v14  ;;  %v1362_v34 = vrot.slane %v1356_v22, 4  ;;  %v1390_v40 = vmul.f32 %v1389_v36, %v3689_v48 }
 0x17e   : > { %v1423_v31 = vstv %s3752_s23  ;;  %v1319_v61 = vadd.f32 %v3711_v12, %v1301_v58  ;;  %v1330_v29 = vsel %vm381_vm4, %v1328_v35, %v1329_v37  ;;  %v1363_v15 = vrot.slane %v1357_v0, 4  ;;  %s2106_s23 = sshll.u32 %s4480_s5, 4 }
 0x17f   : > { %v1320_v51 = vadd.f32 %v1316_v10, %v1302_v24  ;;  %v1391_v44 = vmul.f32 %v1389_v36, %v3698_v7  ;;  %v1332_v30 = vsel %vm381_vm4, %v1329_v37, %v1331_v26  ;;  %v1365_v45 = vrot.slane %v1358_v8, 4 }
 0x180   : > { %v1335_v3 = vadd.f32 %v1330_v29, %v1319_v61  ;;  %v1392_v43 = vmul.f32 %v1389_v36, %v3739_v55  ;;  %v1350_v12 = vsel %vm416_vm5, %v1347_v9, %v1349_v25  ;;  %v1383_v52 = vrot.slane %v1376_v13, 5  ;;  %v1446_v61 = vpop.permute.xlu1 %1445 }
 0x181   : > { %v1410_v19 = vmul.f32 %v3679_v28, %v3665_v42  ;;  %v1336_v32 = vadd.f32 %v1332_v30, %v1320_v51  ;;  %v1424_v33 = vmul.f32 %v1423_v31, %v3689_v48  ;;  %v1425_v6 = vmul.f32 %v1423_v31, %v3698_v7  ;;  %v1440_v28 = vpop.permute.xlu0 %1439 }
 0x182   : > { %v1353_v60 = vadd.f32 %v3718_v39, %v1335_v3  ;;  %v1426_v23 = vmul.f32 %v1423_v31, %v3739_v55  ;;  %v1396_v49 = vrot.slane %v1390_v40, 5  ;;  %v1364_v2 = vsel %vm416_vm5, %v1362_v34, %v1363_v15 }
 0x183   : > { %v1354_v9 = vadd.f32 %v1350_v12, %v1336_v32  ;;  %v1397_v42 = vrot.slane %v1391_v44, 5  ;;  %v1366_v54 = vsel %vm416_vm5, %v1363_v15, %v1365_v45  ;;  %v1399_v21 = vrot.slane %v1392_v43, 5 }
 0x184   : > { %v1369_v63 = vadd.f32 %v1364_v2, %v1353_v60  ;;  %v1416_v48 = vsel %vm486_vm7, %v1414_v20, %v1415_v41  ;;  %v1384_v7 = vsel %vm451_vm6, %v1381_v18, %v1383_v52  ;;  %v1417_v39 = vrot.slane %v1410_v19, 6 }
 0x185   : > { %v1370_v55 = vadd.f32 %v1366_v54, %v1354_v9  ;;  %v1430_v5 = vrot.slane %v1424_v33, 6  ;;  %v1431_v50 = vrot.slane %v1425_v6, 6  ;;  %v1433_v56 = vrot.slane %v1426_v23, 6  ;;  %v1444_v14 = vpop.permute.xlu0 %1443 }
 0x186   : > { %v1387_v47 = vadd.f32 %v3728_v16, %v1369_v63  ;;  %v1398_v20 = vsel %vm451_vm6, %v1396_v49, %v1397_v42  ;;  %v3817_v57 = vsel %vm1451_vm11, %v1440_v28, 0.0  ;;  %v1474_v18 = vstv %s3779_s26  ;;  %s2216_s26 = sshll.u32 %s4481_s9, 8 }
 0x187   : > { %v1388_v53 = vadd.f32 %v1384_v7, %v1370_v55  ;;  %v1400_v4 = vsel %vm451_vm6, %v1397_v42, %v1399_v21  ;;  %v3823_v16 = vsel %vm1451_vm11, %v1442_v1, 0.0  ;;  %v3826_v11 = vstv %s3783_s4  ;;  %s211_s4 = scalar_lea.vmem [#allocation9], %s2106_s23 }
 0x188   : > { %v1403_v17 = vadd.f32 %v1398_v20, %v1387_v47  ;;  %v1418_v35 = vsel %vm486_vm7, %v1415_v41, %v1417_v39  ;;  %v1462_v36 = vstv %s3790_s6  ;;  %v3835_v27 = vstv %s3792_s7  ;;  %s1978_s6 = sshll.u32 %s211_s4, 4  ;;  %s4482_s7 = sld [smem:[#allocation22_spill]]  ;;  %s4213_s6 = int_to_ptr.vmem [resolvable:$true] %s1978_s6 }
 0x189   : > { %v1404_v22 = vadd.f32 %v1400_v4, %v1388_v53  ;;  %v1434_v62 = vsel %vm486_vm7, %v1431_v50, %v1433_v56  ;;  %v1475_v0 = vmul.f32 %v1474_v18, %v3817_v57  ;;  %v3840_v38 = vstv %s3798_s28  ;;  %v1448_v12 = vpop.permute.xlu0 %1447  ;;  %v1450_v56 = vpop.permute.xlu1 %1449 }
 0x18a   : > { %v1421_v37 = vadd.f32 %v1416_v48, %v1403_v17  ;;  %v1476_v26 = vmul.f32 %v1474_v18, %v3823_v16  ;;  %v1509_v59 = vmul.f32 %v3826_v11, %v3817_v57  ;;  %v3849_v41 = vmul.f32 %v3826_v11, %v3823_v16 }
 0x18b   : > { %v1422_v58 = vadd.f32 %v1418_v35, %v1404_v22  ;;  %v1432_v8 = vsel %vm486_vm7, %v1430_v5, %v1431_v50  ;;  %v1543_v10 = vmul.f32 %v3835_v27, %v3817_v57  ;;  %v3858_v25 = vmul.f32 %v3835_v27, %v3823_v16 }
 0x18c   : > { %v3862_v13 = vsel %vm1451_vm11, %v1444_v14, 0.0  ;;  %v1437_v24 = vadd.f32 %v1432_v8, %v1421_v37  ;;  %v1463_v34 = vmul.f32 %v1462_v36, %v3817_v57  ;;  %v1577_v40 = vmul.f32 %v3840_v38, %v3817_v57 }
 0x18d   : > { %v3869_v31 = vmul.f32 %v3840_v38, %v3823_v16  ;;  %v1438_v51 = vadd.f32 %v1434_v62, %v1422_v58  ;;  %v1464_v29 = vmul.f32 %v1462_v36, %v3823_v16  ;;  %v1481_v15 = vrot.slane %v1475_v0, 1 }
 0x18e   : > { %v3875_v44 = vstv %s3812_s1  ;;  %v1482_v30 = vrot.slane %v1476_v26, 1  ;;  %v1515_v3 = vrot.slane %v1509_v59, 2  ;;  %v1516_v45 = vrot.slane %v3849_v41, 2  ;;  %p4484_p13 = scmp.ne.s32.totalorder %s4482_s7, 0 }
 0x18f   : > { %v1477_v43 = vmul.f32 %v1474_v18, %v3862_v13  ;;  %v1549_v52 = vrot.slane %v1543_v10, 3  ;;  %v1550_v19 = vrot.slane %v3858_v25, 3  ;;  %v1467_v32 = vstv %s3828_s21  ;;  %s4483_s21 = sld [smem:[#allocation65_spill]] }
 0x190   : > { %v3885_v33 = vsel %vm1451_vm11, %v1446_v61, 0.0  ;;  %v1465_v60 = vadd.f32 %v1463_v34, %v1437_v24  ;;  %v1583_v6 = vrot.slane %v1577_v40, 4  ;;  %v1584_v23 = vrot.slane %v3869_v31, 4 }
 0x191   : > { %v3890_v49 = vmul.f32 %v3875_v44, %v3817_v57  ;;  %v1466_v9 = vadd.f32 %v1464_v29, %v1438_v51  ;;  %v3894_v2 = vmul.f32 %v3875_v44, %v3823_v16  ;;  %v3897_v42 = vstv %s3842_s13 }
 0x192   : > { %v3901_v28 = vsel %vm1451_vm11, %v1448_v12, 0.0  ;;  %v1484_v54 = vrot.slane %v1477_v43, 1  ;;  %v1468_v63 = vmul.f32 %v1467_v32, %v3885_v33  ;;  %v1490_v48 = vstv %s3851_s2  ;;  %s1949_s2 = scalar_lea.sflag [#allocation10], %s4480_s5 }
 0x193   : > { %v1469_v21 = vmul.f32 %v1467_v32, %v3901_v28  ;;  %v1517_v7 = vsel %vm346_vm3, %v1515_v3, %v1516_v45  ;;  %v3914_v39 = vsel %vm381_vm4, %v1549_v52, %v1550_v19  ;;  %v1491_v55 = vmul.f32 %v1490_v48, %v3885_v33 }
 0x194   : > { %v3920_v1 = vsel %vm416_vm5, %v1583_v6, %v1584_v23  ;;  %v1617_v5 = vrot.slane %v3890_v49, 5  ;;  %v1470_v47 = vadd.f32 %v1468_v63, %v1465_v60  ;;  %v1524_v50 = vstv %s3871_s3  ;;  %v1679_v49 = vpop.permute.xlu1 %1678  ;;  %s2355_s3 = scalar_lea.vmem %s4213_s6, 256 }
 0x195   : > { %v3926_v53 = vmul.f32 %v3897_v42, %v3817_v57  ;;  %v3930_v20 = vmul.f32 %v3897_v42, %v3823_v16  ;;  %v1511_v18 = vmul.f32 %v3826_v11, %v3862_v13  ;;  %v1471_v4 = vadd.f32 %v1469_v21, %v1466_v9  ;;  %s4211_s13 = scalar_lea.hbm %s4483_s21, %s2216_s26  ;;  %p2356_p12 = scmp.ne.s32.totalorder %s4213_s6, %s2355_s3 }
 0x196   : > { %v1618_v17 = vrot.slane %v3894_v2, 5  ;;  %v1485_v35 = vsel %vm311_vm2, %v1482_v30, %v1484_v54  ;;  %v1483_v22 = vsel %vm311_vm2, %v1481_v15, %v1482_v30  ;;  %v1558_v36 = vstv %s3879_s0  ;;  %s2470_s0 = smov [#allocation9]  }
 0x197   : > { %v1497_v57 = vrot.slane %v1491_v55, 1  ;;  %v1525_v14 = vmul.f32 %v1524_v50, %v3885_v33  ;;  %v3943_v16 = vsel %vm1451_vm11, %v1450_v56, 0.0  ;;  %v1492_v11 = vmul.f32 %v1490_v48, %v3901_v28  ;;  %p2357_p7 = pnand %p2356_p12, %p4484_p13 }
 0x198   : > { %v1488_v62 = vadd.f32 %v1483_v22, %v1470_v47  ;;  %v1493_v37 = vmul.f32 %v1490_v48, %v3943_v16  ;;  %v1526_v0 = vmul.f32 %v1524_v50, %v3901_v28  ;;  %v1527_v58 = vmul.f32 %v1524_v50, %v3943_v16 }
 0x199   : > { %v1518_v26 = vrot.slane %v1511_v18, 2  ;;  %v1545_v59 = vmul.f32 %v3835_v27, %v3862_v13  ;;  %v1489_v8 = vadd.f32 %v1485_v35, %v1471_v4  ;;  %v1498_v10 = vrot.slane %v1492_v11, 1  ;;  %p2358_p3 = pneg %p2357_p7 }
 0x19a   : > { %v1651_v24 = vrot.slane %v3926_v53, 6  ;;  %v1559_v34 = vmul.f32 %v1558_v36, %v3885_v33  ;;  %v1592_v40 = vstv %s3906_s12  ;;  %v1500_v61 = vrot.slane %v1493_v37, 1  ;;  %s2359_s12 = sshll.u32 %s2470_s0, 4  ;;  %s2360_s12 = int_to_ptr.vmem [resolvable:$false] %s2359_s12 }
 0x19b   : > { %v1531_v51 = vrot.slane %v1525_v14, 2  ;;  %v1499_v29 = vsel %vm311_vm2, %v1497_v57, %v1498_v10  ;;  %v1532_v15 = vrot.slane %v1526_v0, 2  ;;  %v1560_v30 = vmul.f32 %v1558_v36, %v3901_v28  ;;  %p2362_p6 = scmp.lt.s32.totalorder %s4213_s6, %s2360_s12 }
 0x19c   : > { %v1501_v3 = vsel %vm311_vm2, %v1498_v10, %v1500_v61  ;;  %v1504_v27 = vadd.f32 %v1499_v29, %v1488_v62  ;;  %v1534_v43 = vrot.slane %v1527_v58, 2  ;;  %v1561_v12 = vmul.f32 %v1558_v36, %v3943_v16 }
 0x19d   : > { %v1519_v52 = vsel %vm346_vm3, %v1516_v45, %v1518_v26  ;;  %v1552_v32 = vrot.slane %v1545_v59, 3  ;;  %v1579_v60 = vmul.f32 %v3840_v38, %v3862_v13  ;;  %v1505_v6 = vadd.f32 %v1501_v3, %v1489_v8 }
 0x19e   : > { %v1565_v9 = vrot.slane %v1559_v34, 3  ;;  %v1593_v54 = vmul.f32 %v1592_v40, %v3885_v33  ;;  %v1626_v63 = vstv %s3938_s14  ;;  %v1522_v21 = vadd.f32 %v1517_v7, %v1504_v27  ;;  %s2361_s14 = scalar_lea.vmem %s2360_s12, 512 }
 0x19f   : > { %v1523_v48 = vadd.f32 %v1519_v52, %v1505_v6  ;;  %v1533_v55 = vsel %vm346_vm3, %v1531_v51, %v1532_v15  ;;  %v1566_v47 = vrot.slane %v1560_v30, 3  ;;  %v1594_v50 = vmul.f32 %v1592_v40, %v3901_v28  ;;  %p2363_p4 = scmp.lt.s32.totalorder %s2361_s14, %s2355_s3 }
 0x1a0   : > { %v1535_v41 = vsel %vm346_vm3, %v1532_v15, %v1534_v43  ;;  %v1538_v45 = vadd.f32 %v1533_v55, %v1522_v21  ;;  %v1568_v56 = vrot.slane %v1561_v12, 3  ;;  %v1595_v18 = vmul.f32 %v1592_v40, %v3943_v16  ;;  %v1677_v15 = vpop.permute.xlu0 %1676 }
 0x1a1   : > { %v1553_v38 = vsel %vm381_vm4, %v1550_v19, %v1552_v32  ;;  %v1586_v4 = vrot.slane %v1579_v60, 4  ;;  %v1613_v7 = vmul.f32 %v3875_v44, %v3862_v13  ;;  %v1539_v35 = vadd.f32 %v1535_v41, %v1523_v48  ;;  %p2364_p5 = por %p2363_p4, %p2362_p6 }
 0x1a2   : > { %v1599_v22 = vrot.slane %v1593_v54, 4  ;;  %v1627_v36 = vmul.f32 %v1626_v63, %v3885_v33  ;;  %v1660_v57 = vstv %s3954_s15  ;;  %v1556_v14 = vadd.f32 %v3914_v39, %v1538_v45 }
 0x1a3   : > { %v1557_v11 = vadd.f32 %v1553_v38, %v1539_v35  ;;  %v1567_v62 = vsel %vm381_vm4, %v1565_v9, %v1566_v47  ;;  %v1600_v37 = vrot.slane %v1594_v50, 4  ;;  %v1628_v0 = vmul.f32 %v1626_v63, %v3901_v28  ;;  %p2365_p0 = pnand %p2364_p5, %p2358_p3 }
 0x1a4   : > { %v1569_v25 = vsel %vm381_vm4, %v1566_v47, %v1568_v56  ;;  %v1572_v19 = vadd.f32 %v1567_v62, %v1556_v14  ;;  %v1602_v58 = vrot.slane %v1595_v18, 4  ;;  %v1629_v26 = vmul.f32 %v1626_v63, %v3943_v16  ;;  %v1681_v48 = vpop.permute.xlu0 %1680  ;;  %v1683_v62 = vpop.permute.xlu1 %1682 }
 0x1a5   : > { %v1652_v44 = vrot.slane %v3930_v20, 6  ;;  %v1620_v59 = vrot.slane %v1613_v7, 5  ;;  %v1647_v39 = vmul.f32 %v3897_v42, %v3862_v13  ;;  %v1573_v8 = vadd.f32 %v1569_v25, %v1557_v11 }
 0x1a6   : > { %v1587_v10 = vsel %vm416_vm5, %v1584_v23, %v1586_v4  ;;  %v1633_v34 = vrot.slane %v1627_v36, 5  ;;  %v1661_v40 = vmul.f32 %v1660_v57, %v3885_v33  ;;  %v1590_v61 = vadd.f32 %v3920_v1, %v1572_v19 }
 0x1a7   : > { %v1591_v51 = vadd.f32 %v1587_v10, %v1573_v8  ;;  %v1601_v20 = vsel %vm416_vm5, %v1599_v22, %v1600_v37  ;;  %v1634_v29 = vrot.slane %v1628_v0, 5  ;;  %v1662_v13 = vmul.f32 %v1660_v57, %v3901_v28 }
 0x1a8   : > { %v1603_v31 = vsel %vm416_vm5, %v1600_v37, %v1602_v58  ;;  %v1606_v23 = vadd.f32 %v1601_v20, %v1590_v61  ;;  %v1636_v42 = vrot.slane %v1629_v26, 5  ;;  %v1619_v33 = vsel %vm451_vm6, %v1617_v5, %v1618_v17 }
 0x1a9   : > { %v1607_v1 = vadd.f32 %v1603_v31, %v1591_v51  ;;  %v1663_v30 = vmul.f32 %v1660_v57, %v3943_v16  ;;  %v1653_v28 = vsel %vm486_vm7, %v1651_v24, %v1652_v44  ;;  %v1621_v3 = vsel %vm451_vm6, %v1618_v17, %v1620_v59 }
 0x1aa   : > { %v1654_v27 = vrot.slane %v1647_v39, 6  ;;  %v1624_v43 = vadd.f32 %v1619_v33, %v1606_v23  ;;  %v1667_v12 = vrot.slane %v1661_v40, 6  ;;  %v1635_v52 = vsel %vm451_vm6, %v1633_v34, %v1634_v29  ;;  %v1685_v39 = vpop.permute.xlu0 %1684 }
 0x1ab   : > { %v1625_v5 = vadd.f32 %v1621_v3, %v1607_v1  ;;  %v1668_v16 = vrot.slane %v1662_v13, 6  ;;  %v1637_v53 = vsel %vm451_vm6, %v1634_v29, %v1636_v42  ;;  %v4023_v2 = vsel %vm1688_vm12, %v1677_v15, 0.0 }
 0x1ac   : > { %v1640_v24 = vadd.f32 %v1635_v52, %v1624_v43  ;;  %v1711_v17 = vstv %s3983_s16  ;;  %v1670_v60 = vrot.slane %v1663_v30, 6  ;;  %v4028_v6 = vsel %vm1688_vm12, %v1679_v49, 0.0  ;;  %v1687_v49 = vpop.permute.xlu1 %1686 }
 0x1ad   : > { %v1641_v32 = vadd.f32 %v1637_v53, %v1625_v5  ;;  %v4031_v9 = vstv %s3988_s18  ;;  %v1655_v54 = vsel %vm486_vm7, %v1652_v44, %v1654_v27  ;;  %v1779_v21 = vstv %s3995_s24 }
 0x1ae   : > { %v1658_v63 = vadd.f32 %v1653_v28, %v1640_v24  ;;  %v1699_v47 = vstv %s3999_s25  ;;  %v4039_v50 = vmul.f32 %v1711_v17, %v4023_v2  ;;  %v4042_v41 = vstv %s4001_s8 }
 0x1af   : > { %v1659_v55 = vadd.f32 %v1655_v54, %v1641_v32  ;;  %v1669_v45 = vsel %vm486_vm7, %v1667_v12, %v1668_v16  ;;  %v1713_v56 = vmul.f32 %v1711_v17, %v4028_v6  ;;  %v1746_v18 = vmul.f32 %v4031_v9, %v4023_v2 }
 0x1b0   : > { %v4054_v38 = vmul.f32 %v4031_v9, %v4028_v6  ;;  %v1671_v4 = vsel %vm486_vm7, %v1668_v16, %v1670_v60  ;;  %v1780_v7 = vmul.f32 %v1779_v21, %v4023_v2  ;;  %v4059_v35 = vmul.f32 %v1779_v21, %v4028_v6 }
 0x1b1   : > { %v4063_v22 = vsel %vm1688_vm12, %v1681_v48, 0.0  ;;  %v1675_v36 = vadd.f32 %v1671_v4, %v1659_v55  ;;  %v1674_v57 = vadd.f32 %v1669_v45, %v1658_v63  ;;  %v1700_v14 = vmul.f32 %v1699_v47, %v4023_v2 }
 0x1b2   : > { %v1814_v11 = vmul.f32 %v4042_v41, %v4023_v2  ;;  %v1701_v37 = vmul.f32 %v1699_v47, %v4028_v6  ;;  %v1718_v0 = vrot.slane %v4039_v50, 1  ;;  %v4074_v25 = vmul.f32 %v4042_v41, %v4028_v6 }
 0x1b3   : > { %v4077_v19 = vstv %s4018_s29  ;;  %v1719_v58 = vrot.slane %v1713_v56, 1  ;;  %v1752_v26 = vrot.slane %v1746_v18, 2  ;;  %v1753_v44 = vrot.slane %v4054_v38, 2 }
 0x1b4   : > { %v1714_v59 = vmul.f32 %v1711_v17, %v4063_v22  ;;  %v1786_v8 = vrot.slane %v1780_v7, 3  ;;  %v1787_v10 = vrot.slane %v4059_v35, 3  ;;  %v1704_v34 = vstv %s4033_s11 }
 0x1b5   : > { %v4087_v40 = vsel %vm1688_vm12, %v1683_v62, 0.0  ;;  %v1702_v61 = vadd.f32 %v1700_v14, %v1674_v57  ;;  %v1703_v51 = vadd.f32 %v1701_v37, %v1675_v36  ;;  %v1820_v20 = vrot.slane %v1814_v11, 4 }
 0x1b6   : > { %v4091_v29 = vmul.f32 %v4077_v19, %v4023_v2  ;;  %v1821_v13 = vrot.slane %v4074_v25, 4  ;;  %v4095_v31 = vstv %s4044_s17  ;;  %v4099_v23 = vsel %vm1688_vm12, %v1685_v39, 0.0 }
 0x1b7   : > { %v1727_v42 = vstv %s4046_s10  ;;  %v1754_v15 = vsel %vm346_vm3, %v1752_v26, %v1753_v44  ;;  %v1721_v33 = vrot.slane %v1714_v59, 1  ;;  %v1705_v1 = vmul.f32 %v1704_v34, %v4087_v40 }
 0x1b8   : > { %v1706_v30 = vmul.f32 %v1704_v34, %v4099_v23  ;;  %v4112_v28 = vsel %vm381_vm4, %v1786_v8, %v1787_v10  ;;  %v4116_v3 = vmul.f32 %v4077_v19, %v4028_v6  ;;  %v1728_v27 = vmul.f32 %v1727_v42, %v4087_v40 }
 0x1b9   : > { %v1761_v43 = vstv %s4065_s27  ;;  %v1854_v12 = vrot.slane %v4091_v29, 5  ;;  %v4123_v5 = vmul.f32 %v4095_v31, %v4023_v2  ;;  %v1707_v52 = vadd.f32 %v1705_v1, %v1702_v61 }
 0x1ba   : > { %v1708_v16 = vadd.f32 %v1706_v30, %v1703_v51  ;;  %v4128_v53 = vsel %vm416_vm5, %v1820_v20, %v1821_v13  ;;  %v4132_v24 = vmul.f32 %v4095_v31, %v4028_v6  ;;  %v1748_v17 = vmul.f32 %v4031_v9, %v4063_v22 }
 0x1bb   : > { %v1782_v32 = vmul.f32 %v1779_v21, %v4063_v22  ;;  %v1722_v2 = vsel %vm311_vm2, %v1719_v58, %v1721_v33  ;;  %v1762_v60 = vmul.f32 %v1761_v43, %v4087_v40  ;;  %v1795_v54 = vstv %s4081_s30 }
 0x1bc   : > { %v4144_v63 = vsel %vm1688_vm12, %v1687_v49, 0.0  ;;  %v1720_v6 = vsel %vm311_vm2, %v1718_v0, %v1719_v58  ;;  %v1734_v48 = vrot.slane %v1728_v27, 1  ;;  %v1729_v55 = vmul.f32 %v1727_v42, %v4099_v23 }
 0x1bd   : > { %v1730_v9 = vmul.f32 %v1727_v42, %v4144_v63  ;;  %v1725_v21 = vadd.f32 %v1720_v6, %v1707_v52  ;;  %v1726_v47 = vadd.f32 %v1722_v2, %v1708_v16  ;;  %v1763_v50 = vmul.f32 %v1761_v43, %v4099_v23 }
 0x1be   : > { %v1764_v45 = vmul.f32 %v1761_v43, %v4144_v63  ;;  %v1755_v56 = vrot.slane %v1748_v17, 2  ;;  %v1796_v18 = vmul.f32 %v1795_v54, %v4087_v40  ;;  %v1735_v46 = vrot.slane %v1729_v55, 1 }
 0x1bf   : > { %v1737_v4 = vrot.slane %v1730_v9, 1  ;;  %v1768_v7 = vrot.slane %v1762_v60, 2  ;;  %v1829_v36 = vstv %s4107_s19  ;;  %v1797_v57 = vmul.f32 %v1795_v54, %v4099_v23 }
 0x1c0   : > { %v1798_v14 = vmul.f32 %v1795_v54, %v4144_v63  ;;  %v1736_v11 = vsel %vm311_vm2, %v1734_v48, %v1735_v46  ;;  %v1769_v37 = vrot.slane %v1763_v50, 2  ;;  %v1771_v0 = vrot.slane %v1764_v45, 2 }
 0x1c1   : > { %v1738_v62 = vsel %vm311_vm2, %v1735_v46, %v1737_v4  ;;  %v1789_v58 = vrot.slane %v1782_v32, 3  ;;  %v1816_v26 = vmul.f32 %v4042_v41, %v4063_v22  ;;  %v1741_v59 = vadd.f32 %v1736_v11, %v1725_v21 }
 0x1c2   : > { %v1742_v39 = vadd.f32 %v1738_v62, %v1726_v47  ;;  %v1756_v8 = vsel %vm346_vm3, %v1753_v44, %v1755_v56  ;;  %v1802_v34 = vrot.slane %v1796_v18, 3  ;;  %v1830_v61 = vmul.f32 %v1829_v36, %v4087_v40 }
 0x1c3   : > { %v1863_v51 = vstv %s4137_s20  ;;  %v1759_v20 = vadd.f32 %v1754_v15, %v1741_v59  ;;  %v1831_v33 = vmul.f32 %v1829_v36, %v4099_v23  ;;  %v1832_v1 = vmul.f32 %v1829_v36, %v4144_v63 }
 0x1c4   : > { %v1760_v42 = vadd.f32 %v1756_v8, %v1742_v39  ;;  %v1770_v30 = vsel %vm346_vm3, %v1768_v7, %v1769_v37  ;;  %v1772_v41 = vsel %vm346_vm3, %v1769_v37, %v1771_v0  ;;  %v1803_v27 = vrot.slane %v1797_v57, 3 }
 0x1c5   : > { %v1805_v43 = vrot.slane %v1798_v14, 3  ;;  %v1823_v38 = vrot.slane %v1816_v26, 4  ;;  %v1850_v44 = vmul.f32 %v4077_v19, %v4063_v22  ;;  %v1775_v49 = vadd.f32 %v1770_v30, %v1759_v20 }
 0x1c6   : > { %v1776_v52 = vadd.f32 %v1772_v41, %v1760_v42  ;;  %v1790_v15 = vsel %vm381_vm4, %v1787_v10, %v1789_v58  ;;  %v1836_v16 = vrot.slane %v1830_v61, 4  ;;  %v1864_v17 = vmul.f32 %v1863_v51, %v4087_v40 }
 0x1c7   : > { %v1897_v32 = vstv %s4152_s22  ;;  %v1793_v2 = vadd.f32 %v4112_v28, %v1775_v49  ;;  %v1837_v54 = vrot.slane %v1831_v33, 4  ;;  %v1839_v6 = vrot.slane %v1832_v1, 4 }
 0x1c8   : > { %v1794_v60 = vadd.f32 %v1790_v15, %v1776_v52  ;;  %v1804_v48 = vsel %vm381_vm4, %v1802_v34, %v1803_v27  ;;  %v1806_v55 = vsel %vm381_vm4, %v1803_v27, %v1805_v43  ;;  %v1865_v19 = vmul.f32 %v1863_v51, %v4099_v23 }
 0x1c9   : > { %v1866_v9 = vmul.f32 %v1863_v51, %v4144_v63  ;;  %v1855_v35 = vrot.slane %v4116_v3, 5  ;;  %v1884_v10 = vmul.f32 %v4095_v31, %v4063_v22  ;;  %v1809_v21 = vadd.f32 %v1804_v48, %v1793_v2 }
 0x1ca   : > { %v1810_v47 = vadd.f32 %v1806_v55, %v1794_v60  ;;  %v1824_v28 = vsel %vm416_vm5, %v1821_v13, %v1823_v38  ;;  %v1857_v50 = vrot.slane %v1850_v44, 5  ;;  %v1870_v45 = vrot.slane %v1864_v17, 5 }
 0x1cb   : > { %v1898_v56 = vmul.f32 %v1897_v32, %v4087_v40  ;;  %v1827_v18 = vadd.f32 %v4128_v53, %v1809_v21  ;;  %v1838_v4 = vsel %vm416_vm5, %v1836_v16, %v1837_v54  ;;  %v1840_v3 = vsel %vm416_vm5, %v1837_v54, %v1839_v6 }
 0x1cc   : > { %v1828_v46 = vadd.f32 %v1824_v28, %v1810_v47  ;;  %v1871_v7 = vrot.slane %v1865_v19, 5  ;;  %v1873_v22 = vrot.slane %v1866_v9, 5  ;;  %v1899_v31 = vmul.f32 %v1897_v32, %v4099_v23 }
 0x1cd   : > { %v1900_v25 = vmul.f32 %v1897_v32, %v4144_v63  ;;  %v1888_v13 = vrot.slane %v4123_v5, 6  ;;  %v1843_v36 = vadd.f32 %v1838_v4, %v1827_v18  ;;  %v1856_v40 = vsel %vm451_vm6, %v1854_v12, %v1855_v35 }
 0x1ce   : > { %v1844_v57 = vadd.f32 %v1840_v3, %v1828_v46  ;;  %v1889_v53 = vrot.slane %v4132_v24, 6  ;;  %v1858_v14 = vsel %vm451_vm6, %v1855_v35, %v1857_v50  ;;  %v1891_v11 = vrot.slane %v1884_v10, 6 }
 0x1cf   : > { %v1904_v62 = vrot.slane %v1898_v56, 6  ;;  %v1861_v37 = vadd.f32 %v1856_v40, %v1843_v36  ;;  %v1872_v63 = vsel %vm451_vm6, %v1870_v45, %v1871_v7  ;;  %v1874_v5 = vsel %vm451_vm6, %v1871_v7, %v1873_v22 }
 0x1d0   : > { %v1862_v23 = vadd.f32 %v1858_v14, %v1844_v57  ;;  %v1905_v0 = vrot.slane %v1899_v31, 6  ;;  %v1907_v58 = vrot.slane %v1900_v25, 6  ;;  %v1890_v12 = vsel %vm486_vm7, %v1888_v13, %v1889_v53 }
 0x1d1   : > { %v1877_v26 = vadd.f32 %v1872_v63, %v1861_v37  ;;  %v1892_v59 = vsel %vm486_vm7, %v1889_v53, %v1891_v11 }
 0x1d2   : > { %v1878_v29 = vadd.f32 %v1874_v5, %v1862_v23  ;;  %v1906_v8 = vsel %vm486_vm7, %v1904_v62, %v1905_v0  ;;  %v1908_v34 = vsel %vm486_vm7, %v1905_v0, %v1907_v58 }
 0x1d3   : > { %v1895_v24 = vadd.f32 %v1890_v12, %v1877_v26 }
 0x1d4   : > { %v1896_v39 = vadd.f32 %v1892_v59, %v1878_v29 }
 0x1d5   : > { %v1911_v61 = vadd.f32 %v1906_v8, %v1895_v24 }
 0x1d6   : > { %v1912_v51 = vadd.f32 %v1908_v34, %v1896_v39 }
 0x1d7   : > { %v2204_v20 = vmul.f32 -1.442695, %v1911_v61  ;;  %1913 = vst.msk [vmem:[%s211_s4] sm:$0xff] %vm220_vm0, %v1911_v61 }
 0x1d8   : > { %v2205_v42 = vmul.f32 -1.442695, %v1912_v51  ;;  %1914 = vst.msk [vmem:[%s211_s4 + $0x8] sm:$0xff] %vm220_vm0, %v1912_v51 }
 0x1d9   : > { %2368 = shalt.err (!%p2365_p0)
}
 0x1da   : > { %s2369_s15 = scalar_lea.hbm %s4211_s13, 256  ;;  %s2373_s24 = scalar_lea.hbm %s4483_s21, 512 }
 0x1db   : > { %p2370_p8 = scmp.ne.s32.totalorder %s4211_s13, %s2369_s15  ;;  %p2374_p1 = scmp.lt.u32.totalorder %s4211_s13, %s4483_s21 }
 0x1dc   : > { %p2375_p2 = scmp.lt.u32.totalorder %s2373_s24, %s2369_s15  ;;  %p2377_p12 = scmp.lt.u32.totalorder %s2369_s15, %s4211_s13 }
 0x1dd   : > { %p2371_p9 = pnand %p2370_p8, %p4484_p13 }
 0x1de   : > { %p2376_p11 = por %p2375_p2, %p2374_p1 }
 0x1df   : > { %p2372_p10 = pneg %p2371_p9 }
 0x1e0   : > { %p2378_p7 = por %p2377_p12, %p2376_p11 }
 0x1e2   : > { %p2379_p3 = pnand %p2378_p7, %p2372_p10 }
 0x1e4   : > { %2382 = shalt.err (!%p2379_p3)
}
 0x1e5   : > { %s2471_s29 = smov 128   ;;  %s4485_s11 = sld [smem:[#allocation25_spill]]  ;;  %2290 = vpow2.f32 %v2204_v20 }
 0x1e6   : > { %s2472_s17 = smov 8   ;;  %2292 = vpow2.f32 %v2205_v42  ;;  %s2215_s10 = sshll.u32 %s4481_s9, 10 }
 0x1e7   : > { %2224 = dma.vmem_to_hbm [thread:$0]  (%p4484_p13), %s4213_s6, 256, %s4211_s13, %s1949_s2, %s2471_s29, %s2471_s29, %s2472_s17  }
 0x1e8   : > { %s4486_s27 = sshll.u32 %s4480_s5, 6  ;;  %s4487_s9 = sld [smem:[#allocation64_spill]] }
 0x1e9   : > { %s204_s30 = scalar_lea.vmem [#allocation8], %s4486_s27  ;;  %s1944_s26 = scalar_lea.sflag [#allocation5], %s4480_s5 }
 0x1ea   : > { %s1962_s19 = sshll.u32 %s204_s30, 4  ;;  %s2473_s6 = smov [#allocation8]   ;;  %s4260_s19 = int_to_ptr.vmem [resolvable:$true] %s1962_s19 }
 0x1eb   : > { %v2304_v38 = vld [vmem:[%s4485_s11] sm:$0xff]  ;;  %v2305_v49 = vld [vmem:[%s4485_s11 + $0x10] sm:$0xff]  ;;  %v2308_v2 = vld [vmem:[%s4485_s11 + $0x8] sm:$0xff]  ;;  %s2383_s4 = scalar_lea.vmem %s4260_s19, 1024  ;;  %s2387_s28 = sshll.u32 %s2473_s6, 4  ;;  %s2388_s28 = int_to_ptr.vmem [resolvable:$false] %s2387_s28 }
 0x1ec   : > { %v2306_v15 = vld [vmem:[%s4485_s11 + $0x20] sm:$0xff]  ;;  %v2307_v17 = vld [vmem:[%s4485_s11 + $0x30] sm:$0xff]  ;;  %v2309_v54 = vld [vmem:[%s4485_s11 + $0x18] sm:$0xff]  ;;  %p2384_p6 = scmp.ne.s32.totalorder %s4260_s19, %s2383_s4  ;;  %s2389_s1 = scalar_lea.vmem %s2388_s28, 2048 }
 0x1ed   : > { %v2310_v48 = vld [vmem:[%s4485_s11 + $0x28] sm:$0xff]  ;;  %v2311_v19 = vld [vmem:[%s4485_s11 + $0x38] sm:$0xff]  ;;  %p2390_p0 = scmp.lt.s32.totalorder %s4260_s19, %s2388_s28  ;;  %p2391_p8 = scmp.lt.s32.totalorder %s2389_s1, %s2383_s4 }
 0x1ee   : > { %s4258_s23 = scalar_lea.hbm %s4487_s9, %s2215_s10  ;;  %p2385_p4 = pnand %p2384_p6, %p4484_p13 }
 0x1ef   : > { %v2291_v33 = vpop.eup %2290  ;;  %p2392_p9 = por %p2391_p8, %p2390_p0 }
 0x1f0   : > { %v2293_v1 = vpop.eup %2292  ;;  %v1921_v30 = vadd.f32 1.0, %v2291_v33  ;;  %p2386_p5 = pneg %p2385_p4 }
 0x1f1   : > { %v1922_v41 = vadd.f32 1.0, %v2293_v1 }
 0x1f2   : > { %2294 = vrcp.f32 %v1921_v30  ;;  %p2393_p10 = pnand %p2392_p9, %p2386_p5 }
 0x1f3   : > { %2296 = vrcp.f32 %v1922_v41 }
 0x1fc   : > { %v2295_v27 = vpop.eup %2294 }
 0x1fd   : > { %v2297_v43 = vpop.eup %2296  ;;  %v1927_v44 = vmul.f32 %v2304_v38, %v2295_v27  ;;  %v1929_v52 = vmul.f32 %v2305_v49, %v2295_v27  ;;  %v1931_v16 = vmul.f32 %v2306_v15, %v2295_v27  ;;  %v1933_v32 = vmul.f32 %v2307_v17, %v2295_v27 }
 0x1fe   : > { %v1928_v60 = vmul.f32 %v2308_v2, %v2297_v43  ;;  %v1930_v6 = vmul.f32 %v2309_v54, %v2297_v43  ;;  %v1932_v55 = vmul.f32 %v2310_v48, %v2297_v43  ;;  %v1934_v9 = vmul.f32 %v2311_v19, %v2297_v43 }
 0x1ff   : > { %1935 = vst.msk [vmem:[%s204_s30] sm:$0xff] %vm220_vm0, %v1927_v44  ;;  %1937 = vst.msk [vmem:[%s204_s30 + $0x10] sm:$0xff] %vm220_vm0, %v1929_v52 }
 0x200   : > { %1939 = vst.msk [vmem:[%s204_s30 + $0x20] sm:$0xff] %vm220_vm0, %v1931_v16  ;;  %1941 = vst.msk [vmem:[%s204_s30 + $0x30] sm:$0xff] %vm220_vm0, %v1933_v32 }
 0x201   : > { %1936 = vst.msk [vmem:[%s204_s30 + $0x8] sm:$0xff] %vm220_vm0, %v1928_v60  ;;  %1938 = vst.msk [vmem:[%s204_s30 + $0x18] sm:$0xff] %vm220_vm0, %v1930_v6 }
 0x202   : > { %1940 = vst.msk [vmem:[%s204_s30 + $0x28] sm:$0xff] %vm220_vm0, %v1932_v55  ;;  %1942 = vst.msk [vmem:[%s204_s30 + $0x38] sm:$0xff] %vm220_vm0, %v1934_v9 }
 0x203   : > { %2396 = shalt.err (!%p2393_p10)
}
 0x204   : > { %s2397_s13 = scalar_lea.hbm %s4258_s23, 1024  ;;  %s2401_s0 = scalar_lea.hbm %s4487_s9, 2048 }
 0x205   : > { %p2398_p1 = scmp.ne.s32.totalorder %s4258_s23, %s2397_s13  ;;  %p2402_p12 = scmp.lt.u32.totalorder %s4258_s23, %s4487_s9 }
 0x206   : > { %p2403_p7 = scmp.lt.u32.totalorder %s2401_s0, %s2397_s13  ;;  %p2405_p6 = scmp.lt.u32.totalorder %s2397_s13, %s4258_s23 }
 0x207   : > { %p2399_p2 = pnand %p2398_p1, %p4484_p13 }
 0x208   : > { %p2404_p3 = por %p2403_p7, %p2402_p12 }
 0x209   : > { %p2400_p11 = pneg %p2399_p2 }
 0x20a   : > { %p2406_p4 = por %p2405_p6, %p2404_p3 }
 0x20c   : > { %p2407_p5 = pnand %p2406_p4, %p2400_p11 }
 0x20e   : > { %2410 = shalt.err (!%p2407_p5)
}
 0x20f   : > { %2223 = dma.vmem_to_hbm [thread:$0]  (%p4484_p13), %s4260_s19, 1024, %s4258_s23, %s1944_s26, %s2471_s29, %s2471_s29, %s2472_s17  }
 0x210 PF: > { %s4488_s15 = sld [smem:[#allocation15_spill]]  ;;  %s4489_s16 = sld [smem:[#allocation23_spill]] }
 0x211   : > { %s4490_s18 = sld [smem:[#allocation18_spill]] }
 0x216   : > { %s1993_s24 = sand.u32 1, %s4488_s15   ;;  %p4491_p0 = scmp.ne.s32.totalorder %s4489_s16, 0 }
 0x217   : > { %p4492_p8 = scmp.ge.s32.totalorder %s4490_s18, 2  ;;  %s1994_s25 = scalar_lea.sflag [#allocation5], %s1993_s24 }
 0x219   : > { %p2236_p9 = pnand %p4492_p8, %p4491_p0 }
 0x21b   : > { %2436 = dma.done.wait (!%p2236_p9), %s1994_s25, 1024  }
 0x21c   : > { %2438 = vsyncadd (!%p2236_p9), %s1994_s25, 4294966272  ;;  %s2003_s7 = scalar_lea.sflag [#allocation10], %s1993_s24 }
 0x21d   : > { %2440 = dma.done.wait (!%p2236_p9), %s2003_s7, 256  }
 0x21e   : > { %2442 = vsyncadd (!%p2236_p9), %s2003_s7, 4294967040  ;;  %s4493_s15 = sld [smem:[#allocation20_spill]]  ;;  %s4494_s12 = sld [smem:[#allocation16_spill]] }
 0x21f   : > { %s4495_s13 = sld [smem:[#allocation17_spill]]  ;;  %s4496_s14 = sld [smem:[#allocation21_spill]] }
 0x224   : > { %p21_p13 = scmp.ge.s32.totalorder %s4493_s15, 4  }
 0x226   :  { %23 = sbr.rel (!%p21_p13) target bundleno = 13 (0xd), region = 96 }
 0x22d   :  { %2008 = vsyncpa [#allocation4], 1 }
 0x22e   :  { %2010 = vsyncpa [#allocation4 + $0x1], 1 }
 0x22f   :  { %2011 = vsyncpa [#allocation5], 1 }
 0x230   :  { %2013 = vsyncpa [#allocation5 + $0x1], 1 }
 0x231   :  { %2014 = vsyncpa [#allocation10], 1 }
 0x232   :  { %2016 = vsyncpa [#allocation10 + $0x1], 1 }
 0x233   :  { %2017 = vsyncpa [#allocation6], 1 }
 0x234   :  { %2019 = vsyncpa [#allocation6 + $0x1], 1 }

</bundles_post_ra>
